<compile_context>
chip_gen: v5e
topology: v5e:2x2
jax: 0.10.0
libtpu: 0.0.40
codegen_flags: <defaults>
</compile_context>

<pallas_src>
import functools

import jax
import jax.numpy as jnp
from jax import lax
from jax.experimental import pallas as pl
from jax.experimental.pallas import tpu as pltpu

LANES = 128
TILE_B_MAX = 1024  # batch tile; sweep 512-2048. Multiple of 256 (v6e/v7x MXU).


def _round_up(n, m):
    return ((n + m - 1) // m) * m


def _mlp_kernel(x_ref, w1_ref, b1_ref, w2_ref, b2_ref, w3_ref, b3_ref, o_ref, *,
                scalar_out):
    """One batch tile of Linear->ReLU->Linear->ReLU->Linear (all MXU + VPU)."""
    x = x_ref[...]
    # Layer 1: (tile_b, in) @ (in, H) + b1, ReLU
    h1 = jnp.maximum(
        jnp.dot(x, w1_ref[...], preferred_element_type=jnp.float32) + b1_ref[...], 0.0)
    # Layer 2: (tile_b, H) @ (H, H2p) + b2, ReLU   (H2 zero-padded to 128 lanes)
    h2 = jnp.maximum(
        jnp.dot(h1, w2_ref[...], preferred_element_type=jnp.float32) + b2_ref[...], 0.0)
    if scalar_out:
        # out_dim == 1: contract (1, H2p) with (tile_b, H2p) on the MXU so the
        # result is a lane-dense (1, tile_b) row (batch in lanes) -> unmasked
        # stores and 128x less HBM writeback than a broadcast (tile_b, 128) block.
        y = lax.dot_general(w3_ref[...], h2, (((1,), (1,)), ((), ())),
                            preferred_element_type=jnp.float32)
        o_ref[...] = y + b3_ref[...]
    else:
        # General out_dim: lane-padded matmul; padding sliced off outside.
        o_ref[...] = jnp.dot(h2, w3_ref[...],
                             preferred_element_type=jnp.float32) + b3_ref[...]


def prepare_params(params):
    """One-time conversion of PyTorch-convention params ((out,in) weights, (out,)
    biases) to the kernel layout (transposed, lane-padded). Call at load time."""
    w1, b1 = params["w1"], params["b1"]
    w2, b2 = params["w2"], params["b2"]
    w3, b3 = params["w3"], params["b3"]
    hidden = int(w1.shape[0])
    hidden2 = int(w2.shape[0])
    out_dim = int(w3.shape[0])

    hidden_pad = _round_up(hidden, LANES)
    hidden2_pad = _round_up(hidden2, LANES)

    prepped = {
        "out_dim": out_dim,
        # (in, hidden_pad)
        "w1t": jnp.pad(jnp.asarray(w1.T), ((0, 0), (0, hidden_pad - hidden))),
        # (1, hidden_pad)
        "b1": jnp.pad(jnp.asarray(b1).reshape(1, -1), ((0, 0), (0, hidden_pad - hidden))),
        # (hidden_pad, hidden2_pad) — zero-padded so h2 is lane-dense
        "w2t": jnp.pad(jnp.asarray(w2.T),
                       ((0, hidden_pad - hidden), (0, hidden2_pad - hidden2))),
        # (1, hidden2_pad)
        "b2": jnp.pad(jnp.asarray(b2).reshape(1, -1), ((0, 0), (0, hidden2_pad - hidden2))),
    }
    if out_dim == 1:
        # Row vector (1, hidden2_pad) for the dot_general(w3, h2) path.
        prepped["w3"] = jnp.pad(jnp.asarray(w3), ((0, 0), (0, hidden2_pad - hidden2)))
        prepped["b3"] = jnp.asarray(b3).reshape(1, 1)
    else:
        out_pad = _round_up(out_dim, LANES)
        prepped["w3"] = jnp.pad(jnp.asarray(w3.T),
                                ((0, hidden2_pad - hidden2), (0, out_pad - out_dim)))
        prepped["b3"] = jnp.pad(jnp.asarray(b3).reshape(1, -1), ((0, 0), (0, out_pad - out_dim)))
    return prepped


def mlp_forward(x, prepped):
    B, in_dim = x.shape
    out_dim = prepped["out_dim"]
    scalar_out = out_dim == 1

    w1t, b1 = prepped["w1t"], prepped["b1"]
    w2t, b2 = prepped["w2t"], prepped["b2"]
    w3, b3 = prepped["w3"], prepped["b3"]
    hidden = w1t.shape[1]
    hidden2 = w2t.shape[1]

    # Fixed batch tile + cdiv grid; pad the batch once outside (never one
    # monolithic block -> VMEM stays bounded and the pipeline keeps running).
    tile_b = min(TILE_B_MAX, _round_up(B, 256))
    b_pad = _round_up(B, tile_b)
    if b_pad != B:
        x = jnp.pad(x, ((0, b_pad - B), (0, 0)))
    grid = (b_pad // tile_b,)

    # Weights / biases: full arrays resident in VMEM (same block every step).
    def full(a):
        return pl.BlockSpec(a.shape, lambda i: (0,) * a.ndim)

    if scalar_out:
        out_cols = 1
        out_shape = jax.ShapeDtypeStruct((1, b_pad), jnp.float32)
        out_spec = pl.BlockSpec((1, tile_b), lambda i: (0, i))
    else:
        out_cols = w3.shape[1]
        out_shape = jax.ShapeDtypeStruct((b_pad, out_cols), jnp.float32)
        out_spec = pl.BlockSpec((tile_b, out_cols), lambda i: (i, 0))

    flops = 2 * b_pad * (in_dim * hidden + hidden * hidden2 + hidden2 * out_cols)
    bytes_accessed = 4 * (b_pad * in_dim + b_pad * out_cols
                          + w1t.size + b1.size + w2t.size + b2.size + w3.size + b3.size)

    out = pl.pallas_call(
        functools.partial(_mlp_kernel, scalar_out=scalar_out),
        out_shape=out_shape,
        grid=grid,
        in_specs=[
            pl.BlockSpec((tile_b, in_dim), lambda i: (i, 0)),  # x tiled over batch
            full(w1t), full(b1),
            full(w2t), full(b2),
            full(w3), full(b3),
        ],
        out_specs=out_spec,
        compiler_params=pltpu.CompilerParams(
            dimension_semantics=("parallel",),
        ),
        cost_estimate=pl.CostEstimate(flops=flops, transcendentals=0,
                                      bytes_accessed=bytes_accessed),
    )(x, w1t, b1, w2t, b2, w3, b3)

    if scalar_out:
        # (1, b_pad) row -> (B, 1) column (trivial reshape + slice, no data movement).
        return out.reshape(b_pad, 1)[:B]
    return out[:B, :out_dim]


def init_params(key, input_dim, hidden_dim=128, output_dim=1):
    """Deterministic init mimicking nn.Linear's uniform(-1/sqrt(fan_in), 1/sqrt(fan_in))."""
    dims = [(hidden_dim, input_dim), (hidden_dim // 2, hidden_dim), (output_dim, hidden_dim // 2)]
    params = {}
    for i, (out_d, in_d) in enumerate(dims, start=1):
        key, kw, kb = jax.random.split(key, 3)
        bound = 1.0 / jnp.sqrt(in_d)
        params[f"w{i}"] = jax.random.uniform(kw, (out_d, in_d), jnp.float32, -bound, bound)
        params[f"b{i}"] = jax.random.uniform(kb, (out_d,), jnp.float32, -bound, bound)
    return params


if __name__ == "__main__":
    # Full-precision reference matmuls (so the f32 MXU kernel comparison is apples-to-apples).
    jax.config.update("jax_default_matmul_precision", "highest")

    key = jax.random.PRNGKey(0)
    k_x, k_p = jax.random.split(key)

    batch = 8
    input_dim = 32
    hidden_dim = 128
    output_dim = 1

    x = jax.random.normal(k_x, (batch, input_dim), dtype=jnp.float32)
    params = init_params(k_p, input_dim, hidden_dim, output_dim)

    # One-time layout prep (hoisted out of the forward path).
    prepped = prepare_params(params)

    out = jax.block_until_ready(mlp_forward(x, prepped))

    # Reference check in plain JAX (same semantics as the PyTorch module).
    h1 = jnp.maximum(x @ params["w1"].T + params["b1"], 0.0)
    h2 = jnp.maximum(h1 @ params["w2"].T + params["b2"], 0.0)
    ref = h2 @ params["w3"].T + params["b3"]

    assert out.shape == (batch, output_dim)
    assert jnp.allclose(out, ref, atol=1e-4, rtol=1e-4), float(jnp.max(jnp.abs(out - ref)))

    print("KERNEL_OK")
</pallas_src>

<mosaic_0001>
module attributes {stable_mosaic.version = 11 : i64} {
  func.func @_mlp_kernel(%arg0: i32, %arg1: memref<256x32xf32, #tpu.memory_space<vmem>>, %arg2: memref<32x128xf32, #tpu.memory_space<vmem>>, %arg3: memref<1x128xf32, #tpu.memory_space<vmem>>, %arg4: memref<128x128xf32, #tpu.memory_space<vmem>>, %arg5: memref<1x128xf32, #tpu.memory_space<vmem>>, %arg6: memref<1x128xf32, #tpu.memory_space<vmem>>, %arg7: memref<1x1xf32, #tpu.memory_space<vmem>>, %arg8: memref<1x256xf32, #tpu.memory_space<vmem>>) attributes {dimension_semantics = [#tpu.dimension_semantics<parallel>], iteration_bounds = array<i64: 1>, scalar_prefetch = 0 : i64, scratch_operands = 0 : i64, tpu.core_type = #tpu.core_type<tc>, window_params = [{transform_indices = @transform_0, window_bounds = array<i64: 256, 32>}, {pipeline_mode = #tpu.pipeline_mode<synchronous>, transform_indices = @transform_1, window_bounds = array<i64: 32, 128>}, {pipeline_mode = #tpu.pipeline_mode<synchronous>, transform_indices = @transform_2, window_bounds = array<i64: 1, 128>}, {pipeline_mode = #tpu.pipeline_mode<synchronous>, transform_indices = @transform_3, window_bounds = array<i64: 128, 128>}, {pipeline_mode = #tpu.pipeline_mode<synchronous>, transform_indices = @transform_4, window_bounds = array<i64: 1, 128>}, {pipeline_mode = #tpu.pipeline_mode<synchronous>, transform_indices = @transform_5, window_bounds = array<i64: 1, 128>}, {pipeline_mode = #tpu.pipeline_mode<synchronous>, transform_indices = @transform_6, window_bounds = array<i64: 1, 1>}, {transform_indices = @transform_7, window_bounds = array<i64: 1, 256>}]} {
    %c0 = arith.constant 0 : index
    %c0_0 = arith.constant 0 : index
    %0 = vector.load %arg1[%c0, %c0_0] : memref<256x32xf32, #tpu.memory_space<vmem>>, vector<256x32xf32>
    %c0_1 = arith.constant 0 : index
    %c0_2 = arith.constant 0 : index
    %1 = vector.load %arg2[%c0_1, %c0_2] : memref<32x128xf32, #tpu.memory_space<vmem>>, vector<32x128xf32>
    %cst = arith.constant dense<0.000000e+00> : vector<256x128xf32>
    %2 = tpu.matmul %0, %1, %cst {dimension_numbers = #tpu.dot_dimension_numbers<[1], [0], [0], [1], [0, 0, 1, 1], [], []>, precision = #tpu.contract_precision<fp32>} : vector<256x32xf32>, vector<32x128xf32>, vector<256x128xf32> -> vector<256x128xf32>
    %c0_3 = arith.constant 0 : index
    %c0_4 = arith.constant 0 : index
    %3 = vector.load %arg3[%c0_3, %c0_4] : memref<1x128xf32, #tpu.memory_space<vmem>>, vector<1x128xf32>
    %4 = vector.broadcast %3 : vector<1x128xf32> to vector<256x128xf32>
    %5 = arith.addf %2, %4 : vector<256x128xf32>
    %cst_5 = arith.constant 0.000000e+00 : f32
    %6 = vector.broadcast %cst_5 : f32 to vector<256x128xf32>
    %7 = arith.maximumf %5, %6 : vector<256x128xf32>
    %c0_6 = arith.constant 0 : index
    %c0_7 = arith.constant 0 : index
    %8 = vector.load %arg4[%c0_6, %c0_7] : memref<128x128xf32, #tpu.memory_space<vmem>>, vector<128x128xf32>
    %cst_8 = arith.constant dense<0.000000e+00> : vector<256x128xf32>
    %9 = tpu.matmul %7, %8, %cst_8 {dimension_numbers = #tpu.dot_dimension_numbers<[1], [0], [0], [1], [0, 0, 1, 1], [], []>, precision = #tpu.contract_precision<fp32>} : vector<256x128xf32>, vector<128x128xf32>, vector<256x128xf32> -> vector<256x128xf32>
    %c0_9 = arith.constant 0 : index
    %c0_10 = arith.constant 0 : index
    %10 = vector.load %arg5[%c0_9, %c0_10] : memref<1x128xf32, #tpu.memory_space<vmem>>, vector<1x128xf32>
    %11 = vector.broadcast %10 : vector<1x128xf32> to vector<256x128xf32>
    %12 = arith.addf %9, %11 : vector<256x128xf32>
    %cst_11 = arith.constant 0.000000e+00 : f32
    %13 = vector.broadcast %cst_11 : f32 to vector<256x128xf32>
    %14 = arith.maximumf %12, %13 : vector<256x128xf32>
    %c0_12 = arith.constant 0 : index
    %c0_13 = arith.constant 0 : index
    %15 = vector.load %arg6[%c0_12, %c0_13] : memref<1x128xf32, #tpu.memory_space<vmem>>, vector<1x128xf32>
    %cst_14 = arith.constant dense<0.000000e+00> : vector<1x256xf32>
    %16 = tpu.matmul %15, %14, %cst_14 {dimension_numbers = #tpu.dot_dimension_numbers<[1], [1], [0], [0], [0, 0, 1, 0], [], []>, precision = #tpu.contract_precision<fp32>} : vector<1x128xf32>, vector<256x128xf32>, vector<1x256xf32> -> vector<1x256xf32>
    %c0_15 = arith.constant 0 : index
    %c0_16 = arith.constant 0 : index
    %17 = vector.load %arg7[%c0_15, %c0_16] : memref<1x1xf32, #tpu.memory_space<vmem>>, vector<1x1xf32>
    %18 = vector.broadcast %17 : vector<1x1xf32> to vector<1x256xf32>
    %19 = arith.addf %16, %18 : vector<1x256xf32>
    %c0_17 = arith.constant 0 : index
    %c0_18 = arith.constant 0 : index
    %20 = vector.load %arg8[%c0_17, %c0_18] : memref<1x256xf32, #tpu.memory_space<vmem>>, vector<1x256xf32>
    tpu.vector_store %arg8[%c0_17, %c0_18], %19 {strides = array<i32>} : memref<1x256xf32, #tpu.memory_space<vmem>>, vector<1x256xf32>,
    return
  }
  func.func @transform_0(%arg0: i32) -> (i32, i32) {
    %c0_i32 = arith.constant 0 : i32
    %c0_i32_0 = arith.constant 0 : i32
    return %arg0, %c0_i32 : i32, i32
  }
  func.func @transform_1(%arg0: i32) -> (i32, i32) {
    %c0_i32 = arith.constant 0 : i32
    %c0_i32_0 = arith.constant 0 : i32
    %c0_i32_1 = arith.constant 0 : i32
    return %c0_i32, %c0_i32_0 : i32, i32
  }
  func.func @transform_2(%arg0: i32) -> (i32, i32) {
    %c0_i32 = arith.constant 0 : i32
    %c0_i32_0 = arith.constant 0 : i32
    %c0_i32_1 = arith.constant 0 : i32
    return %c0_i32, %c0_i32_0 : i32, i32
  }
  func.func @transform_3(%arg0: i32) -> (i32, i32) {
    %c0_i32 = arith.constant 0 : i32
    %c0_i32_0 = arith.constant 0 : i32
    %c0_i32_1 = arith.constant 0 : i32
    return %c0_i32, %c0_i32_0 : i32, i32
  }
  func.func @transform_4(%arg0: i32) -> (i32, i32) {
    %c0_i32 = arith.constant 0 : i32
    %c0_i32_0 = arith.constant 0 : i32
    %c0_i32_1 = arith.constant 0 : i32
    return %c0_i32, %c0_i32_0 : i32, i32
  }
  func.func @transform_5(%arg0: i32) -> (i32, i32) {
    %c0_i32 = arith.constant 0 : i32
    %c0_i32_0 = arith.constant 0 : i32
    %c0_i32_1 = arith.constant 0 : i32
    return %c0_i32, %c0_i32_0 : i32, i32
  }
  func.func @transform_6(%arg0: i32) -> (i32, i32) {
    %c0_i32 = arith.constant 0 : i32
    %c0_i32_0 = arith.constant 0 : i32
    %c0_i32_1 = arith.constant 0 : i32
    return %c0_i32, %c0_i32_0 : i32, i32
  }
  func.func @transform_7(%arg0: i32) -> (i32, i32) {
    %c0_i32 = arith.constant 0 : i32
    %c0_i32_0 = arith.constant 0 : i32
    return %c0_i32, %arg0 : i32, i32
  }
}

</mosaic_0001>

<bundles_post_ra>
// kernel: tpu_custom_call.1
= control target key start
LH: loop header
LB: loop body
LE: loop exit
PB: predicated region body
PF: predicated region fallthrough
CT: control target
= control target key end

     0   :  { %s5804_s0 = inlined_call_operand.vmem [shape: f32[256,32], index: 0, kind: input, shape index: {}]   ;;  %s5805_s1 = inlined_call_operand.vmem [shape: f32[32,128], index: 1, kind: input, shape index: {}]   ;;  %s5806_s2 = inlined_call_operand.vmem [shape: f32[1,128], index: 2, kind: input, shape index: {}]   ;;  %s5807_s3 = inlined_call_operand.vmem [shape: f32[128,128], index: 3, kind: input, shape index: {}]   ;;  %s5808_s4 = inlined_call_operand.vmem [shape: f32[1,128], index: 4, kind: input, shape index: {}]   ;;  %s5809_s5 = inlined_call_operand.vmem [shape: f32[1,128], index: 5, kind: input, shape index: {}]   ;;  %s5810_s6 = inlined_call_operand.<no memory space> [shape: f32[1,1], index: 6, kind: input, shape index: {}]   ;;  %s5811_s7 = inlined_call_operand.hbm [shape: f32[1,256], index: 7, kind: output, shape index: {}]  }
   0x1   :  { %v12_v0 = vstv %s5810_s6 }
   0x2   :  { %13 = vst [vmem:[#allocation2] sm:$0x1] %v12_v0 }
   0x3   :  { %v64_v1 = vld [vmem:[%s5805_s1 + $0x18] sm:$0xff]  ;;  %v63_v2 = vld [vmem:[%s5805_s1 + $0x10] sm:$0xff]  ;;  %v62_v3 = vld [vmem:[%s5805_s1 + $0x8] sm:$0xff]  ;;  %vm69_vm0 = vcmask 261120  }
   0x4   :  { %v3501_v4 = vand.u32 4294901760, %v64_v1  ;;  %v3503_v5 = vand.u32 4294901760, %v63_v2  ;;  %v3505_v6 = vand.u32 4294901760, %v62_v3  ;;  %v61_v7 = vld [vmem:[%s5805_s1] sm:$0xff]  ;;  %v30_v9 = vld [vmem:[%s5804_s0 + $0x8] sm:$0xff]  ;;  %v31_v13 = vld [vmem:[%s5804_s0 + $0x10] sm:$0xff] }
   0x5   :  { %v29_v8 = vld [vmem:[%s5804_s0] sm:$0xff]  ;;  %v3516_v10 = vand.u32 4294901760, %v61_v7  ;;  %v74_v12 = vsel %vm69_vm0, %v30_v9, 0  ;;  %v77_v20 = vsel %vm69_vm0, %v31_v13, 0 }
   0x6   :  { %v71_v11 = vsel %vm69_vm0, %v29_v8, 0  ;;  %179 = vmatpush.msra.mxu0 %v3501_v4  ;;  %v456_v14 = vsub.f32 %v64_v1, %v3501_v4  ;;  %v462_v15 = vsub.f32 %v63_v2, %v3503_v5  ;;  %806 = vmatpush.msra.mxu3 %v3501_v4  ;;  %v468_v16 = vsub.f32 %v62_v3, %v3505_v6 }
   0x7   :  { %v3528_v17 = vand.u32 4294901760, %v71_v11  ;;  %v474_v18 = vsub.f32 %v61_v7, %v3516_v10  ;;  %v3531_v19 = vand.u32 4294901760, %v74_v12 }
   0x8   :  { %14 = vsyncpa [#allocation4], 0  ;;  %181 = vmatpush.msra.mxu0 %v3503_v5  ;;  %622 = vmatpush.msra.mxu2 %v456_v14  ;;  %v457_v21 = vand.u32 4294901760, %v456_v14  ;;  %v463_v23 = vand.u32 4294901760, %v462_v15  ;;  %v469_v24 = vand.u32 4294901760, %v468_v16  ;;  %v3540_v32 = vand.u32 4294901760, %v77_v20 }
   0x9   :  { %v187_v22 = vsub.f32 %v71_v11, %v3528_v17  ;;  %808 = vmatpush.msra.mxu3 %v3503_v5  ;;  %v475_v25 = vand.u32 4294901760, %v474_v18  ;;  %v195_v26 = vsub.f32 %v74_v12, %v3531_v19  ;;  %v32_v39 = vld [vmem:[%s5804_s0 + $0x18] sm:$0xff]  ;;  %v33_v47 = vld [vmem:[%s5804_s0 + $0x20] sm:$0xff]  ;;  %v34_v54 = vld [vmem:[%s5804_s0 + $0x28] sm:$0xff]  ;;  %s3406_s12 = sshll.u32 %s5811_s7, 4  ;;  %vm3391_vm1 = vcmask 1040384   ;;  %s3407_s12 = int_to_ptr.hbm [resolvable:$true] %s3406_s12 }
   0xa   :  { %183 = vmatpush.msra.mxu0 %v3505_v6  ;;  %625 = vmatpush.msra.mxu2 %v462_v15  ;;  %v458_v27 = vsub.f32 %v456_v14, %v457_v21  ;;  %v464_v29 = vsub.f32 %v462_v15, %v463_v23  ;;  %v470_v30 = vsub.f32 %v468_v16, %v469_v24  ;;  %v80_v43 = vsel %vm69_vm0, %v32_v39, 0  ;;  %v35_v61 = vld [vmem:[%s5804_s0 + $0x30] sm:$0xff]  ;;  %v37_v11 = vld [vmem:[%s5804_s0 + $0x40] sm:$0xff] }
   0xb   :  { %v188_v28 = vand.u32 4294901760, %v187_v22  ;;  %810 = vmatpush.msra.mxu3 %v3505_v6  ;;  %v476_v31 = vsub.f32 %v474_v18, %v475_v25  ;;  %v196_v36 = vand.u32 4294901760, %v195_v26  ;;  %v203_v42 = vsub.f32 %v77_v20, %v3540_v32  ;;  %v38_v20 = vld [vmem:[%s5804_s0 + $0x48] sm:$0xff] }
   0xc   :  { %185 = vmatpush.msra.mxu0 %v3516_v10  ;;  %v459_v33 = vand.u32 4294901760, %v458_v27  ;;  %628 = vmatpush.msra.mxu2 %v468_v16  ;;  %v465_v35 = vand.u32 4294901760, %v464_v29  ;;  %v471_v38 = vand.u32 4294901760, %v470_v30  ;;  %v3549_v46 = vand.u32 4294901760, %v80_v43  ;;  %v39_v27 = vld [vmem:[%s5804_s0 + $0x50] sm:$0xff] }
   0xd   :  { %v189_v34 = vsub.f32 %v187_v22, %v188_v28  ;;  %812 = vmatpush.msra.mxu3 %v3516_v10  ;;  %v477_v40 = vand.u32 4294901760, %v476_v31  ;;  %v197_v41 = vsub.f32 %v195_v26, %v196_v36  ;;  %v204_v45 = vand.u32 4294901760, %v203_v42 }
   0xe   :  { %1021 = vmatpush.msrb.mxu0 %v457_v21  ;;  %460 = vmatpush.msra.mxu1 %v459_v33  ;;  %v211_v49 = vsub.f32 %v80_v43, %v3549_v46  ;;  %v83_v50 = vsel %vm69_vm0, %v33_v47, 0  ;;  %v86_v57 = vsel %vm69_vm0, %v34_v54, 0  ;;  %v89_v0 = vsel %vm69_vm0, %v35_v61, 0 }
   0xf   :  { %v190_v37 = vand.u32 4294901760, %v189_v34  ;;  %631 = vmatpush.msra.mxu2 %v474_v18  ;;  %816 = vmatmul.f32.vlgmr.msra.gmra.mxu3 %v188_v28  ;;  %v198_v44 = vand.u32 4294901760, %v197_v41  ;;  %v205_v48 = vsub.f32 %v203_v42, %v204_v45  ;;  %v3560_v53 = vand.u32 4294901760, %v83_v50 }
  0x10   :  { %634 = vmatmul.f32.vlgmr.msra.gmra.mxu2 %v187_v22  ;;  %466 = vmatpush.msra.mxu1 %v465_v35  ;;  %v212_v52 = vand.u32 4294901760, %v211_v49  ;;  %v3569_v60 = vand.u32 4294901760, %v86_v57  ;;  %v3577_v3 = vand.u32 4294901760, %v89_v0  ;;  %v95_v14 = vsel %vm69_vm0, %v37_v11, 0  ;;  %v40_v35 = vld [vmem:[%s5804_s0 + $0x58] sm:$0xff]  ;;  %v45_v11 = vld [vmem:[%s5804_s0 + $0x80] sm:$0xff] }
  0x11   :  { %191 = vmatmul.f32.vlgmr.msra.gmra.mxu0 %v190_v37  ;;  %v206_v51 = vand.u32 4294901760, %v205_v48  ;;  %v219_v56 = vsub.f32 %v83_v50, %v3560_v53  ;;  %v3593_v18 = vand.u32 4294901760, %v95_v14  ;;  %v101_v30 = vsel %vm69_vm0, %v39_v27, 0  ;;  %v42_v50 = vld [vmem:[%s5804_s0 + $0x68] sm:$0xff] }
  0x12   :  { %1025 = vmatpush.msrb.mxu0 %v463_v23  ;;  %472 = vmatpush.msra.mxu1 %v471_v38  ;;  %v213_v55 = vsub.f32 %v211_v49, %v212_v52  ;;  %v227_v63 = vsub.f32 %v86_v57, %v3569_v60  ;;  %v98_v23 = vsel %vm69_vm0, %v38_v20, 0  ;;  %v3609_v34 = vand.u32 4294901760, %v101_v30 }
  0x13   :  { %v220_v59 = vand.u32 4294901760, %v219_v56  ;;  %v251_v22 = vsub.f32 %v95_v14, %v3593_v18  ;;  %v104_v38 = vsel %vm69_vm0, %v40_v35, 0  ;;  %v110_v54 = vsel %vm69_vm0, %v42_v50, 0  ;;  %v3676_v35 = vld [vmem:[%s5806_s2] ss:$0 sm:$0xff] }
  0x14   :  { %1029 = vmatpush.msrb.mxu0 %v469_v24  ;;  %478 = vmatpush.msra.mxu1 %v477_v40  ;;  %v214_v58 = vand.u32 4294901760, %v213_v55  ;;  %v228_v2 = vand.u32 4294901760, %v227_v63  ;;  %v267_v37 = vsub.f32 %v101_v30, %v3609_v34  ;;  %v3617_v41 = vand.u32 4294901760, %v104_v38 }
  0x15   :  { %480 = vmatmul.f32.vlgmr.msra.gmra.mxu1 %v3528_v17  ;;  %v221_v62 = vsub.f32 %v219_v56, %v220_v59  ;;  %v3633_v57 = vand.u32 4294901760, %v110_v54  ;;  %v119_v14 = vsel %vm69_vm0, %v45_v11, 0 }
  0x16   :  { %1033 = vmatpush.msrb.mxu0 %v475_v25  ;;  %1176 = vmatpush.msrb.mxu1 %v3501_v4  ;;  %v36_v4 = vld [vmem:[%s5804_s0 + $0x38] sm:$0xff]  ;;  %v252_v25 = vand.u32 4294901760, %v251_v22  ;;  %v268_v40 = vand.u32 4294901760, %v267_v37  ;;  %v3657_v20 = vand.u32 4294901760, %v119_v14 }
  0x17   :  { %822 = vmatmul.f32.gmra.mxu3 %v196_v36  ;;  %v222_v1 = vand.u32 4294901760, %v221_v62  ;;  %v92_v7 = vsel %vm69_vm0, %v36_v4, 0  ;;  %v291_v61 = vsub.f32 %v110_v54, %v3633_v57 }
  0x18   :  { %639 = vmatmul.f32.gmra.mxu2 %v195_v26  ;;  %1178 = vmatpush.msrb.mxu1 %v3503_v5  ;;  %v229_v5 = vsub.f32 %v227_v63, %v228_v2  ;;  %v3601_v26 = vand.u32 4294901760, %v98_v23  ;;  %v253_v28 = vsub.f32 %v251_v22, %v252_v25  ;;  %v269_v43 = vsub.f32 %v267_v37, %v268_v40 }
  0x19   :  { %199 = vmatmul.f32.gmra.mxu0 %v198_v44  ;;  %v275_v44 = vsub.f32 %v104_v38, %v3617_v41 }
  0x1a   :  { %1180 = vmatpush.msrb.mxu1 %v3505_v6  ;;  %v235_v6 = vsub.f32 %v89_v0, %v3577_v3  ;;  %v230_v8 = vand.u32 4294901760, %v229_v5  ;;  %v259_v29 = vsub.f32 %v98_v23, %v3601_v26  ;;  %v254_v31 = vand.u32 4294901760, %v253_v28 }
  0x1b   :  { %v270_v47 = vand.u32 4294901760, %v269_v43  ;;  %v276_v48 = vand.u32 4294901760, %v275_v44  ;;  %v292_v0 = vand.u32 4294901760, %v291_v61  ;;  %v315_v23 = vsub.f32 %v119_v14, %v3657_v20 }
  0x1c   :  { %1182 = vmatpush.msrb.mxu1 %v3516_v10  ;;  %v236_v9 = vand.u32 4294901760, %v235_v6  ;;  %v3585_v10 = vand.u32 4294901760, %v92_v7  ;;  %v260_v33 = vand.u32 4294901760, %v259_v29 }
  0x1d   :  { %484 = vmatmul.f32.gmra.mxu1 %v3531_v19  ;;  %v293_v4 = vsub.f32 %v291_v61, %v292_v0  ;;  %v316_v27 = vand.u32 4294901760, %v315_v23 }
  0x1e   :  { %v237_v12 = vsub.f32 %v235_v6, %v236_v9  ;;  %v243_v13 = vsub.f32 %v92_v7, %v3585_v10  ;;  %v261_v36 = vsub.f32 %v259_v29, %v260_v33 }
  0x1f   :  { %828 = vmatmul.f32.gmra.mxu3 %v204_v45  ;;  %v294_v7 = vand.u32 4294901760, %v293_v4  ;;  %v317_v30 = vsub.f32 %v315_v23, %v316_v27 }
  0x20   :  { %644 = vmatmul.f32.gmra.mxu2 %v203_v42  ;;  %v238_v15 = vand.u32 4294901760, %v237_v12  ;;  %v244_v16 = vand.u32 4294901760, %v243_v13  ;;  %v262_v39 = vand.u32 4294901760, %v261_v36  ;;  %v41_v42 = vld [vmem:[%s5804_s0 + $0x60] sm:$0xff] }
  0x21   :  { %207 = vmatmul.f32.gmra.mxu0 %v206_v51  ;;  %v107_v45 = vsel %vm69_vm0, %v41_v42, 0  ;;  %v277_v51 = vsub.f32 %v275_v44, %v276_v48  ;;  %v318_v36 = vand.u32 4294901760, %v317_v30 }
  0x22   :  { %v245_v21 = vsub.f32 %v243_v13, %v244_v16 }
  0x23   :  { %v278_v55 = vand.u32 4294901760, %v277_v51 }
  0x24   :  { %v246_v24 = vand.u32 4294901760, %v245_v21  ;;  %v46_v21 = vld [vmem:[%s5804_s0 + $0x88] sm:$0xff] }
  0x25   :  { %488 = vmatmul.f32.gmra.mxu1 %v3540_v32 }
  0x27   :  { %834 = vmatmul.f32.gmra.mxu3 %v212_v52 }
  0x28   :  { %649 = vmatmul.f32.gmra.mxu2 %v211_v49  ;;  %v3625_v49 = vand.u32 4294901760, %v107_v45 }
  0x29   :  { %215 = vmatmul.f32.gmra.mxu0 %v214_v58  ;;  %v43_v58 = vld [vmem:[%s5804_s0 + $0x70] sm:$0xff] }
  0x2a   :  { %v283_v52 = vsub.f32 %v107_v45, %v3625_v49  ;;  %v113_v62 = vsel %vm69_vm0, %v43_v58, 0 }
  0x2d   :  { %492 = vmatmul.f32.gmra.mxu1 %v3549_v46 }
  0x2f   :  { %840 = vmatmul.f32.gmra.mxu3 %v220_v59 }
  0x30   :  { %654 = vmatmul.f32.gmra.mxu2 %v219_v56  ;;  %v284_v56 = vand.u32 4294901760, %v283_v52 }
  0x31   :  { %223 = vmatmul.f32.gmra.mxu0 %v222_v1  ;;  %v3641_v1 = vand.u32 4294901760, %v113_v62 }
  0x32   :  { %v285_v59 = vsub.f32 %v283_v52, %v284_v56 }
  0x33   :  { %v299_v5 = vsub.f32 %v113_v62, %v3641_v1 }
  0x35   :  { %496 = vmatmul.f32.gmra.mxu1 %v3560_v53 }
  0x37   :  { %846 = vmatmul.f32.gmra.mxu3 %v228_v2  ;;  %v44_v2 = vld [vmem:[%s5804_s0 + $0x78] sm:$0xff] }
  0x38   :  { %659 = vmatmul.f32.gmra.mxu2 %v227_v63  ;;  %v286_v63 = vand.u32 4294901760, %v285_v59  ;;  %v49_v59 = vld [vmem:[%s5804_s0 + $0xa0] sm:$0xff] }
  0x39   :  { %231 = vmatmul.f32.gmra.mxu0 %v230_v8  ;;  %v300_v8 = vand.u32 4294901760, %v299_v5 }
  0x3b   :  { %v301_v12 = vsub.f32 %v299_v5, %v300_v8 }
  0x3d   :  { %500 = vmatmul.f32.gmra.mxu1 %v3569_v60 }
  0x3f   :  { %852 = vmatmul.f32.gmra.mxu3 %v236_v9 }
  0x40   :  { %664 = vmatmul.f32.gmra.mxu2 %v235_v6  ;;  %v116_v6 = vsel %vm69_vm0, %v44_v2, 0  ;;  %v131_v2 = vsel %vm69_vm0, %v49_v59, 0 }
  0x41   :  { %239 = vmatmul.f32.gmra.mxu0 %v238_v15  ;;  %v3649_v9 = vand.u32 4294901760, %v116_v6  ;;  %v302_v15 = vand.u32 4294901760, %v301_v12  ;;  %v3698_v12 = vand.u32 4294901760, %v131_v2 }
  0x45   :  { %504 = vmatmul.f32.gmra.mxu1 %v3577_v3 }
  0x47   :  { %858 = vmatmul.f32.gmra.mxu3 %v244_v16 }
  0x48   :  { %669 = vmatmul.f32.gmra.mxu2 %v243_v13  ;;  %v307_v13 = vsub.f32 %v116_v6, %v3649_v9 }
  0x49   :  { %247 = vmatmul.f32.gmra.mxu0 %v246_v24  ;;  %v122_v24 = vsel %vm69_vm0, %v46_v21, 0 }
  0x4a   :  { %v308_v16 = vand.u32 4294901760, %v307_v13  ;;  %v3665_v28 = vand.u32 4294901760, %v122_v24 }
  0x4d   :  { %508 = vmatmul.f32.gmra.mxu1 %v3585_v10 }
  0x4f   :  { %864 = vmatmul.f32.gmra.mxu3 %v252_v25 }
  0x50   :  { %674 = vmatmul.f32.gmra.mxu2 %v251_v22  ;;  %v309_v22 = vsub.f32 %v307_v13, %v308_v16 }
  0x51   :  { %255 = vmatmul.f32.gmra.mxu0 %v254_v31  ;;  %v323_v31 = vsub.f32 %v122_v24, %v3665_v28 }
  0x52   :  { %v310_v25 = vand.u32 4294901760, %v309_v22 }
  0x55   :  { %512 = vmatmul.f32.gmra.mxu1 %v3593_v18 }
  0x57   :  { %870 = vmatmul.f32.gmra.mxu3 %v260_v33 }
  0x58   :  { %679 = vmatmul.f32.gmra.mxu2 %v259_v29  ;;  %v47_v29 = vld [vmem:[%s5804_s0 + $0x90] sm:$0xff] }
  0x59   :  { %263 = vmatmul.f32.gmra.mxu0 %v262_v39  ;;  %v125_v33 = vsel %vm69_vm0, %v47_v29, 0 }
  0x5a   :  { %v3678_v38 = vand.u32 4294901760, %v125_v33 }
  0x5d   :  { %516 = vmatmul.f32.gmra.mxu1 %v3601_v26 }
  0x5f   :  { %876 = vmatmul.f32.gmra.mxu3 %v268_v40  ;;  %v48_v40 = vld [vmem:[%s5804_s0 + $0x98] sm:$0xff] }
  0x60   :  { %684 = vmatmul.f32.gmra.mxu2 %v267_v37  ;;  %v324_v37 = vand.u32 4294901760, %v323_v31  ;;  %v128_v45 = vsel %vm69_vm0, %v48_v40, 0  ;;  %v51_v40 = vld [vmem:[%s5804_s0 + $0xb0] sm:$0xff] }
  0x61   :  { %271 = vmatmul.f32.gmra.mxu0 %v270_v47 }
  0x62   :  { %v325_v43 = vsub.f32 %v323_v31, %v324_v37 }
  0x65   :  { %520 = vmatmul.f32.gmra.mxu1 %v3609_v34 }
  0x67   :  { %882 = vmatmul.f32.gmra.mxu3 %v276_v48 }
  0x68   :  { %689 = vmatmul.f32.gmra.mxu2 %v275_v44  ;;  %v331_v44 = vsub.f32 %v125_v33, %v3678_v38 }
  0x69   :  { %279 = vmatmul.f32.gmra.mxu0 %v278_v55  ;;  %v3687_v55 = vand.u32 4294901760, %v128_v45 }
  0x6a   :  { %v332_v54 = vand.u32 4294901760, %v331_v44 }
  0x6d   :  { %524 = vmatmul.f32.gmra.mxu1 %v3617_v41 }
  0x6f   :  { %888 = vmatmul.f32.gmra.mxu3 %v284_v56 }
  0x70   :  { %694 = vmatmul.f32.gmra.mxu2 %v283_v52  ;;  %v326_v52 = vand.u32 4294901760, %v325_v43 }
  0x71   :  { %287 = vmatmul.f32.gmra.mxu0 %v286_v63  ;;  %v333_v63 = vsub.f32 %v331_v44, %v332_v54 }
  0x75   :  { %528 = vmatmul.f32.gmra.mxu1 %v3625_v49 }
  0x77   :  { %894 = vmatmul.f32.gmra.mxu3 %v292_v0  ;;  %v339_v0 = vsub.f32 %v128_v45, %v3687_v55 }
  0x78   :  { %699 = vmatmul.f32.gmra.mxu2 %v291_v61 }
  0x79   :  { %295 = vmatmul.f32.gmra.mxu0 %v294_v7  ;;  %v340_v11 = vand.u32 4294901760, %v339_v0 }
  0x7b   :  { %v341_v22 = vsub.f32 %v339_v0, %v340_v11 }
  0x7d   :  { %532 = vmatmul.f32.gmra.mxu1 %v3633_v57 }
  0x7f   :  { %900 = vmatmul.f32.gmra.mxu3 %v300_v8  ;;  %v334_v8 = vand.u32 4294901760, %v333_v63  ;;  %v52_v63 = vld [vmem:[%s5804_s0 + $0xb8] sm:$0xff] }
  0x80   :  { %704 = vmatmul.f32.gmra.mxu2 %v299_v5 }
  0x81   :  { %303 = vmatmul.f32.gmra.mxu0 %v302_v15  ;;  %v50_v15 = vld [vmem:[%s5804_s0 + $0xa8] sm:$0xff] }
  0x82   :  { %v134_v24 = vsel %vm69_vm0, %v50_v15, 0 }
  0x85   :  { %536 = vmatmul.f32.gmra.mxu1 %v3641_v1 }
  0x87   :  { %906 = vmatmul.f32.gmra.mxu3 %v308_v16 }
  0x88   :  { %709 = vmatmul.f32.gmra.mxu2 %v307_v13 }
  0x89   :  { %311 = vmatmul.f32.gmra.mxu0 %v310_v25 }
  0x8d   :  { %540 = vmatmul.f32.gmra.mxu1 %v3649_v9 }
  0x8e   :  { %v192_v39 = vpop.f32.mrf.mxu0 }
  0x8f   :  { %v193_v42 = vadd.f32 %v3676_v35, %v192_v39  ;;  %912 = vmatmul.f32.gmra.mxu3 %v316_v27 }
  0x90   :  { %714 = vmatmul.f32.gmra.mxu2 %v315_v23  ;;  %v347_v23 = vsub.f32 %v131_v2, %v3698_v12 }
  0x91   :  { %319 = vmatmul.f32.gmra.mxu0 %v318_v36  ;;  %v3709_v36 = vand.u32 4294901760, %v134_v24 }
  0x92   :  { %v481_v47 = vpop.f32.mrf.mxu1  ;;  %v817_v51 = vpop.f32.mrf.mxu3  ;;  %v348_v33 = vand.u32 4294901760, %v347_v23 }
  0x93   :  { %v635_v48 = vpop.f32.mrf.mxu2  ;;  %v482_v50 = vadd.f32 %v481_v47, %v193_v42  ;;  %v355_v45 = vsub.f32 %v134_v24, %v3709_v36  ;;  %v137_v47 = vsel %vm69_vm0, %v51_v40, 0 }
  0x95   :  { %v636_v58 = vadd.f32 %v635_v48, %v482_v50  ;;  %544 = vmatmul.f32.gmra.mxu1 %v3657_v20 }
  0x96   :  { %v200_v56 = vpop.f32.mrf.mxu0 }
  0x97   :  { %v201_v61 = vadd.f32 %v3676_v35, %v200_v56  ;;  %v3694_v62 = vadd.f32 %v817_v51, %v636_v58  ;;  %918 = vmatmul.f32.gmra.mxu3 %v324_v37  ;;  %v356_v56 = vand.u32 4294901760, %v355_v45  ;;  %v3720_v58 = vand.u32 4294901760, %v137_v47 }
  0x98   :  { %719 = vmatmul.f32.gmra.mxu2 %v323_v31  ;;  %v342_v31 = vand.u32 4294901760, %v341_v22 }
  0x99   :  { %327 = vmatmul.f32.gmra.mxu0 %v326_v52 }
  0x9a   :  { %v485_v4 = vpop.f32.mrf.mxu1  ;;  %v823_v7 = vpop.f32.mrf.mxu3 }
  0x9b   :  { %v640_v5 = vpop.f32.mrf.mxu2  ;;  %v486_v6 = vadd.f32 %v485_v4, %v201_v61  ;;  %v357_v4 = vsub.f32 %v355_v45, %v356_v56 }
  0x9d   :  { %v641_v14 = vadd.f32 %v640_v5, %v486_v6  ;;  %548 = vmatmul.f32.gmra.mxu1 %v3665_v28  ;;  %v363_v5 = vsub.f32 %v137_v47, %v3720_v58  ;;  %v140_v6 = vsel %vm69_vm0, %v52_v63, 0 }
  0x9e   :  { %v208_v13 = vpop.f32.mrf.mxu0 }
  0x9f   :  { %v209_v16 = vadd.f32 %v3676_v35, %v208_v13  ;;  %v3705_v21 = vadd.f32 %v823_v7, %v641_v14  ;;  %924 = vmatmul.f32.gmra.mxu3 %v332_v54  ;;  %v358_v14 = vand.u32 4294901760, %v357_v4  ;;  %v364_v15 = vand.u32 4294901760, %v363_v5 }
  0xa0   :  { %724 = vmatmul.f32.gmra.mxu2 %v331_v44  ;;  %v349_v44 = vsub.f32 %v347_v23, %v348_v33 }
  0xa1   :  { %335 = vmatmul.f32.gmra.mxu0 %v334_v8 }
  0xa2   :  { %v489_v25 = vpop.f32.mrf.mxu1  ;;  %v829_v30 = vpop.f32.mrf.mxu3  ;;  %v350_v54 = vand.u32 4294901760, %v349_v44 }
  0xa3   :  { %v645_v27 = vpop.f32.mrf.mxu2  ;;  %v490_v29 = vadd.f32 %v489_v25, %v209_v16  ;;  %v3731_v16 = vand.u32 4294901760, %v140_v6 }
  0xa5   :  { %v646_v39 = vadd.f32 %v645_v27, %v490_v29  ;;  %552 = vmatmul.f32.gmra.mxu1 %v3678_v38  ;;  %v365_v29 = vsub.f32 %v363_v5, %v364_v15 }
  0xa6   :  { %v216_v37 = vpop.f32.mrf.mxu0 }
  0xa7   :  { %v217_v42 = vadd.f32 %v3676_v35, %v216_v37  ;;  %v3716_v43 = vadd.f32 %v829_v30, %v646_v39  ;;  %930 = vmatmul.f32.gmra.mxu3 %v340_v11  ;;  %v371_v30 = vsub.f32 %v140_v6, %v3731_v16 }
  0xa8   :  { %729 = vmatmul.f32.gmra.mxu2 %v339_v0 }
  0xa9   :  { %343 = vmatmul.f32.gmra.mxu0 %v342_v31  ;;  %v372_v44 = vand.u32 4294901760, %v371_v30 }
  0xaa   :  { %v493_v48 = vpop.f32.mrf.mxu1  ;;  %v835_v52 = vpop.f32.mrf.mxu3 }
  0xab   :  { %v650_v50 = vpop.f32.mrf.mxu2  ;;  %v494_v51 = vadd.f32 %v493_v48, %v217_v42  ;;  %v366_v42 = vand.u32 4294901760, %v365_v29 }
  0xad   :  { %v651_v61 = vadd.f32 %v650_v50, %v494_v51  ;;  %556 = vmatmul.f32.gmra.mxu1 %v3687_v55 }
  0xae   :  { %v224_v59 = vpop.f32.mrf.mxu0 }
  0xaf   :  { %v225_v0 = vadd.f32 %v3676_v35, %v224_v59  ;;  %v3727_v2 = vadd.f32 %v835_v52, %v651_v61  ;;  %936 = vmatmul.f32.gmra.mxu3 %v348_v33 }
  0xb0   :  { %734 = vmatmul.f32.gmra.mxu2 %v347_v23  ;;  %v53_v23 = vld [vmem:[%s5804_s0 + $0xc0] sm:$0xff] }
  0xb1   :  { %351 = vmatmul.f32.gmra.mxu0 %v350_v54  ;;  %v143_v31 = vsel %vm69_vm0, %v53_v23, 0  ;;  %v373_v54 = vsub.f32 %v371_v30, %v372_v44 }
  0xb2   :  { %v497_v7 = vpop.f32.mrf.mxu1  ;;  %v841_v13 = vpop.f32.mrf.mxu3  ;;  %v3742_v47 = vand.u32 4294901760, %v143_v31 }
  0xb3   :  { %v655_v8 = vpop.f32.mrf.mxu2  ;;  %v498_v11 = vadd.f32 %v497_v7, %v225_v0  ;;  %v374_v6 = vand.u32 4294901760, %v373_v54 }
  0xb4   :  { %5922 = vst [vmem:[#allocation6_spill] sm:$0xff] %v3742_v47 }
  0xb5   :  { %v656_v24 = vadd.f32 %v655_v8, %v498_v11  ;;  %560 = vmatmul.f32.gmra.mxu1 %v3698_v12 }
  0xb6   :  { %v232_v22 = vpop.f32.mrf.mxu0 }
  0xb7   :  { %v233_v25 = vadd.f32 %v3676_v35, %v232_v22  ;;  %v3738_v27 = vadd.f32 %v841_v13, %v656_v24  ;;  %942 = vmatmul.f32.gmra.mxu3 %v356_v56  ;;  %v379_v56 = vsub.f32 %v143_v31, %v3742_v47 }
  0xb8   :  { %739 = vmatmul.f32.gmra.mxu2 %v355_v45  ;;  %v54_v45 = vld [vmem:[%s5804_s0 + $0xc8] sm:$0xff] }
  0xb9   :  { %359 = vmatmul.f32.gmra.mxu0 %v358_v14  ;;  %v146_v59 = vsel %vm69_vm0, %v54_v45, 0  ;;  %v380_v7 = vand.u32 4294901760, %v379_v56 }
  0xba   :  { %v501_v33 = vpop.f32.mrf.mxu1  ;;  %v847_v40 = vpop.f32.mrf.mxu3  ;;  %v3753_v8 = vand.u32 4294901760, %v146_v59 }
  0xbb   :  { %v660_v37 = vpop.f32.mrf.mxu2  ;;  %v502_v39 = vadd.f32 %v501_v33, %v233_v25  ;;  %v381_v22 = vsub.f32 %v379_v56, %v380_v7 }
  0xbc   :  { %5923 = vst [vmem:[#allocation7_spill] sm:$0xff] %v3753_v8  ;;  %v387_v24 = vsub.f32 %v146_v59, %v3753_v8 }
  0xbd   :  { %v661_v50 = vadd.f32 %v660_v37, %v502_v39  ;;  %564 = vmatmul.f32.gmra.mxu1 %v3709_v36  ;;  %v382_v37 = vand.u32 4294901760, %v381_v22  ;;  %v58_v22 = vld [vmem:[%s5804_s0 + $0xe8] sm:$0xff] }
  0xbe   :  { %v240_v48 = vpop.f32.mrf.mxu0  ;;  %v388_v39 = vand.u32 4294901760, %v387_v24 }
  0xbf   :  { %v241_v51 = vadd.f32 %v3676_v35, %v240_v48  ;;  %v3749_v52 = vadd.f32 %v847_v40, %v661_v50  ;;  %948 = vmatmul.f32.gmra.mxu3 %v364_v15 }
  0xc0   :  { %744 = vmatmul.f32.gmra.mxu2 %v363_v5  ;;  %v55_v5 = vld [vmem:[%s5804_s0 + $0xd0] sm:$0xff]  ;;  %v389_v48 = vsub.f32 %v387_v24, %v388_v39 }
  0xc1   :  { %367 = vmatmul.f32.gmra.mxu0 %v366_v42  ;;  %v149_v23 = vsel %vm69_vm0, %v55_v5, 0 }
  0xc2   :  { %v505_v61 = vpop.f32.mrf.mxu1  ;;  %v853_v4 = vpop.f32.mrf.mxu3  ;;  %v3764_v40 = vand.u32 4294901760, %v149_v23  ;;  %v390_v54 = vand.u32 4294901760, %v389_v48 }
  0xc3   :  { %v665_v63 = vpop.f32.mrf.mxu2  ;;  %v506_v0 = vadd.f32 %v505_v61, %v241_v51 }
  0xc4   :  { %5924 = vst [vmem:[#allocation8_spill] sm:$0xff] %v3764_v40  ;;  %v395_v50 = vsub.f32 %v149_v23, %v3764_v40 }
  0xc5   :  { %v666_v13 = vadd.f32 %v665_v63, %v506_v0  ;;  %568 = vmatmul.f32.gmra.mxu1 %v3720_v58 }
  0xc6   :  { %v248_v11 = vpop.f32.mrf.mxu0  ;;  %v396_v59 = vand.u32 4294901760, %v395_v50 }
  0xc7   :  { %v249_v14 = vadd.f32 %v3676_v35, %v248_v11  ;;  %v3760_v15 = vadd.f32 %v853_v4, %v666_v13  ;;  %954 = vmatmul.f32.gmra.mxu3 %v372_v44 }
  0xc8   :  { %749 = vmatmul.f32.gmra.mxu2 %v371_v30  ;;  %v56_v30 = vld [vmem:[%s5804_s0 + $0xd8] sm:$0xff]  ;;  %v397_v0 = vsub.f32 %v395_v50, %v396_v59 }
  0xc9   :  { %375 = vmatmul.f32.gmra.mxu0 %v374_v6  ;;  %v152_v45 = vsel %vm69_vm0, %v56_v30, 0 }
  0xca   :  { %v509_v25 = vpop.f32.mrf.mxu1  ;;  %v859_v33 = vpop.f32.mrf.mxu3  ;;  %v3778_v61 = vand.u32 4294901760, %v152_v45  ;;  %v398_v11 = vand.u32 4294901760, %v397_v0 }
  0xcb   :  { %v670_v29 = vpop.f32.mrf.mxu2  ;;  %v510_v31 = vadd.f32 %v509_v25, %v249_v14  ;;  %v158_v25 = vsel %vm69_vm0, %v58_v22, 0 }
  0xcc   :  { %5925 = vst [vmem:[#allocation9_spill] sm:$0xff] %v3778_v61  ;;  %v403_v4 = vsub.f32 %v152_v45, %v3778_v61 }
  0xcd   :  { %v671_v35 = vadd.f32 %v670_v29, %v510_v31  ;;  %572 = vmatmul.f32.gmra.mxu1 %v3731_v16 }
  0xce   :  { %v3766_v42 = vpop.f32.mrf.mxu0  ;;  %v404_v13 = vand.u32 4294901760, %v403_v4 }
  0xcf   :  { %v3772_v44 = vadd.f32 %v859_v33, %v671_v35  ;;  %960 = vmatmul.f32.gmra.mxu3 %v380_v7  ;;  %v59_v35 = vld [vmem:[%s5804_s0 + $0xf0] sm:$0xff] }
  0xd0   :  { %754 = vmatmul.f32.gmra.mxu2 %v379_v56  ;;  %v57_v56 = vld [vmem:[%s5804_s0 + $0xe0] sm:$0xff] }
  0xd1   :  { %383 = vmatmul.f32.gmra.mxu0 %v382_v37  ;;  %v155_v6 = vsel %vm69_vm0, %v57_v56, 0  ;;  %v3802_v37 = vand.u32 4294901760, %v158_v25 }
  0xd2   :  { %v3776_v51 = vpop.f32.mrf.mxu1  ;;  %v3790_v5 = vand.u32 4294901760, %v155_v6 }
  0xd3   :  { %5931 = vst [vmem:[#allocation15_spill] sm:$0xff] %v3802_v37  ;;  %v419_v48 = vsub.f32 %v158_v25, %v3802_v37 }
  0xd4   :  { %5928 = vst [vmem:[#allocation12_spill] sm:$0xff] %v3790_v5  ;;  %v411_v23 = vsub.f32 %v155_v6, %v3790_v5 }
  0xd5   :  { %576 = vmatmul.f32.gmra.mxu1 %v3742_v47 }
  0xd6   :  { %v3780_v63 = vpop.f32.mrf.mxu0  ;;  %v412_v33 = vand.u32 4294901760, %v411_v23 }
  0xd7   :  { %5926 = vst [vmem:[#allocation10_spill] sm:$0xff] %v3780_v63  ;;  %966 = vmatmul.f32.gmra.mxu3 %v388_v39 }
  0xd8   :  { %759 = vmatmul.f32.gmra.mxu2 %v387_v24  ;;  %v405_v24 = vsub.f32 %v403_v4, %v404_v13  ;;  %v413_v30 = vsub.f32 %v411_v23, %v412_v33 }
  0xd9   :  { %391 = vmatmul.f32.gmra.mxu0 %v390_v54 }
  0xda   :  { %v3788_v7 = vpop.f32.mrf.mxu1  ;;  %v406_v31 = vand.u32 4294901760, %v405_v24  ;;  %v414_v54 = vand.u32 4294901760, %v413_v30  ;;  %v1359_v30 = vld [vmem:[%s5807_s3 + $0x78] sm:$0xff] }
  0xdb   :  { %5927 = vst [vmem:[#allocation11_spill] sm:$0xff] %v3788_v7 }
  0xdd   :  { %580 = vmatmul.f32.gmra.mxu1 %v3753_v8  ;;  %v1347_v8 = vld [vmem:[%s5807_s3 + $0x18] sm:$0xff] }
  0xde   :  { %v3792_v14 = vpop.f32.mrf.mxu0 }
  0xdf   :  { %5929 = vst [vmem:[#allocation13_spill] sm:$0xff] %v3792_v14  ;;  %972 = vmatmul.f32.gmra.mxu3 %v396_v59  ;;  %v420_v59 = vand.u32 4294901760, %v419_v48  ;;  %v1345_v14 = vld [vmem:[%s5807_s3 + $0x8] sm:$0xff] }
  0xe0   :  { %764 = vmatmul.f32.gmra.mxu2 %v395_v50  ;;  %v161_v50 = vsel %vm69_vm0, %v59_v35, 0 }
  0xe1   :  { %399 = vmatmul.f32.gmra.mxu0 %v398_v11  ;;  %v3814_v56 = vand.u32 4294901760, %v161_v50  ;;  %v421_v6 = vsub.f32 %v419_v48, %v420_v59 }
  0xe2   :  { %v3800_v29 = vpop.f32.mrf.mxu1 }
  0xe3   :  { %5930 = vst [vmem:[#allocation14_spill] sm:$0xff] %v3800_v29  ;;  %v427_v11 = vsub.f32 %v161_v50, %v3814_v56  ;;  %v422_v24 = vand.u32 4294901760, %v421_v6  ;;  %v3835_v50 = vand.u32 4294901760, %v1359_v30 }
  0xe4   :  { %5934 = vst [vmem:[#allocation18_spill] sm:$0xff] %v3814_v56 }
  0xe5   :  { %584 = vmatmul.f32.gmra.mxu1 %v3764_v40  ;;  %v428_v25 = vand.u32 4294901760, %v427_v11  ;;  %1365 = vmatpush.msrb.mxu2 %v3835_v50 }
  0xe6   :  { %v3804_v39 = vpop.f32.mrf.mxu0  ;;  %2088 = vmatpush.msra.mxu1 %v3835_v50 }
  0xe7   :  { %5932 = vst [vmem:[#allocation16_spill] sm:$0xff] %v3804_v39  ;;  %978 = vmatmul.f32.gmra.mxu3 %v404_v13 }
  0xe8   :  { %769 = vmatmul.f32.gmra.mxu2 %v403_v4  ;;  %v60_v4 = vld [vmem:[%s5804_s0 + $0xf8] sm:$0xff] }
  0xe9   :  { %407 = vmatmul.f32.gmra.mxu0 %v406_v31  ;;  %v164_v13 = vsel %vm69_vm0, %v60_v4, 0  ;;  %v3841_v4 = vsub.f32 %v1359_v30, %v3835_v50 }
  0xea   :  { %v3812_v45 = vpop.f32.mrf.mxu1  ;;  %v3826_v31 = vand.u32 4294901760, %v164_v13 }
  0xeb   :  { %5933 = vst [vmem:[#allocation17_spill] sm:$0xff] %v3812_v45  ;;  %1880 = vmatpush.msra.mxu0 %v3841_v4 }
  0xec   :  { %5937 = vst [vmem:[#allocation21_spill] sm:$0xff] %v3826_v31 }
  0xed   :  { %588 = vmatmul.f32.gmra.mxu1 %v3778_v61 }
  0xee   :  { %v3816_v0 = vpop.f32.mrf.mxu0 }
  0xef   :  { %5935 = vst [vmem:[#allocation19_spill] sm:$0xff] %v3816_v0  ;;  %984 = vmatmul.f32.gmra.mxu3 %v412_v33  ;;  %v435_v33 = vsub.f32 %v164_v13, %v3826_v31  ;;  %v5814_v13 = vand.u32 4294901760, %v3841_v4 }
  0xf0   :  { %774 = vmatmul.f32.gmra.mxu2 %v411_v23  ;;  %v429_v23 = vsub.f32 %v427_v11, %v428_v25 }
  0xf1   :  { %415 = vmatmul.f32.gmra.mxu0 %v414_v54 }
  0xf2   :  { %v3824_v22 = vpop.f32.mrf.mxu1 }
  0xf3   :  { %5936 = vst [vmem:[#allocation20_spill] sm:$0xff] %v3824_v22 }
  0xf5   :  { %592 = vmatmul.f32.gmra.mxu1 %v3790_v5 }
  0xf6   :  { %v3828_v35 = vpop.f32.mrf.mxu0 }
  0xf7   :  { %5938 = vst [vmem:[#allocation22_spill] sm:$0xff] %v3828_v35  ;;  %990 = vmatmul.f32.gmra.mxu3 %v420_v59  ;;  %v436_v59 = vand.u32 4294901760, %v435_v33 }
  0xf8   :  { %779 = vmatmul.f32.gmra.mxu2 %v419_v48  ;;  %v430_v48 = vand.u32 4294901760, %v429_v23 }
  0xf9   :  { %423 = vmatmul.f32.gmra.mxu0 %v422_v24  ;;  %v1656_v24 = vsub.f32 %v3841_v4, %v5814_v13  ;;  %v437_v30 = vsub.f32 %v435_v33, %v436_v59  ;;  %v1357_v13 = vld [vmem:[%s5807_s3 + $0x68] sm:$0xff] }
  0xfa   :  { %v3837_v54 = vpop.f32.mrf.mxu1 }
  0xfb   :  { %5939 = vst [vmem:[#allocation23_spill] sm:$0xff] %v3837_v54  ;;  %v1657_v5 = vand.u32 4294901760, %v1656_v24  ;;  %v438_v23 = vand.u32 4294901760, %v437_v30 }
  0xfd   :  { %596 = vmatmul.f32.gmra.mxu1 %v3802_v37  ;;  %1658 = vmatpush.msrb.mxu3 %v1657_v5 }
  0xfe   :  { %v3844_v6 = vpop.f32.mrf.mxu0 }
  0xff   :  { %5940 = vst [vmem:[#allocation24_spill] sm:$0xff] %v3844_v6  ;;  %996 = vmatmul.f32.gmra.mxu3 %v428_v25 }
 0x100   :  { %784 = vmatmul.f32.gmra.mxu2 %v427_v11  ;;  %v1358_v11 = vld [vmem:[%s5807_s3 + $0x70] sm:$0xff] }
 0x101   :  { %431 = vmatmul.f32.gmra.mxu0 %v430_v48  ;;  %v3860_v25 = vand.u32 4294901760, %v1358_v11 }
 0x102   :  { %v3852_v54 = vpop.f32.mrf.mxu1 }
 0x103   :  { %5941 = vst [vmem:[#allocation25_spill] sm:$0xff] %v3852_v54  ;;  %1367 = vmatpush.msrb.mxu2 %v3860_v25  ;;  %v3866_v5 = vsub.f32 %v1358_v11, %v3860_v25  ;;  %2090 = vmatpush.msra.mxu1 %v3860_v25 }
 0x105   :  { %600 = vmatmul.f32.gmra.mxu1 %v3814_v56  ;;  %1883 = vmatpush.msra.mxu0 %v3866_v5 }
 0x106   :  { %v3854_v6 = vpop.f32.mrf.mxu0 }
 0x107   :  { %5942 = vst [vmem:[#allocation26_spill] sm:$0xff] %v3854_v6  ;;  %1002 = vmatmul.f32.gmra.mxu3 %v436_v59 }
 0x108   :  { %789 = vmatmul.f32.gmra.mxu2 %v435_v33  ;;  %v5817_v33 = vand.u32 4294901760, %v3866_v5 }
 0x109   :  { %439 = vmatmul.f32.gmra.mxu0 %v438_v23 }
 0x10a   :  { %v3862_v48 = vpop.f32.mrf.mxu1  ;;  %v1662_v59 = vsub.f32 %v3866_v5, %v5817_v33 }
 0x10b   :  { %5943 = vst [vmem:[#allocation27_spill] sm:$0xff] %v3862_v48 }
 0x10c   :  { %v1663_v30 = vand.u32 4294901760, %v1662_v59 }
 0x10d   :  { %604 = vmatmul.f32.gmra.mxu1 %v3826_v31  ;;  %v3887_v31 = vand.u32 4294901760, %v1357_v13 }
 0x10e   :  { %v3869_v24 = vpop.f32.mrf.mxu0  ;;  %1664 = vmatpush.msrb.mxu3 %v1663_v30 }
 0x10f   :  { %5944 = vst [vmem:[#allocation28_spill] sm:$0xff] %v3869_v24  ;;  %1369 = vmatpush.msrb.mxu2 %v3887_v31  ;;  %v3893_v59 = vsub.f32 %v1357_v13, %v3887_v31  ;;  %2092 = vmatpush.msra.mxu1 %v3887_v31 }
 0x111   :  { %1035 = vmatmul.f32.vlgmr.msrb.gmra.mxu0 %v3528_v17 }
 0x112   :  { %v3878_v23 = vpop.f32.mrf.mxu1  ;;  %1886 = vmatpush.msra.mxu0 %v3893_v59 }
 0x113   :  { %5945 = vst [vmem:[#allocation29_spill] sm:$0xff] %v3878_v23 }
 0x115   :  { %1184 = vmatmul.f32.vlgmr.msrb.gmra.mxu1 %v3528_v17  ;;  %v5818_v17 = vand.u32 4294901760, %v3893_v59 }
 0x116   :  { %v3880_v11 = vpop.f32.mrf.mxu0 }
 0x117   :  { %5946 = vst [vmem:[#allocation30_spill] sm:$0xff] %v3880_v11  ;;  %v1668_v33 = vsub.f32 %v3893_v59, %v5818_v17  ;;  %v3928_v17 = vpop.f32.mrf.mxu3 }
 0x118   :  { %5953 = vst [vmem:[#allocation37_spill] sm:$0xff] %v3928_v17  ;;  %v1344_v17 = vld [vmem:[%s5807_s3] sm:$0xff] }
 0x119   :  { %1039 = vmatmul.f32.gmra.mxu0 %v3531_v19 }
 0x11a   :  { %v3889_v24 = vpop.f32.mrf.mxu1 }
 0x11b   :  { %5947 = vst [vmem:[#allocation31_spill] sm:$0xff] %v3889_v24  ;;  %v1669_v24 = vand.u32 4294901760, %v1668_v33 }
 0x11d   :  { %1188 = vmatmul.f32.gmra.mxu1 %v3531_v19  ;;  %1670 = vmatpush.msrb.mxu3 %v1669_v24  ;;  %v1356_v19 = vld [vmem:[%s5807_s3 + $0x60] sm:$0xff] }
 0x11e   :  { %v3896_v30 = vpop.f32.mrf.mxu0 }
 0x11f   :  { %5948 = vst [vmem:[#allocation32_spill] sm:$0xff] %v3896_v30  ;;  %v3914_v30 = vand.u32 4294901760, %v1356_v19 }
 0x121   :  { %1043 = vmatmul.f32.gmra.mxu0 %v3540_v32  ;;  %1371 = vmatpush.msrb.mxu2 %v3914_v30  ;;  %v3920_v33 = vsub.f32 %v1356_v19, %v3914_v30 }
 0x122   :  { %v3905_v11 = vpop.f32.mrf.mxu1  ;;  %2094 = vmatpush.msra.mxu1 %v3914_v30 }
 0x123   :  { %5949 = vst [vmem:[#allocation33_spill] sm:$0xff] %v3905_v11  ;;  %1889 = vmatpush.msra.mxu0 %v3920_v33 }
 0x125   :  { %1192 = vmatmul.f32.gmra.mxu1 %v3540_v32  ;;  %v5819_v32 = vand.u32 4294901760, %v3920_v33 }
 0x126   :  { %v3907_v13 = vpop.f32.mrf.mxu0 }
 0x127   :  { %5950 = vst [vmem:[#allocation34_spill] sm:$0xff] %v3907_v13 }
 0x129   :  { %1047 = vmatmul.f32.gmra.mxu0 %v3549_v46 }
 0x12a   :  { %v3916_v23 = vpop.f32.mrf.mxu1 }
 0x12b   :  { %5951 = vst [vmem:[#allocation35_spill] sm:$0xff] %v3916_v23  ;;  %v1674_v23 = vsub.f32 %v3920_v33, %v5819_v32  ;;  %v1355_v32 = vld [vmem:[%s5807_s3 + $0x58] sm:$0xff] }
 0x12c   :  { %v3947_v56 = vand.u32 4294901760, %v1355_v32 }
 0x12d   :  { %1196 = vmatmul.f32.gmra.mxu1 %v3549_v46  ;;  %v1675_v19 = vand.u32 4294901760, %v1674_v23  ;;  %v3939_v46 = vpop.f32.mrf.mxu2 }
 0x12e   :  { %v3923_v24 = vpop.f32.mrf.mxu0  ;;  %5956 = vst [vmem:[#allocation40_spill] sm:$0xff] %v3939_v46  ;;  %1373 = vmatpush.msrb.mxu2 %v3947_v56  ;;  %2096 = vmatpush.msra.mxu1 %v3947_v56 }
 0x12f   :  { %5952 = vst [vmem:[#allocation36_spill] sm:$0xff] %v3923_v24  ;;  %1676 = vmatpush.msrb.mxu3 %v1675_v19  ;;  %v3941_v24 = vpop.f32.mrf.mxu3  ;;  %v3953_v19 = vsub.f32 %v1355_v32, %v3947_v56 }
 0x130   :  { %5957 = vst [vmem:[#allocation41_spill] sm:$0xff] %v3941_v24 }
 0x131   :  { %1051 = vmatmul.f32.gmra.mxu0 %v3560_v53 }
 0x132   :  { %v3934_v13 = vpop.f32.mrf.mxu1  ;;  %1892 = vmatpush.msra.mxu0 %v3953_v19 }
 0x133   :  { %5954 = vst [vmem:[#allocation38_spill] sm:$0xff] %v3934_v13 }
 0x135   :  { %1200 = vmatmul.f32.gmra.mxu1 %v3560_v53 }
 0x136   :  { %v3936_v11 = vpop.f32.mrf.mxu0 }
 0x137   :  { %5955 = vst [vmem:[#allocation39_spill] sm:$0xff] %v3936_v11  ;;  %v5822_v11 = vand.u32 4294901760, %v3953_v19  ;;  %v3967_v48 = vpop.f32.mrf.mxu3 }
 0x138   :  { %5961 = vst [vmem:[#allocation45_spill] sm:$0xff] %v3967_v48  ;;  %v1348_v48 = vld [vmem:[%s5807_s3 + $0x20] sm:$0xff] }
 0x139   :  { %1055 = vmatmul.f32.gmra.mxu0 %v3569_v60  ;;  %v1680_v13 = vsub.f32 %v3953_v19, %v5822_v11  ;;  %v4095_v39 = vand.u32 4294901760, %v1348_v48 }
 0x13a   :  { %v3949_v23 = vpop.f32.mrf.mxu1 }
 0x13b   :  { %5958 = vst [vmem:[#allocation42_spill] sm:$0xff] %v3949_v23  ;;  %v3964_v23 = vpop.f32.mrf.mxu2  ;;  %v1681_v32 = vand.u32 4294901760, %v1680_v13 }
 0x13c   :  { %5960 = vst [vmem:[#allocation44_spill] sm:$0xff] %v3964_v23  ;;  %v4113_v23 = vsub.f32 %v1348_v48, %v4095_v39 }
 0x13d   :  { %1204 = vmatmul.f32.gmra.mxu1 %v3569_v60  ;;  %1682 = vmatpush.msrb.mxu3 %v1681_v32  ;;  %v1354_v60 = vld [vmem:[%s5807_s3 + $0x50] sm:$0xff] }
 0x13e   :  { %v3956_v53 = vpop.f32.mrf.mxu0  ;;  %v3978_v11 = vand.u32 4294901760, %v1354_v60  ;;  %v5982_v47 = vand.u32 4294901760, %v4113_v23 }
 0x13f   :  { %5959 = vst [vmem:[#allocation43_spill] sm:$0xff] %v3956_v53 }
 0x140   :  { %1375 = vmatpush.msrb.mxu2 %v3978_v11  ;;  %v3986_v32 = vsub.f32 %v1354_v60, %v3978_v11  ;;  %2098 = vmatpush.msra.mxu1 %v3978_v11  ;;  %v1722_v7 = vsub.f32 %v4113_v23, %v5982_v47 }
 0x141   :  { %1059 = vmatmul.f32.gmra.mxu0 %v3577_v3 }
 0x142   :  { %v3969_v6 = vpop.f32.mrf.mxu1  ;;  %1895 = vmatpush.msra.mxu0 %v3986_v32  ;;  %v1723_v47 = vand.u32 4294901760, %v1722_v7 }
 0x143   :  { %5962 = vst [vmem:[#allocation46_spill] sm:$0xff] %v3969_v6  ;;  %v3980_v37 = vpop.f32.mrf.mxu2  ;;  %v5827_v6 = vand.u32 4294901760, %v3986_v32 }
 0x144   :  { %5964 = vst [vmem:[#allocation48_spill] sm:$0xff] %v3980_v37 }
 0x145   :  { %1208 = vmatmul.f32.gmra.mxu1 %v3577_v3  ;;  %v3989_v3 = vpop.f32.mrf.mxu3 }
 0x146   :  { %v3971_v53 = vpop.f32.mrf.mxu0  ;;  %5966 = vst [vmem:[#allocation50_spill] sm:$0xff] %v3989_v3 }
 0x147   :  { %5963 = vst [vmem:[#allocation47_spill] sm:$0xff] %v3971_v53 }
 0x149   :  { %1063 = vmatmul.f32.gmra.mxu0 %v3585_v10 }
 0x14a   :  { %v3982_v13 = vpop.f32.mrf.mxu1 }
 0x14b   :  { %5965 = vst [vmem:[#allocation49_spill] sm:$0xff] %v3982_v13  ;;  %v1686_v13 = vsub.f32 %v3986_v32, %v5827_v6  ;;  %v4002_v35 = vpop.f32.mrf.mxu2  ;;  %v1353_v6 = vld [vmem:[%s5807_s3 + $0x48] sm:$0xff] }
 0x14c   :  { %5969 = vst [vmem:[#allocation53_spill] sm:$0xff] %v4002_v35 }
 0x14d   :  { %1212 = vmatmul.f32.gmra.mxu1 %v3585_v10  ;;  %v1687_v60 = vand.u32 4294901760, %v1686_v13  ;;  %v4007_v10 = vpop.f32.mrf.mxu3 }
 0x14e   :  { %v3991_v53 = vpop.f32.mrf.mxu0  ;;  %5971 = vst [vmem:[#allocation55_spill] sm:$0xff] %v4007_v10 }
 0x14f   :  { %5967 = vst [vmem:[#allocation51_spill] sm:$0xff] %v3991_v53  ;;  %1688 = vmatpush.msrb.mxu3 %v1687_v60  ;;  %v4013_v53 = vand.u32 4294901760, %v1353_v6 }
 0x151   :  { %1067 = vmatmul.f32.gmra.mxu0 %v3593_v18  ;;  %1377 = vmatpush.msrb.mxu2 %v4013_v53  ;;  %v4019_v60 = vsub.f32 %v1353_v6, %v4013_v53 }
 0x152   :  { %v4000_v54 = vpop.f32.mrf.mxu1  ;;  %2100 = vmatpush.msra.mxu1 %v4013_v53 }
 0x153   :  { %5968 = vst [vmem:[#allocation52_spill] sm:$0xff] %v4000_v54  ;;  %1898 = vmatpush.msra.mxu0 %v4019_v60  ;;  %v4027_v54 = vpop.f32.mrf.mxu2 }
 0x154   :  { %5974 = vst [vmem:[#allocation58_spill] sm:$0xff] %v4027_v54 }
 0x155   :  { %1216 = vmatmul.f32.gmra.mxu1 %v3593_v18  ;;  %v4037_v22 = vpop.f32.mrf.mxu3 }
 0x156   :  { %v4004_v61 = vpop.f32.mrf.mxu0  ;;  %5975 = vst [vmem:[#allocation59_spill] sm:$0xff] %v4037_v22  ;;  %v1350_v22 = vld [vmem:[%s5807_s3 + $0x30] sm:$0xff] }
 0x157   :  { %5970 = vst [vmem:[#allocation54_spill] sm:$0xff] %v4004_v61  ;;  %v5828_v61 = vand.u32 4294901760, %v4019_v60  ;;  %v4059_v0 = vand.u32 4294901760, %v1350_v22 }
 0x159   :  { %1071 = vmatmul.f32.gmra.mxu0 %v3601_v26  ;;  %v1692_v6 = vsub.f32 %v4019_v60, %v5828_v61  ;;  %v4075_v40 = vsub.f32 %v1350_v22, %v4059_v0 }
 0x15a   :  { %v4015_v13 = vpop.f32.mrf.mxu1 }
 0x15b   :  { %5972 = vst [vmem:[#allocation56_spill] sm:$0xff] %v4015_v13  ;;  %v1352_v13 = vld [vmem:[%s5807_s3 + $0x40] sm:$0xff]  ;;  %v5835_v22 = vand.u32 4294901760, %v4075_v40 }
 0x15c   :  { %v4035_v10 = vand.u32 4294901760, %v1352_v13 }
 0x15d   :  { %1220 = vmatmul.f32.gmra.mxu1 %v3601_v26  ;;  %v1351_v26 = vld [vmem:[%s5807_s3 + $0x38] sm:$0xff] }
 0x15e   :  { %v4022_v18 = vpop.f32.mrf.mxu0  ;;  %1379 = vmatpush.msrb.mxu2 %v4035_v10  ;;  %v4045_v54 = vsub.f32 %v1352_v13, %v4035_v10  ;;  %v4047_v3 = vand.u32 4294901760, %v1351_v26  ;;  %2102 = vmatpush.msra.mxu1 %v4035_v10  ;;  %v1349_v13 = vld [vmem:[%s5807_s3 + $0x28] sm:$0xff] }
 0x15f   :  { %5973 = vst [vmem:[#allocation57_spill] sm:$0xff] %v4022_v18  ;;  %v1693_v18 = vand.u32 4294901760, %v1692_v6  ;;  %v4078_v45 = vand.u32 4294901760, %v1349_v13 }
 0x160   :  { %v5831_v35 = vand.u32 4294901760, %v4045_v54  ;;  %v4057_v6 = vsub.f32 %v1351_v26, %v4047_v3  ;;  %1381 = vmatpush.msrb.mxu2 %v4047_v3  ;;  %1901 = vmatpush.msra.mxu0 %v4045_v54 }
 0x161   :  { %1075 = vmatmul.f32.gmra.mxu0 %v3609_v34  ;;  %1694 = vmatpush.msrb.mxu3 %v1693_v18  ;;  %v4093_v37 = vsub.f32 %v1349_v13, %v4078_v45  ;;  %v4107_v13 = vpop.f32.mrf.mxu3 }
 0x162   :  { %v4050_v61 = vpop.f32.mrf.mxu1  ;;  %2104 = vmatpush.msra.mxu1 %v4047_v3  ;;  %v1698_v18 = vsub.f32 %v4045_v54, %v5831_v35  ;;  %v5834_v26 = vand.u32 4294901760, %v4057_v6  ;;  %1383 = vmatpush.msrb.mxu2 %v4059_v0  ;;  %5979 = vst [vmem:[#allocation63_spill] sm:$0xff] %v4107_v13 }
 0x163   :  { %5976 = vst [vmem:[#allocation60_spill] sm:$0xff] %v4050_v61  ;;  %1904 = vmatpush.msra.mxu0 %v4057_v6  ;;  %v5836_v24 = vand.u32 4294901760, %v4093_v37 }
 0x164   :  { %2106 = vmatpush.msra.mxu1 %v4059_v0  ;;  %v1704_v35 = vsub.f32 %v4057_v6, %v5834_v26  ;;  %1385 = vmatpush.msrb.mxu2 %v4078_v45  ;;  %v1710_v26 = vsub.f32 %v4075_v40, %v5835_v22 }
 0x165   :  { %1224 = vmatmul.f32.gmra.mxu1 %v3609_v34  ;;  %v1699_v34 = vand.u32 4294901760, %v1698_v18  ;;  %1907 = vmatpush.msra.mxu0 %v4075_v40  ;;  %v1716_v48 = vsub.f32 %v4093_v37, %v5836_v24  ;;  %v4142_v24 = vand.u32 4294901760, %v1345_v14 }
 0x166   :  { %v4067_v61 = vpop.f32.mrf.mxu0  ;;  %v1705_v18 = vand.u32 4294901760, %v1704_v35  ;;  %v1346_v35 = vld [vmem:[%s5807_s3 + $0x10] sm:$0xff]  ;;  %1387 = vmatpush.msrb.mxu2 %v4095_v39  ;;  %2108 = vmatpush.msra.mxu1 %v4078_v45 }
 0x167   :  { %5977 = vst [vmem:[#allocation61_spill] sm:$0xff] %v4067_v61  ;;  %v4089_v61 = vpop.f32.mrf.mxu2  ;;  %1700 = vmatpush.msrb.mxu3 %v1699_v34  ;;  %v1711_v34 = vand.u32 4294901760, %v1710_v26  ;;  %v4123_v13 = vand.u32 4294901760, %v1346_v35  ;;  %1910 = vmatpush.msra.mxu0 %v4093_v37 }
 0x168   :  { %5978 = vst [vmem:[#allocation62_spill] sm:$0xff] %v4089_v61  ;;  %v4104_v61 = vand.u32 4294901760, %v1347_v8  ;;  %2110 = vmatpush.msra.mxu1 %v4095_v39 }
 0x169   :  { %1079 = vmatmul.f32.gmra.mxu0 %v3617_v41  ;;  %1706 = vmatpush.msrb.mxu3 %v1705_v18  ;;  %v4140_v18 = vsub.f32 %v1346_v35, %v4123_v13 }
 0x16a   :  { %v4109_v29 = vpop.f32.mrf.mxu1  ;;  %v4121_v22 = vsub.f32 %v1347_v8, %v4104_v61  ;;  %1389 = vmatpush.msrb.mxu2 %v4104_v61  ;;  %1913 = vmatpush.msra.mxu0 %v4113_v23 }
 0x16b   :  { %5980 = vst [vmem:[#allocation64_spill] sm:$0xff] %v4109_v29  ;;  %1712 = vmatpush.msrb.mxu3 %v1711_v34  ;;  %v1717_v29 = vand.u32 4294901760, %v1716_v48  ;;  %v5840_v35 = vand.u32 4294901760, %v4140_v18  ;;  %v4157_v34 = vsub.f32 %v1345_v14, %v4142_v24  ;;  %2112 = vmatpush.msra.mxu1 %v4104_v61  ;;  %v4161_v48 = vand.u32 4294901760, %v1344_v17 }
 0x16c   :  { %v5839_v26 = vand.u32 4294901760, %v4121_v22  ;;  %1391 = vmatpush.msrb.mxu2 %v4123_v13  ;;  %1916 = vmatpush.msra.mxu0 %v4121_v22 }
 0x16d   :  { %1228 = vmatmul.f32.gmra.mxu1 %v3617_v41  ;;  %1718 = vmatpush.msrb.mxu3 %v1717_v29  ;;  %v1734_v46 = vsub.f32 %v4140_v18, %v5840_v35  ;;  %v4174_v7 = vsub.f32 %v1344_v17, %v4161_v48  ;;  %v4182_v35 = vpop.f32.mrf.mxu3 }
 0x16e   :  { %v4135_v8 = vpop.f32.mrf.mxu0  ;;  %v1728_v41 = vsub.f32 %v4121_v22, %v5839_v26  ;;  %v5841_v26 = vand.u32 4294901760, %v4157_v34  ;;  %1393 = vmatpush.msrb.mxu2 %v4142_v24  ;;  %2114 = vmatpush.msra.mxu1 %v4123_v13 }
 0x16f   :  { %5981 = vst [vmem:[#allocation65_spill] sm:$0xff] %v4135_v8  ;;  %v4169_v14 = vpop.f32.mrf.mxu2  ;;  %1724 = vmatpush.msrb.mxu3 %v1723_v47  ;;  %v1735_v29 = vand.u32 4294901760, %v1734_v46  ;;  %1919 = vmatpush.msra.mxu0 %v4140_v18 }
 0x170   :  { %v1729_v8 = vand.u32 4294901760, %v1728_v41  ;;  %v1740_v41 = vsub.f32 %v4157_v34, %v5841_v26  ;;  %1395 = vmatpush.msrb.mxu2 %v4161_v48  ;;  %2116 = vmatpush.msra.mxu1 %v4142_v24 }
 0x171   :  { %1083 = vmatmul.f32.gmra.mxu0 %v3625_v49 }
 0x172   :  { %v4171_v63 = vpop.f32.mrf.mxu1  ;;  %1730 = vmatpush.msrb.mxu3 %v1729_v8  ;;  %v1741_v46 = vand.u32 4294901760, %v1740_v41  ;;  %1922 = vmatpush.msra.mxu0 %v4157_v34  ;;  %v5985_v8 = vand.u32 4294901760, %v3841_v4 }
 0x173   :  { %5983 = vst [vmem:[#allocation66_spill] sm:$0xff] %v4171_v63  ;;  %v5842_v63 = vand.u32 4294901760, %v4174_v7  ;;  %2118 = vmatpush.msra.mxu1 %v4161_v48 }
 0x174   :  { %1736 = vmatpush.msrb.mxu3 %v1735_v29  ;;  %1925 = vmatpush.msra.mxu0 %v4174_v7  ;;  %v5987_v29 = vand.u32 4294901760, %v3893_v59 }
 0x175   :  { %1232 = vmatmul.f32.gmra.mxu1 %v3625_v49  ;;  %v1746_v47 = vsub.f32 %v4174_v7, %v5842_v63  ;;  %2315 = vmatpush.msra.mxu2 %v5985_v8  ;;  %v5986_v49 = vand.u32 4294901760, %v3866_v5  ;;  %v4211_v4 = vpop.f32.mrf.mxu3  ;;  %v5988_v5 = vand.u32 4294901760, %v3920_v33 }
 0x176   :  { %v4186_v17 = vpop.f32.mrf.mxu0  ;;  %1742 = vmatpush.msrb.mxu3 %v1741_v46 }
 0x177   :  { %5984 = vst [vmem:[#allocation67_spill] sm:$0xff] %v4186_v17  ;;  %v1747_v26 = vand.u32 4294901760, %v1746_v47  ;;  %2319 = vmatpush.msra.mxu2 %v5986_v49  ;;  %v4205_v63 = vpop.f32.mrf.mxu2 }
 0x179   :  { %1087 = vmatmul.f32.gmra.mxu0 %v3633_v57  ;;  %1748 = vmatpush.msrb.mxu3 %v1747_v26 }
 0x17a   :  { %v4200_v41 = vpop.f32.mrf.mxu1  ;;  %2323 = vmatpush.msra.mxu2 %v5987_v29 }
 0x17b   :  { %2506 = vmatpush.msra.mxu3 %v3835_v50  ;;  %v5989_v50 = vand.u32 4294901760, %v3953_v19 }
 0x17c   :  { %2327 = vmatpush.msra.mxu2 %v5988_v5 }
 0x17d   :  { %1236 = vmatmul.f32.gmra.mxu1 %v3633_v57  ;;  %2508 = vmatpush.msra.mxu3 %v3860_v25  ;;  %v5990_v57 = vand.u32 4294901760, %v3986_v32  ;;  %v5991_v25 = vand.u32 4294901760, %v4019_v60  ;;  %v4236_v19 = vpop.f32.mrf.mxu3 }
 0x17e   :  { %v4207_v17 = vpop.f32.mrf.mxu0  ;;  %2331 = vmatpush.msra.mxu2 %v5989_v50 }
 0x17f   :  { %2510 = vmatpush.msra.mxu3 %v3887_v31  ;;  %v4231_v31 = vpop.f32.mrf.mxu2 }
 0x180   :  { %2335 = vmatpush.msra.mxu2 %v5990_v57 }
 0x181   :  { %1091 = vmatmul.f32.gmra.mxu0 %v3641_v1  ;;  %2512 = vmatpush.msra.mxu3 %v3914_v30  ;;  %v5993_v30 = vand.u32 4294901760, %v4045_v54  ;;  %v5997_v54 = vand.u32 4294901760, %v4093_v37 }
 0x182   :  { %v4220_v59 = vpop.f32.mrf.mxu1  ;;  %2339 = vmatpush.msra.mxu2 %v5991_v25 }
 0x183   :  { %2514 = vmatpush.msra.mxu3 %v3947_v56  ;;  %v5994_v56 = vand.u32 4294901760, %v4057_v6 }
 0x184   :  { %2343 = vmatpush.msra.mxu2 %v5993_v30 }
 0x185   :  { %1240 = vmatmul.f32.gmra.mxu1 %v3641_v1  ;;  %2516 = vmatpush.msra.mxu3 %v3978_v11  ;;  %v5996_v1 = vand.u32 4294901760, %v4075_v40  ;;  %v5999_v40 = vand.u32 4294901760, %v4121_v22 }
 0x186   :  { %v4227_v33 = vpop.f32.mrf.mxu0  ;;  %2347 = vmatpush.msra.mxu2 %v5994_v56 }
 0x187   :  { %5992 = vst [vmem:[#allocation68_spill] sm:$0xff] %v4227_v33  ;;  %2518 = vmatpush.msra.mxu3 %v4013_v53  ;;  %v5998_v53 = vand.u32 4294901760, %v4113_v23 }
 0x188   :  { %2351 = vmatpush.msra.mxu2 %v5996_v1 }
 0x189   :  { %1095 = vmatmul.f32.gmra.mxu0 %v3649_v9  ;;  %2520 = vmatpush.msra.mxu3 %v4035_v10  ;;  %v4254_v10 = vpop.f32.mrf.mxu2 }
 0x18a   :  { %v4242_v32 = vpop.f32.mrf.mxu1  ;;  %2355 = vmatpush.msra.mxu2 %v5997_v54 }
 0x18b   :  { %5995 = vst [vmem:[#allocation69_spill] sm:$0xff] %v4242_v32  ;;  %2522 = vmatpush.msra.mxu3 %v4047_v3  ;;  %v4261_v3 = vpop.f32.mrf.mxu3 }
 0x18c   :  { %2359 = vmatpush.msra.mxu2 %v5998_v53 }
 0x18d   :  { %1244 = vmatmul.f32.gmra.mxu1 %v3649_v9  ;;  %2524 = vmatpush.msra.mxu3 %v4059_v0  ;;  %v6000_v0 = vand.u32 4294901760, %v4140_v18 }
 0x18e   :  { %v1036_v11 = vpop.f32.mrf.mxu0  ;;  %2363 = vmatpush.msra.mxu2 %v5999_v40 }
 0x18f   :  { %2526 = vmatpush.msra.mxu3 %v4078_v45  ;;  %v1037_v37 = vadd.f32 %v1036_v11, %v3694_v62  ;;  %v6001_v45 = vand.u32 4294901760, %v4157_v34  ;;  %v6002_v62 = vand.u32 4294901760, %v4174_v7 }
 0x190   :  { %2367 = vmatpush.msra.mxu2 %v6000_v0 }
 0x191   :  { %1099 = vmatmul.f32.gmra.mxu0 %v3657_v20  ;;  %2528 = vmatpush.msra.mxu3 %v4095_v39  ;;  %v4281_v26 = vpop.f32.mrf.mxu2 }
 0x192   :  { %v1185_v9 = vpop.f32.mrf.mxu1  ;;  %2371 = vmatpush.msra.mxu2 %v6001_v45 }
 0x193   :  { %v1186_v23 = vadd.f32 %v1185_v9, %v1037_v37  ;;  %2530 = vmatpush.msra.mxu3 %v4104_v61  ;;  %v4285_v34 = vpop.f32.mrf.mxu3 }
 0x194   :  { %2375 = vmatpush.msra.mxu2 %v6002_v62 }
 0x195   :  { %v1312_v60 = vmax.f32 %v1186_v23, 0.0  ;;  %1248 = vmatmul.f32.gmra.mxu1 %v3657_v20  ;;  %2532 = vmatpush.msra.mxu3 %v4123_v13 }
 0x196   :  { %v1040_v6 = vpop.f32.mrf.mxu0 }
 0x197   :  { %v4272_v39 = vand.u32 4294901760, %v1312_v60  ;;  %2534 = vmatpush.msra.mxu3 %v4142_v24  ;;  %v1041_v22 = vadd.f32 %v1040_v6, %v3705_v21 }
 0x199   :  { %6003 = vst [vmem:[#allocation70_spill] sm:$0xff] %v4272_v39  ;;  %1103 = vmatmul.f32.gmra.mxu0 %v3665_v28  ;;  %v4277_v61 = vsub.f32 %v1312_v60, %v4272_v39  ;;  %1750 = vmatmul.f32.vlgmr.msrb.gmra.mxu3 %v4272_v39  ;;  %v4300_v5 = vpop.f32.mrf.mxu2 }
 0x19a   :  { %v1189_v20 = vpop.f32.mrf.mxu1  ;;  %2536 = vmatpush.msra.mxu3 %v4161_v48 }
 0x19b   :  { %v5850_v13 = vand.u32 4294901760, %v4277_v61  ;;  %v1190_v18 = vadd.f32 %v1189_v20, %v1041_v22  ;;  %v4306_v30 = vpop.f32.mrf.mxu3 }
 0x19d   :  { %v1313_v24 = vmax.f32 %v1190_v18, 0.0  ;;  %1252 = vmatmul.f32.gmra.mxu1 %v3665_v28  ;;  %v1399_v21 = vsub.f32 %v4277_v61, %v5850_v13 }
 0x19e   :  { %v1044_v7 = vpop.f32.mrf.mxu0 }
 0x19f   :  { %v4291_v46 = vand.u32 4294901760, %v1313_v24  ;;  %v1400_v47 = vand.u32 4294901760, %v1399_v21  ;;  %v1045_v8 = vadd.f32 %v1044_v7, %v3716_v43 }
 0x1a1   :  { %6004 = vst [vmem:[#allocation71_spill] sm:$0xff] %v4291_v46  ;;  %1107 = vmatmul.f32.gmra.mxu0 %v3678_v38  ;;  %v4295_v48 = vsub.f32 %v1313_v24, %v4291_v46  ;;  %1401 = vmatmul.f32.vlgmr.msrb.gmra.mxu2 %v1400_v47  ;;  %v4321_v0 = vpop.f32.mrf.mxu2 }
 0x1a2   :  { %1754 = vmatmul.f32.gmra.mxu3 %v4291_v46  ;;  %v1193_v49 = vpop.f32.mrf.mxu1 }
 0x1a3   :  { %v1194_v29 = vadd.f32 %v1193_v49, %v1045_v8  ;;  %v5849_v28 = vand.u32 4294901760, %v4295_v48  ;;  %v4325_v45 = vpop.f32.mrf.mxu3 }
 0x1a5   :  { %v1314_v50 = vmax.f32 %v1194_v29, 0.0  ;;  %1256 = vmatmul.f32.gmra.mxu1 %v3678_v38  ;;  %v1407_v25 = vsub.f32 %v4295_v48, %v5849_v28 }
 0x1a6   :  { %v1048_v57 = vpop.f32.mrf.mxu0 }
 0x1a7   :  { %v4308_v43 = vand.u32 4294901760, %v1314_v50  ;;  %v1408_v56 = vand.u32 4294901760, %v1407_v25  ;;  %v1049_v54 = vadd.f32 %v1048_v57, %v3727_v2 }
 0x1a9   :  { %6005 = vst [vmem:[#allocation72_spill] sm:$0xff] %v4308_v43  ;;  %1111 = vmatmul.f32.gmra.mxu0 %v3687_v55  ;;  %v4312_v1 = vsub.f32 %v1314_v50, %v4308_v43  ;;  %1409 = vmatmul.f32.gmra.mxu2 %v1408_v56  ;;  %v4340_v47 = vpop.f32.mrf.mxu2 }
 0x1aa   :  { %1758 = vmatmul.f32.gmra.mxu3 %v4308_v43  ;;  %v1197_v38 = vpop.f32.mrf.mxu1 }
 0x1ab   :  { %v1198_v11 = vadd.f32 %v1197_v38, %v1049_v54  ;;  %v5848_v53 = vand.u32 4294901760, %v4312_v1 }
 0x1ad   :  { %v1315_v40 = vmax.f32 %v1198_v11, 0.0  ;;  %1260 = vmatmul.f32.gmra.mxu1 %v3687_v55  ;;  %v1415_v9 = vsub.f32 %v4312_v1, %v5848_v53 }
 0x1ae   :  { %v1052_v37 = vpop.f32.mrf.mxu0 }
 0x1af   :  { %v4323_v23 = vand.u32 4294901760, %v1315_v40  ;;  %v1416_v2 = vand.u32 4294901760, %v1415_v9  ;;  %v1053_v6 = vadd.f32 %v1052_v37, %v3738_v27  ;;  %v4368_v37 = vld [vmem:[%s5806_s2] ss:$0 sm:$0xff] }
 0x1b0   :  { %v257_v9 = vadd.f32 %v4368_v37, %v3766_v42 }
 0x1b1   :  { %6006 = vst [vmem:[#allocation73_spill] sm:$0xff] %v4323_v23  ;;  %1115 = vmatmul.f32.gmra.mxu0 %v3698_v12  ;;  %v4329_v60 = vsub.f32 %v1315_v40, %v4323_v23  ;;  %1417 = vmatmul.f32.gmra.mxu2 %v1416_v2  ;;  %v4363_v40 = vpop.f32.mrf.mxu2 }
 0x1b2   :  { %1762 = vmatmul.f32.gmra.mxu3 %v4323_v23  ;;  %v1201_v55 = vpop.f32.mrf.mxu1  ;;  %v6041_v23 = vld [vmem:[#allocation62_spill] sm:$0xff] }
 0x1b3   :  { %v1202_v62 = vadd.f32 %v1201_v55, %v1053_v6  ;;  %v5847_v22 = vand.u32 4294901760, %v4329_v60 }
 0x1b5   :  { %v1316_v20 = vmax.f32 %v1202_v62, 0.0  ;;  %1264 = vmatmul.f32.gmra.mxu1 %v3698_v12  ;;  %v1423_v24 = vsub.f32 %v4329_v60, %v5847_v22  ;;  %v4348_v12 = vpop.f32.mrf.mxu3 }
 0x1b6   :  { %v1056_v18 = vpop.f32.mrf.mxu0 }
 0x1b7   :  { %v4338_v7 = vand.u32 4294901760, %v1316_v20  ;;  %v1424_v21 = vand.u32 4294901760, %v1423_v24  ;;  %v1057_v8 = vadd.f32 %v1056_v18, %v3749_v52  ;;  %v514_v18 = vadd.f32 %v3776_v51, %v257_v9 }
 0x1b9   :  { %6007 = vst [vmem:[#allocation74_spill] sm:$0xff] %v4338_v7  ;;  %1119 = vmatmul.f32.gmra.mxu0 %v3709_v36  ;;  %v4344_v27 = vsub.f32 %v1316_v20, %v4338_v7  ;;  %1425 = vmatmul.f32.gmra.mxu2 %v1424_v21 }
 0x1ba   :  { %1766 = vmatmul.f32.gmra.mxu3 %v4338_v7  ;;  %v1205_v49 = vpop.f32.mrf.mxu1 }
 0x1bb   :  { %v1206_v29 = vadd.f32 %v1205_v49, %v1057_v8  ;;  %v5845_v50 = vand.u32 4294901760, %v4344_v27  ;;  %v6010_v49 = vld [vmem:[#allocation10_spill] sm:$0xff] }
 0x1bd   :  { %v1317_v57 = vmax.f32 %v1206_v29, 0.0  ;;  %1268 = vmatmul.f32.gmra.mxu1 %v3709_v36  ;;  %v1431_v56 = vsub.f32 %v4344_v27, %v5845_v50  ;;  %v4373_v55 = vpop.f32.mrf.mxu3  ;;  %v265_v29 = vadd.f32 %v4368_v37, %v6010_v49 }
 0x1be   :  { %v1060_v25 = vpop.f32.mrf.mxu0 }
 0x1bf   :  { %v4355_v54 = vand.u32 4294901760, %v1317_v57  ;;  %v1432_v52 = vand.u32 4294901760, %v1431_v56  ;;  %v1061_v11 = vadd.f32 %v1060_v25, %v3760_v15 }
 0x1c1   :  { %6008 = vst [vmem:[#allocation75_spill] sm:$0xff] %v4355_v54  ;;  %1123 = vmatmul.f32.gmra.mxu0 %v3720_v58  ;;  %v4359_v38 = vsub.f32 %v1317_v57, %v4355_v54  ;;  %1433 = vmatmul.f32.gmra.mxu2 %v1432_v52  ;;  %v6011_v57 = vld [vmem:[#allocation40_spill] sm:$0xff]  ;;  %v4392_v52 = vpop.f32.mrf.mxu2 }
 0x1c2   :  { %1770 = vmatmul.f32.gmra.mxu3 %v4355_v54  ;;  %v1209_v36 = vpop.f32.mrf.mxu1  ;;  %v676_v25 = vadd.f32 %v6011_v57, %v514_v18  ;;  %v6016_v57 = vld [vmem:[#allocation13_spill] sm:$0xff] }
 0x1c3   :  { %v1210_v2 = vadd.f32 %v1209_v36, %v1061_v11  ;;  %v5844_v6 = vand.u32 4294901760, %v4359_v38  ;;  %v6033_v54 = vld [vmem:[#allocation9_spill] sm:$0xff] }
 0x1c5   :  { %v1318_v15 = vmax.f32 %v1210_v2, 0.0  ;;  %1272 = vmatmul.f32.gmra.mxu1 %v3720_v58  ;;  %v1439_v20 = vsub.f32 %v4359_v38, %v5844_v6  ;;  %v4398_v9 = vpop.f32.mrf.mxu3  ;;  %v6012_v2 = vld [vmem:[#allocation37_spill] sm:$0xff]  ;;  %v6019_v6 = vld [vmem:[#allocation14_spill] sm:$0xff] }
 0x1c6   :  { %v1064_v62 = vpop.f32.mrf.mxu0 }
 0x1c7   :  { %v4380_v24 = vand.u32 4294901760, %v1318_v15  ;;  %v1440_v21 = vand.u32 4294901760, %v1439_v20  ;;  %v1065_v8 = vadd.f32 %v1064_v62, %v3772_v44  ;;  %v6013_v62 = vld [vmem:[#allocation11_spill] sm:$0xff] }
 0x1c8   :  { %v518_v20 = vadd.f32 %v6013_v62, %v265_v29 }
 0x1c9   :  { %6009 = vst [vmem:[#allocation76_spill] sm:$0xff] %v4380_v24  ;;  %1127 = vmatmul.f32.gmra.mxu0 %v3731_v16  ;;  %v4384_v42 = vsub.f32 %v1318_v15, %v4380_v24  ;;  %1441 = vmatmul.f32.gmra.mxu2 %v1440_v21  ;;  %v866_v15 = vadd.f32 %v6012_v2, %v676_v25 }
 0x1ca   :  { %1774 = vmatmul.f32.gmra.mxu3 %v4380_v24  ;;  %v1213_v58 = vpop.f32.mrf.mxu1 }
 0x1cb   :  { %v1214_v51 = vadd.f32 %v1213_v58, %v1065_v8  ;;  %v5843_v56 = vand.u32 4294901760, %v4384_v42  ;;  %v6015_v8 = vld [vmem:[#allocation6_spill] sm:$0xff] }
 0x1cd   :  { %v1319_v11 = vmax.f32 %v1214_v51, 0.0  ;;  %1276 = vmatmul.f32.gmra.mxu1 %v3731_v16  ;;  %v1447_v44 = vsub.f32 %v4384_v42, %v5843_v56  ;;  %v273_v51 = vadd.f32 %v4368_v37, %v6016_v57  ;;  %v6017_v56 = vld [vmem:[#allocation44_spill] sm:$0xff] }
 0x1ce   :  { %v1068_v36 = vpop.f32.mrf.mxu0  ;;  %v681_v25 = vadd.f32 %v6017_v56, %v518_v20  ;;  %v4423_v20 = vpop.f32.mrf.mxu3 }
 0x1cf   :  { %v4402_v18 = vand.u32 4294901760, %v1319_v11  ;;  %v1448_v21 = vand.u32 4294901760, %v1447_v44  ;;  %v1069_v49 = vadd.f32 %v1068_v36, %v866_v15  ;;  %v4417_v36 = vpop.f32.mrf.mxu2  ;;  %v6018_v15 = vld [vmem:[#allocation41_spill] sm:$0xff]  ;;  %v522_v50 = vadd.f32 %v6019_v6, %v273_v51 }
 0x1d1   :  { %6014 = vst [vmem:[#allocation10_spill] sm:$0xff] %v4402_v18  ;;  %1131 = vmatmul.f32.gmra.mxu0 %v6015_v8  ;;  %v4406_v58 = vsub.f32 %v1319_v11, %v4402_v18  ;;  %1449 = vmatmul.f32.gmra.mxu2 %v1448_v21  ;;  %v872_v21 = vadd.f32 %v6018_v15, %v681_v25  ;;  %v6023_v15 = vld [vmem:[#allocation48_spill] sm:$0xff] }
 0x1d2   :  { %1778 = vmatmul.f32.gmra.mxu3 %v4402_v18  ;;  %v1217_v16 = vpop.f32.mrf.mxu1  ;;  %v686_v6 = vadd.f32 %v6023_v15, %v522_v50  ;;  %v6027_v50 = vld [vmem:[#allocation8_spill] sm:$0xff] }
 0x1d3   :  { %v1218_v2 = vadd.f32 %v1217_v16, %v1069_v49  ;;  %v5846_v29 = vand.u32 4294901760, %v4406_v58  ;;  %v6021_v49 = vld [vmem:[#allocation7_spill] sm:$0xff] }
 0x1d5   :  { %v1320_v62 = vmax.f32 %v1218_v2, 0.0  ;;  %1280 = vmatmul.f32.gmra.mxu1 %v6015_v8  ;;  %v1455_v11 = vsub.f32 %v4406_v58, %v5846_v29  ;;  %v6022_v29 = vld [vmem:[#allocation16_spill] sm:$0xff] }
 0x1d6   :  { %v1072_v44 = vpop.f32.mrf.mxu0  ;;  %v281_v25 = vadd.f32 %v4368_v37, %v6022_v29 }
 0x1d7   :  { %v4421_v57 = vand.u32 4294901760, %v1320_v62  ;;  %v1456_v56 = vand.u32 4294901760, %v1455_v11  ;;  %v1073_v8 = vadd.f32 %v1072_v44, %v872_v21  ;;  %v6024_v44 = vld [vmem:[#allocation45_spill] sm:$0xff] }
 0x1d8   :  { %v878_v21 = vadd.f32 %v6024_v44, %v686_v6  ;;  %v6028_v6 = vld [vmem:[#allocation19_spill] sm:$0xff] }
 0x1d9   :  { %6020 = vst [vmem:[#allocation40_spill] sm:$0xff] %v4421_v57  ;;  %1135 = vmatmul.f32.gmra.mxu0 %v6021_v49  ;;  %v4427_v16 = vsub.f32 %v1320_v62, %v4421_v57  ;;  %1457 = vmatmul.f32.gmra.mxu2 %v1456_v56  ;;  %v6025_v56 = vld [vmem:[#allocation17_spill] sm:$0xff] }
 0x1da   :  { %1782 = vmatmul.f32.gmra.mxu3 %v4421_v57  ;;  %v1221_v2 = vpop.f32.mrf.mxu1  ;;  %v526_v28 = vadd.f32 %v6025_v56, %v281_v25  ;;  %v4442_v57 = vpop.f32.mrf.mxu2  ;;  %v289_v25 = vadd.f32 %v4368_v37, %v6028_v6 }
 0x1db   :  { %v1222_v51 = vadd.f32 %v1221_v2, %v1073_v8  ;;  %v5853_v11 = vand.u32 4294901760, %v4427_v16 }
 0x1dd   :  { %v1321_v22 = vmax.f32 %v1222_v51, 0.0  ;;  %1284 = vmatmul.f32.gmra.mxu1 %v6021_v49  ;;  %v1463_v62 = vsub.f32 %v4427_v16, %v5853_v11  ;;  %v4449_v49 = vpop.f32.mrf.mxu3  ;;  %v6029_v51 = vld [vmem:[#allocation53_spill] sm:$0xff] }
 0x1de   :  { %v1076_v53 = vpop.f32.mrf.mxu0  ;;  %v691_v44 = vadd.f32 %v6029_v51, %v526_v28  ;;  %v6034_v51 = vld [vmem:[#allocation22_spill] sm:$0xff] }
 0x1df   :  { %v4440_v13 = vand.u32 4294901760, %v1321_v22  ;;  %v1464_v29 = vand.u32 4294901760, %v1463_v62  ;;  %v1077_v2 = vadd.f32 %v1076_v53, %v878_v21 }
 0x1e1   :  { %6026 = vst [vmem:[#allocation37_spill] sm:$0xff] %v4440_v13  ;;  %1139 = vmatmul.f32.gmra.mxu0 %v6027_v50  ;;  %v4446_v8 = vsub.f32 %v1321_v22, %v4440_v13  ;;  %1465 = vmatmul.f32.gmra.mxu2 %v1464_v29  ;;  %v6030_v22 = vld [vmem:[#allocation50_spill] sm:$0xff]  ;;  %v6031_v29 = vld [vmem:[#allocation20_spill] sm:$0xff] }
 0x1e2   :  { %1786 = vmatmul.f32.gmra.mxu3 %v4440_v13  ;;  %v1225_v15 = vpop.f32.mrf.mxu1  ;;  %v884_v21 = vadd.f32 %v6030_v22, %v691_v44  ;;  %v530_v13 = vadd.f32 %v6031_v29, %v289_v25  ;;  %v297_v44 = vadd.f32 %v4368_v37, %v6034_v51 }
 0x1e3   :  { %v1226_v62 = vadd.f32 %v1225_v15, %v1077_v2  ;;  %v5862_v56 = vand.u32 4294901760, %v4446_v8 }
 0x1e5   :  { %v1322_v11 = vmax.f32 %v1226_v62, 0.0  ;;  %1288 = vmatmul.f32.gmra.mxu1 %v6027_v50  ;;  %v1471_v53 = vsub.f32 %v4446_v8, %v5862_v56  ;;  %v4468_v50 = vpop.f32.mrf.mxu2  ;;  %v6035_v62 = vld [vmem:[#allocation58_spill] sm:$0xff]  ;;  %v4474_v29 = vpop.f32.mrf.mxu3 }
 0x1e6   :  { %v1080_v18 = vpop.f32.mrf.mxu0  ;;  %v696_v25 = vadd.f32 %v6035_v62, %v530_v13 }
 0x1e7   :  { %v4461_v24 = vand.u32 4294901760, %v1322_v11  ;;  %v1472_v6 = vand.u32 4294901760, %v1471_v53  ;;  %v1081_v2 = vadd.f32 %v1080_v18, %v884_v21  ;;  %v6036_v21 = vld [vmem:[#allocation55_spill] sm:$0xff] }
 0x1e9   :  { %6032 = vst [vmem:[#allocation11_spill] sm:$0xff] %v4461_v24  ;;  %1143 = vmatmul.f32.gmra.mxu0 %v6033_v54  ;;  %v4465_v28 = vsub.f32 %v1322_v11, %v4461_v24  ;;  %1473 = vmatmul.f32.gmra.mxu2 %v1472_v6  ;;  %v890_v6 = vadd.f32 %v6036_v21, %v696_v25 }
 0x1ea   :  { %1790 = vmatmul.f32.gmra.mxu3 %v4461_v24  ;;  %v1229_v15 = vpop.f32.mrf.mxu1  ;;  %v6037_v24 = vld [vmem:[#allocation23_spill] sm:$0xff] }
 0x1eb   :  { %v1230_v22 = vadd.f32 %v1229_v15, %v1081_v2  ;;  %v5867_v53 = vand.u32 4294901760, %v4465_v28  ;;  %v534_v7 = vadd.f32 %v6037_v24, %v297_v44  ;;  %v6039_v2 = vld [vmem:[#allocation12_spill] sm:$0xff] }
 0x1ed   :  { %v1323_v56 = vmax.f32 %v1230_v22, 0.0  ;;  %1292 = vmatmul.f32.gmra.mxu1 %v6033_v54  ;;  %v1479_v18 = vsub.f32 %v4465_v28, %v5867_v53  ;;  %v6040_v22 = vld [vmem:[#allocation24_spill] sm:$0xff]  ;;  %v701_v25 = vadd.f32 %v6041_v23, %v534_v7  ;;  %v4493_v44 = vpop.f32.mrf.mxu2 }
 0x1ee   :  { %v1084_v11 = vpop.f32.mrf.mxu0  ;;  %v305_v53 = vadd.f32 %v4368_v37, %v6040_v22  ;;  %v6043_v22 = vld [vmem:[#allocation25_spill] sm:$0xff] }
 0x1ef   :  { %v4482_v51 = vand.u32 4294901760, %v1323_v56  ;;  %v1480_v13 = vand.u32 4294901760, %v1479_v18  ;;  %v1085_v62 = vadd.f32 %v1084_v11, %v890_v6  ;;  %v4499_v11 = vpop.f32.mrf.mxu3  ;;  %v6042_v6 = vld [vmem:[#allocation59_spill] sm:$0xff] }
 0x1f1   :  { %6038 = vst [vmem:[#allocation6_spill] sm:$0xff] %v4482_v51  ;;  %1147 = vmatmul.f32.gmra.mxu0 %v6039_v2  ;;  %v4486_v15 = vsub.f32 %v1323_v56, %v4482_v51  ;;  %1481 = vmatmul.f32.gmra.mxu2 %v1480_v13  ;;  %v896_v13 = vadd.f32 %v6042_v6, %v701_v25 }
 0x1f2   :  { %1794 = vmatmul.f32.gmra.mxu3 %v4482_v51  ;;  %v1233_v54 = vpop.f32.mrf.mxu1  ;;  %v538_v51 = vadd.f32 %v6043_v22, %v305_v53 }
 0x1f3   :  { %v1234_v21 = vadd.f32 %v1233_v54, %v1085_v62  ;;  %v5874_v24 = vand.u32 4294901760, %v4486_v15  ;;  %v6045_v62 = vld [vmem:[#allocation15_spill] sm:$0xff] }
 0x1f4   :  { %v706_v25 = vadd.f32 %v4169_v14, %v538_v51 }
 0x1f5   :  { %v1324_v18 = vmax.f32 %v1234_v21, 0.0  ;;  %1296 = vmatmul.f32.gmra.mxu1 %v6039_v2  ;;  %v1487_v56 = vsub.f32 %v4486_v15, %v5874_v24  ;;  %v6046_v24 = vld [vmem:[#allocation26_spill] sm:$0xff] }
 0x1f6   :  { %v1088_v43 = vpop.f32.mrf.mxu0  ;;  %v313_v46 = vadd.f32 %v4368_v37, %v6046_v24 }
 0x1f7   :  { %v4503_v23 = vand.u32 4294901760, %v1324_v18  ;;  %v1488_v7 = vand.u32 4294901760, %v1487_v56  ;;  %v1089_v21 = vadd.f32 %v1088_v43, %v896_v13  ;;  %v6047_v13 = vld [vmem:[#allocation63_spill] sm:$0xff]  ;;  %v4524_v51 = vpop.f32.mrf.mxu3 }
 0x1f9   :  { %6044 = vst [vmem:[#allocation13_spill] sm:$0xff] %v4503_v23  ;;  %1151 = vmatmul.f32.gmra.mxu0 %v6045_v62  ;;  %v4507_v54 = vsub.f32 %v1324_v18, %v4503_v23  ;;  %1489 = vmatmul.f32.gmra.mxu2 %v1488_v7  ;;  %v4518_v18 = vpop.f32.mrf.mxu2  ;;  %v902_v7 = vadd.f32 %v6047_v13, %v706_v25 }
 0x1fa   :  { %1798 = vmatmul.f32.gmra.mxu3 %v4503_v23  ;;  %v1237_v2 = vpop.f32.mrf.mxu1  ;;  %v6048_v23 = vld [vmem:[#allocation27_spill] sm:$0xff] }
 0x1fb   :  { %v1238_v6 = vadd.f32 %v1237_v2, %v1089_v21  ;;  %v5881_v53 = vand.u32 4294901760, %v4507_v54  ;;  %v542_v39 = vadd.f32 %v6048_v23, %v313_v46  ;;  %v6050_v21 = vld [vmem:[#allocation18_spill] sm:$0xff] }
 0x1fd   :  { %v1325_v22 = vmax.f32 %v1238_v6, 0.0  ;;  %1300 = vmatmul.f32.gmra.mxu1 %v6045_v62  ;;  %v1495_v43 = vsub.f32 %v4507_v54, %v5881_v53  ;;  %v6051_v53 = vld [vmem:[#allocation28_spill] sm:$0xff]  ;;  %v711_v46 = vadd.f32 %v4205_v63, %v542_v39  ;;  %v6054_v63 = vld [vmem:[#allocation21_spill] sm:$0xff] }
 0x1fe   :  { %v1092_v56 = vpop.f32.mrf.mxu0  ;;  %v321_v25 = vadd.f32 %v4368_v37, %v6051_v53 }
 0x1ff   :  { %v4522_v24 = vand.u32 4294901760, %v1325_v22  ;;  %v1496_v14 = vand.u32 4294901760, %v1495_v43  ;;  %v1093_v62 = vadd.f32 %v1092_v56, %v902_v7  ;;  %v908_v56 = vadd.f32 %v4182_v35, %v711_v46  ;;  %v6052_v7 = vld [vmem:[#allocation29_spill] sm:$0xff]  ;;  %v6055_v35 = vld [vmem:[#allocation30_spill] sm:$0xff] }
 0x201   :  { %6049 = vst [vmem:[#allocation44_spill] sm:$0xff] %v4522_v24  ;;  %1155 = vmatmul.f32.gmra.mxu0 %v6050_v21  ;;  %v4528_v2 = vsub.f32 %v1325_v22, %v4522_v24  ;;  %1497 = vmatmul.f32.gmra.mxu2 %v1496_v14  ;;  %v546_v14 = vadd.f32 %v6052_v7, %v321_v25  ;;  %v4543_v33 = vpop.f32.mrf.mxu2 }
 0x202   :  { %1802 = vmatmul.f32.gmra.mxu3 %v4522_v24  ;;  %v1241_v6 = vpop.f32.mrf.mxu1  ;;  %v329_v25 = vadd.f32 %v4368_v37, %v6055_v35 }
 0x203   :  { %v1242_v23 = vadd.f32 %v1241_v6, %v1093_v62  ;;  %v5884_v43 = vand.u32 4294901760, %v4528_v2  ;;  %v716_v46 = vadd.f32 %v4231_v31, %v546_v14 }
 0x205   :  { %v1326_v13 = vmax.f32 %v1242_v23, 0.0  ;;  %1304 = vmatmul.f32.gmra.mxu1 %v6050_v21  ;;  %v1503_v22 = vsub.f32 %v4528_v2, %v5884_v43  ;;  %v4550_v21 = vpop.f32.mrf.mxu3 }
 0x206   :  { %v1096_v32 = vpop.f32.mrf.mxu0 }
 0x207   :  { %v4541_v24 = vand.u32 4294901760, %v1326_v13  ;;  %v1504_v53 = vand.u32 4294901760, %v1503_v22  ;;  %v1097_v62 = vadd.f32 %v1096_v32, %v908_v56  ;;  %v6056_v56 = vld [vmem:[#allocation31_spill] sm:$0xff] }
 0x209   :  { %6053 = vst [vmem:[#allocation41_spill] sm:$0xff] %v4541_v24  ;;  %1159 = vmatmul.f32.gmra.mxu0 %v6054_v63  ;;  %v4547_v39 = vsub.f32 %v1326_v13, %v4541_v24  ;;  %1505 = vmatmul.f32.gmra.mxu2 %v1504_v53  ;;  %v914_v13 = vadd.f32 %v4211_v4, %v716_v46 }
 0x20a   :  { %1806 = vmatmul.f32.gmra.mxu3 %v4541_v24  ;;  %v1245_v6 = vpop.f32.mrf.mxu1  ;;  %v550_v53 = vadd.f32 %v6056_v56, %v329_v25 }
 0x20b   :  { %v1246_v23 = vadd.f32 %v1245_v6, %v1097_v62  ;;  %v5887_v22 = vand.u32 4294901760, %v4547_v39  ;;  %v6058_v6 = vld [vmem:[#allocation32_spill] sm:$0xff] }
 0x20c   :  { %v337_v4 = vadd.f32 %v4368_v37, %v6058_v6  ;;  %v721_v25 = vadd.f32 %v4254_v10, %v550_v53 }
 0x20d   :  { %v1327_v7 = vmax.f32 %v1246_v23, 0.0  ;;  %1308 = vmatmul.f32.gmra.mxu1 %v6054_v63  ;;  %v1511_v32 = vsub.f32 %v4547_v39, %v5887_v22  ;;  %v4569_v63 = vpop.f32.mrf.mxu2  ;;  %v6060_v22 = vld [vmem:[#allocation33_spill] sm:$0xff] }
 0x20e   :  { %v1100_v43 = vpop.f32.mrf.mxu0  ;;  %v554_v6 = vadd.f32 %v6060_v22, %v337_v4 }
 0x20f   :  { %v4562_v24 = vand.u32 4294901760, %v1327_v7  ;;  %v1512_v35 = vand.u32 4294901760, %v1511_v32  ;;  %v1101_v14 = vadd.f32 %v1100_v43, %v914_v13  ;;  %v4575_v32 = vpop.f32.mrf.mxu3  ;;  %v6059_v43 = vand.u32 4294901760, %v4277_v61 }
 0x211   :  { %6057 = vst [vmem:[#allocation14_spill] sm:$0xff] %v4562_v24  ;;  %1928 = vmatmul.f32.vlgmr.msra.gmra.mxu0 %v4277_v61  ;;  %v4566_v31 = vsub.f32 %v1327_v7, %v4562_v24  ;;  %1513 = vmatmul.f32.gmra.mxu2 %v1512_v35  ;;  %v920_v35 = vadd.f32 %v4236_v19, %v721_v25 }
 0x212   :  { %1810 = vmatmul.f32.gmra.mxu3 %v4562_v24  ;;  %v1249_v62 = vpop.f32.mrf.mxu1  ;;  %v726_v19 = vadd.f32 %v4281_v26, %v554_v6 }
 0x213   :  { %v1250_v46 = vadd.f32 %v1249_v62, %v1101_v14  ;;  %v5890_v23 = vand.u32 4294901760, %v4566_v31  ;;  %v6062_v62 = vld [vmem:[#allocation34_spill] sm:$0xff] }
 0x215   :  { %v1328_v56 = vmax.f32 %v1250_v46, 0.0  ;;  %2122 = vmatmul.f32.vlgmr.msra.gmra.mxu1 %v6059_v43  ;;  %v1519_v13 = vsub.f32 %v4566_v31, %v5890_v23  ;;  %v345_v46 = vadd.f32 %v4368_v37, %v6062_v62  ;;  %v4595_v4 = vpop.f32.mrf.mxu2 }
 0x216   :  { %v1104_v7 = vpop.f32.mrf.mxu0 }
 0x217   :  { %v4584_v24 = vand.u32 4294901760, %v1328_v56  ;;  %v1520_v10 = vand.u32 4294901760, %v1519_v13  ;;  %v1105_v14 = vadd.f32 %v1104_v7, %v920_v35  ;;  %v926_v35 = vadd.f32 %v4261_v3, %v726_v19  ;;  %v6066_v3 = vld [vmem:[#allocation36_spill] sm:$0xff] }
 0x219   :  { %6061 = vst [vmem:[#allocation7_spill] sm:$0xff] %v4584_v24  ;;  %1933 = vmatmul.f32.gmra.mxu0 %v4295_v48  ;;  %v4588_v53 = vsub.f32 %v1328_v56, %v4584_v24  ;;  %1521 = vmatmul.f32.gmra.mxu2 %v1520_v10  ;;  %v6063_v56 = vand.u32 4294901760, %v4295_v48  ;;  %v6064_v10 = vld [vmem:[#allocation35_spill] sm:$0xff]  ;;  %v4614_v48 = vld [vmem:[%s5808_s4] ss:$0 sm:$0xff] }
 0x21a   :  { %1814 = vmatmul.f32.gmra.mxu3 %v4584_v24  ;;  %v1253_v61 = vpop.f32.mrf.mxu1  ;;  %v558_v62 = vadd.f32 %v6064_v10, %v345_v46  ;;  %v353_v46 = vadd.f32 %v4368_v37, %v6066_v3  ;;  %v6068_v3 = vld [vmem:[#allocation38_spill] sm:$0xff] }
 0x21b   :  { %v1254_v25 = vadd.f32 %v1253_v61, %v1105_v14  ;;  %v5891_v22 = vand.u32 4294901760, %v4588_v53 }
 0x21c   :  { %v1751_v43 = vpop.f32.mrf.mxu3  ;;  %v562_v24 = vadd.f32 %v6068_v3, %v353_v46  ;;  %v6069_v46 = vld [vmem:[#allocation39_spill] sm:$0xff] }
 0x21d   :  { %v1329_v13 = vmax.f32 %v1254_v25, 0.0  ;;  %2128 = vmatmul.f32.gmra.mxu1 %v6063_v56  ;;  %v1527_v7 = vsub.f32 %v4588_v53, %v5891_v22  ;;  %v731_v25 = vadd.f32 %v4300_v5, %v558_v62  ;;  %v6067_v22 = vand.u32 4294901760, %v4312_v1 }
 0x21e   :  { %v1108_v23 = vpop.f32.mrf.mxu0 }
 0x21f   :  { %v4604_v26 = vand.u32 4294901760, %v1329_v13  ;;  %v1528_v6 = vand.u32 4294901760, %v1527_v7  ;;  %v1109_v61 = vadd.f32 %v1108_v23, %v926_v35  ;;  %v932_v5 = vadd.f32 %v4285_v34, %v731_v25 }
 0x220   :  { %v361_v34 = vadd.f32 %v4368_v37, %v6069_v46 }
 0x221   :  { %6065 = vst [vmem:[#allocation16_spill] sm:$0xff] %v4604_v26  ;;  %1938 = vmatmul.f32.gmra.mxu0 %v4312_v1  ;;  %v4608_v14 = vsub.f32 %v1329_v13, %v4604_v26  ;;  %1529 = vmatmul.f32.gmra.mxu2 %v1528_v6 }
 0x222   :  { %1818 = vmatmul.f32.gmra.mxu3 %v4604_v26  ;;  %v1257_v19 = vpop.f32.mrf.mxu1 }
 0x223   :  { %v1258_v56 = vadd.f32 %v1257_v19, %v1109_v61  ;;  %v5896_v7 = vand.u32 4294901760, %v4608_v14 }
 0x224   :  { %v1402_v13 = vpop.f32.mrf.mxu2 }
 0x225   :  { %v1755_v10 = vpop.f32.mrf.mxu3  ;;  %v1330_v23 = vmax.f32 %v1258_v56, 0.0  ;;  %v1403_v6 = vadd.f32 %v4614_v48, %v1402_v13  ;;  %2134 = vmatmul.f32.gmra.mxu1 %v6067_v22  ;;  %v1535_v26 = vsub.f32 %v4608_v14, %v5896_v7  ;;  %v736_v22 = vadd.f32 %v4321_v0, %v562_v24 }
 0x226   :  { %v1112_v35 = vpop.f32.mrf.mxu0 }
 0x227   :  { %v4628_v62 = vand.u32 4294901760, %v1330_v23  ;;  %v1536_v61 = vand.u32 4294901760, %v1535_v26  ;;  %v4630_v19 = vadd.f32 %v1751_v43, %v1403_v6  ;;  %v1113_v1 = vadd.f32 %v1112_v35, %v932_v5  ;;  %v6071_v5 = vld [vmem:[#allocation42_spill] sm:$0xff] }
 0x228   :  { %v6070_v35 = vand.u32 4294901760, %v4329_v60  ;;  %v938_v24 = vadd.f32 %v4306_v30, %v736_v22 }
 0x229   :  { %1943 = vmatmul.f32.gmra.mxu0 %v4329_v60  ;;  %v4634_v56 = vsub.f32 %v1330_v23, %v4628_v62  ;;  %1537 = vmatmul.f32.gmra.mxu2 %v1536_v61  ;;  %v566_v61 = vadd.f32 %v6071_v5, %v361_v34 }
 0x22a   :  { %1822 = vmatmul.f32.gmra.mxu3 %v4628_v62  ;;  %v1261_v13 = vpop.f32.mrf.mxu1 }
 0x22b   :  { %v1262_v25 = vadd.f32 %v1261_v13, %v1113_v1  ;;  %v5897_v26 = vand.u32 4294901760, %v4634_v56  ;;  %v741_v22 = vadd.f32 %v4340_v47, %v566_v61 }
 0x22c   :  { %v1410_v43 = vpop.f32.mrf.mxu2 }
 0x22d   :  { %v1759_v6 = vpop.f32.mrf.mxu3  ;;  %v1331_v3 = vmax.f32 %v1262_v25, 0.0  ;;  %v1411_v23 = vadd.f32 %v4614_v48, %v1410_v43  ;;  %2140 = vmatmul.f32.gmra.mxu1 %v6070_v35  ;;  %v1543_v0 = vsub.f32 %v4634_v56, %v5897_v26  ;;  %v6072_v43 = vld [vmem:[#allocation43_spill] sm:$0xff]  ;;  %v944_v47 = vadd.f32 %v4325_v45, %v741_v22 }
 0x22e   :  { %v1116_v7 = vpop.f32.mrf.mxu0  ;;  %v369_v35 = vadd.f32 %v4368_v37, %v6072_v43 }
 0x22f   :  { %v4649_v1 = vand.u32 4294901760, %v1331_v3  ;;  %v1544_v13 = vand.u32 4294901760, %v1543_v0  ;;  %v4651_v46 = vadd.f32 %v1755_v10, %v1411_v23  ;;  %v1117_v60 = vadd.f32 %v1116_v7, %v938_v24 }
 0x230   :  { %v6073_v7 = vand.u32 4294901760, %v4344_v27 }
 0x231   :  { %1948 = vmatmul.f32.gmra.mxu0 %v4344_v27  ;;  %v4655_v25 = vsub.f32 %v1331_v3, %v4649_v1  ;;  %1545 = vmatmul.f32.gmra.mxu2 %v1544_v13  ;;  %v6074_v13 = vld [vmem:[#allocation46_spill] sm:$0xff] }
 0x232   :  { %1826 = vmatmul.f32.gmra.mxu3 %v4649_v1  ;;  %v1265_v30 = vpop.f32.mrf.mxu1  ;;  %v570_v43 = vadd.f32 %v6074_v13, %v369_v35  ;;  %v6075_v35 = vld [vmem:[#allocation47_spill] sm:$0xff] }
 0x233   :  { %v1266_v34 = vadd.f32 %v1265_v30, %v1117_v60  ;;  %v5898_v0 = vand.u32 4294901760, %v4655_v25  ;;  %v377_v45 = vadd.f32 %v4368_v37, %v6075_v35 }
 0x234   :  { %v1418_v10 = vpop.f32.mrf.mxu2 }
 0x235   :  { %v1763_v23 = vpop.f32.mrf.mxu3  ;;  %v1332_v5 = vmax.f32 %v1266_v34, 0.0  ;;  %v1419_v3 = vadd.f32 %v4614_v48, %v1418_v10  ;;  %2146 = vmatmul.f32.gmra.mxu1 %v6073_v7  ;;  %v1551_v24 = vsub.f32 %v4655_v25, %v5898_v0  ;;  %v746_v10 = vadd.f32 %v4363_v40, %v570_v43 }
 0x236   :  { %v1120_v26 = vpop.f32.mrf.mxu0 }
 0x237   :  { %v4670_v61 = vand.u32 4294901760, %v1332_v5  ;;  %v1552_v60 = vand.u32 4294901760, %v1551_v24  ;;  %v4672_v30 = vadd.f32 %v1759_v6, %v1419_v3  ;;  %v1121_v27 = vadd.f32 %v1120_v26, %v944_v47  ;;  %v6077_v47 = vld [vmem:[#allocation49_spill] sm:$0xff] }
 0x238   :  { %v6076_v26 = vand.u32 4294901760, %v4359_v38  ;;  %v950_v43 = vadd.f32 %v4348_v12, %v746_v10 }
 0x239   :  { %1953 = vmatmul.f32.gmra.mxu0 %v4359_v38  ;;  %v4676_v34 = vsub.f32 %v1332_v5, %v4670_v61  ;;  %1553 = vmatmul.f32.gmra.mxu2 %v1552_v60  ;;  %v574_v60 = vadd.f32 %v6077_v47, %v377_v45 }
 0x23a   :  { %1830 = vmatmul.f32.gmra.mxu3 %v4670_v61  ;;  %v1269_v7 = vpop.f32.mrf.mxu1 }
 0x23b   :  { %v1270_v22 = vadd.f32 %v1269_v7, %v1121_v27  ;;  %v5899_v24 = vand.u32 4294901760, %v4676_v34  ;;  %v751_v10 = vadd.f32 %v4392_v52, %v574_v60 }
 0x23c   :  { %v1426_v6 = vpop.f32.mrf.mxu2 }
 0x23d   :  { %v1767_v3 = vpop.f32.mrf.mxu3  ;;  %v1333_v13 = vmax.f32 %v1270_v22, 0.0  ;;  %v1427_v5 = vadd.f32 %v4614_v48, %v1426_v6  ;;  %2152 = vmatmul.f32.gmra.mxu1 %v6076_v26  ;;  %v1559_v40 = vsub.f32 %v4676_v34, %v5899_v24  ;;  %v6078_v6 = vld [vmem:[#allocation51_spill] sm:$0xff]  ;;  %v956_v52 = vadd.f32 %v4373_v55, %v751_v10 }
 0x23e   :  { %v1124_v0 = vpop.f32.mrf.mxu0  ;;  %v385_v26 = vadd.f32 %v4368_v37, %v6078_v6 }
 0x23f   :  { %v4691_v27 = vand.u32 4294901760, %v1333_v13  ;;  %v1560_v7 = vand.u32 4294901760, %v1559_v40  ;;  %v4693_v35 = vadd.f32 %v1763_v23, %v1427_v5  ;;  %v1125_v38 = vadd.f32 %v1124_v0, %v950_v43 }
 0x240   :  { %v6079_v0 = vand.u32 4294901760, %v4384_v42 }
 0x241   :  { %1958 = vmatmul.f32.gmra.mxu0 %v4384_v42  ;;  %v4697_v22 = vsub.f32 %v1333_v13, %v4691_v27  ;;  %1561 = vmatmul.f32.gmra.mxu2 %v1560_v7  ;;  %v6080_v7 = vld [vmem:[#allocation52_spill] sm:$0xff] }
 0x242   :  { %1834 = vmatmul.f32.gmra.mxu3 %v4691_v27  ;;  %v1273_v12 = vpop.f32.mrf.mxu1  ;;  %v578_v6 = vadd.f32 %v6080_v7, %v385_v26  ;;  %v6081_v26 = vld [vmem:[#allocation54_spill] sm:$0xff] }
 0x243   :  { %v1274_v45 = vadd.f32 %v1273_v12, %v1125_v38  ;;  %v5900_v40 = vand.u32 4294901760, %v4697_v22  ;;  %v393_v55 = vadd.f32 %v4368_v37, %v6081_v26 }
 0x244   :  { %v1434_v23 = vpop.f32.mrf.mxu2 }
 0x245   :  { %v1771_v5 = vpop.f32.mrf.mxu3  ;;  %v1334_v47 = vmax.f32 %v1274_v45, 0.0  ;;  %v1435_v13 = vadd.f32 %v4614_v48, %v1434_v23  ;;  %2158 = vmatmul.f32.gmra.mxu1 %v6079_v0  ;;  %v1567_v43 = vsub.f32 %v4697_v22, %v5900_v40  ;;  %v756_v23 = vadd.f32 %v4417_v36, %v578_v6 }
 0x246   :  { %v1128_v24 = vpop.f32.mrf.mxu0 }
 0x247   :  { %v4712_v60 = vand.u32 4294901760, %v1334_v47  ;;  %v1568_v38 = vand.u32 4294901760, %v1567_v43  ;;  %v4714_v12 = vadd.f32 %v1767_v3, %v1435_v13  ;;  %v1129_v42 = vadd.f32 %v1128_v24, %v956_v52  ;;  %v6083_v52 = vld [vmem:[#allocation56_spill] sm:$0xff] }
 0x248   :  { %v6082_v24 = vand.u32 4294901760, %v4406_v58  ;;  %v962_v6 = vadd.f32 %v4398_v9, %v756_v23 }
 0x249   :  { %1963 = vmatmul.f32.gmra.mxu0 %v4406_v58  ;;  %v4718_v45 = vsub.f32 %v1334_v47, %v4712_v60  ;;  %1569 = vmatmul.f32.gmra.mxu2 %v1568_v38  ;;  %v582_v38 = vadd.f32 %v6083_v52, %v393_v55 }
 0x24a   :  { %1838 = vmatmul.f32.gmra.mxu3 %v4712_v60  ;;  %v1277_v0 = vpop.f32.mrf.mxu1 }
 0x24b   :  { %v1278_v10 = vadd.f32 %v1277_v0, %v1129_v42  ;;  %v5901_v43 = vand.u32 4294901760, %v4718_v45  ;;  %v761_v23 = vadd.f32 %v4442_v57, %v582_v38 }
 0x24c   :  { %v1442_v3 = vpop.f32.mrf.mxu2 }
 0x24d   :  { %v1775_v13 = vpop.f32.mrf.mxu3  ;;  %v1335_v7 = vmax.f32 %v1278_v10, 0.0  ;;  %v1443_v47 = vadd.f32 %v4614_v48, %v1442_v3  ;;  %2164 = vmatmul.f32.gmra.mxu1 %v6082_v24  ;;  %v1575_v36 = vsub.f32 %v4718_v45, %v5901_v43  ;;  %v6084_v3 = vld [vmem:[#allocation57_spill] sm:$0xff]  ;;  %v968_v57 = vadd.f32 %v4423_v20, %v761_v23 }
 0x24e   :  { %v1132_v40 = vpop.f32.mrf.mxu0  ;;  %v401_v24 = vadd.f32 %v4368_v37, %v6084_v3 }
 0x24f   :  { %v4733_v42 = vand.u32 4294901760, %v1335_v7  ;;  %v1576_v0 = vand.u32 4294901760, %v1575_v36  ;;  %v4735_v26 = vadd.f32 %v1771_v5, %v1443_v47  ;;  %v1133_v58 = vadd.f32 %v1132_v40, %v962_v6 }
 0x250   :  { %v6085_v40 = vand.u32 4294901760, %v4427_v16 }
 0x251   :  { %1968 = vmatmul.f32.gmra.mxu0 %v4427_v16  ;;  %v4739_v10 = vsub.f32 %v1335_v7, %v4733_v42  ;;  %1577 = vmatmul.f32.gmra.mxu2 %v1576_v0  ;;  %v6086_v0 = vld [vmem:[#allocation60_spill] sm:$0xff] }
 0x252   :  { %1842 = vmatmul.f32.gmra.mxu3 %v4733_v42  ;;  %v1281_v9 = vpop.f32.mrf.mxu1  ;;  %v586_v3 = vadd.f32 %v6086_v0, %v401_v24  ;;  %v6087_v24 = vld [vmem:[#allocation61_spill] sm:$0xff] }
 0x253   :  { %v1282_v55 = vadd.f32 %v1281_v9, %v1133_v58  ;;  %v5902_v36 = vand.u32 4294901760, %v4739_v10  ;;  %v409_v20 = vadd.f32 %v4368_v37, %v6087_v24 }
 0x254   :  { %v1450_v5 = vpop.f32.mrf.mxu2 }
 0x255   :  { %v1779_v47 = vpop.f32.mrf.mxu3  ;;  %v1336_v52 = vmax.f32 %v1282_v55, 0.0  ;;  %v1451_v7 = vadd.f32 %v4614_v48, %v1450_v5  ;;  %2170 = vmatmul.f32.gmra.mxu1 %v6085_v40  ;;  %v1583_v6 = vsub.f32 %v4739_v10, %v5902_v36  ;;  %v766_v5 = vadd.f32 %v4468_v50, %v586_v3 }
 0x256   :  { %v1136_v43 = vpop.f32.mrf.mxu0 }
 0x257   :  { %v4754_v38 = vand.u32 4294901760, %v1336_v52  ;;  %v1584_v58 = vand.u32 4294901760, %v1583_v6  ;;  %v4756_v9 = vadd.f32 %v1775_v13, %v1451_v7  ;;  %v1137_v16 = vadd.f32 %v1136_v43, %v968_v57  ;;  %v6089_v57 = vld [vmem:[#allocation64_spill] sm:$0xff] }
 0x258   :  { %v6088_v43 = vand.u32 4294901760, %v4446_v8  ;;  %v974_v3 = vadd.f32 %v4449_v49, %v766_v5 }
 0x259   :  { %1973 = vmatmul.f32.gmra.mxu0 %v4446_v8  ;;  %v4760_v55 = vsub.f32 %v1336_v52, %v4754_v38  ;;  %1585 = vmatmul.f32.gmra.mxu2 %v1584_v58  ;;  %v590_v58 = vadd.f32 %v6089_v57, %v409_v20 }
 0x25a   :  { %1846 = vmatmul.f32.gmra.mxu3 %v4754_v38  ;;  %v1285_v40 = vpop.f32.mrf.mxu1 }
 0x25b   :  { %v1286_v23 = vadd.f32 %v1285_v40, %v1137_v16  ;;  %v5903_v6 = vand.u32 4294901760, %v4760_v55  ;;  %v771_v5 = vadd.f32 %v4493_v44, %v590_v58 }
 0x25c   :  { %v1458_v13 = vpop.f32.mrf.mxu2 }
 0x25d   :  { %v1783_v7 = vpop.f32.mrf.mxu3  ;;  %v1337_v0 = vmax.f32 %v1286_v23, 0.0  ;;  %v1459_v52 = vadd.f32 %v4614_v48, %v1458_v13  ;;  %2176 = vmatmul.f32.gmra.mxu1 %v6088_v43  ;;  %v1591_v50 = vsub.f32 %v4760_v55, %v5903_v6  ;;  %v6090_v13 = vld [vmem:[#allocation65_spill] sm:$0xff]  ;;  %v980_v44 = vadd.f32 %v4474_v29, %v771_v5 }
 0x25e   :  { %v1140_v36 = vpop.f32.mrf.mxu0  ;;  %v417_v43 = vadd.f32 %v4368_v37, %v6090_v13 }
 0x25f   :  { %v4775_v16 = vand.u32 4294901760, %v1337_v0  ;;  %v1592_v40 = vand.u32 4294901760, %v1591_v50  ;;  %v4777_v24 = vadd.f32 %v1779_v47, %v1459_v52  ;;  %v1141_v8 = vadd.f32 %v1140_v36, %v974_v3 }
 0x260   :  { %v6091_v36 = vand.u32 4294901760, %v4465_v28 }
 0x261   :  { %1978 = vmatmul.f32.gmra.mxu0 %v4465_v28  ;;  %v4781_v23 = vsub.f32 %v1337_v0, %v4775_v16  ;;  %1593 = vmatmul.f32.gmra.mxu2 %v1592_v40  ;;  %v6092_v40 = vld [vmem:[#allocation66_spill] sm:$0xff] }
 0x262   :  { %1850 = vmatmul.f32.gmra.mxu3 %v4775_v16  ;;  %v1289_v49 = vpop.f32.mrf.mxu1  ;;  %v594_v13 = vadd.f32 %v6092_v40, %v417_v43  ;;  %v6094_v43 = vld [vmem:[#allocation67_spill] sm:$0xff] }
 0x263   :  { %v1290_v20 = vadd.f32 %v1289_v49, %v1141_v8  ;;  %v5904_v50 = vand.u32 4294901760, %v4781_v23  ;;  %v425_v29 = vadd.f32 %v4368_v37, %v6094_v43 }
 0x264   :  { %v1466_v47 = vpop.f32.mrf.mxu2 }
 0x265   :  { %v1787_v52 = vpop.f32.mrf.mxu3  ;;  %v1338_v57 = vmax.f32 %v1290_v20, 0.0  ;;  %v1467_v0 = vadd.f32 %v4614_v48, %v1466_v47  ;;  %2182 = vmatmul.f32.gmra.mxu1 %v6091_v36  ;;  %v1599_v3 = vsub.f32 %v4781_v23, %v5904_v50  ;;  %v776_v47 = vadd.f32 %v4518_v18, %v594_v13 }
 0x266   :  { %v1144_v6 = vpop.f32.mrf.mxu0 }
 0x267   :  { %v4796_v58 = vand.u32 4294901760, %v1338_v57  ;;  %v1600_v8 = vand.u32 4294901760, %v1599_v3  ;;  %v4798_v49 = vadd.f32 %v1783_v7, %v1467_v0  ;;  %v1145_v28 = vadd.f32 %v1144_v6, %v980_v44 }
 0x268   :  { %v6095_v6 = vand.u32 4294901760, %v4486_v15  ;;  %v986_v13 = vadd.f32 %v4499_v11, %v776_v47  ;;  %v598_v44 = vadd.f32 %v4200_v41, %v425_v29 }
 0x269   :  { %6093 = vst [vmem:[#allocation48_spill] sm:$0xff] %v4798_v49  ;;  %1983 = vmatmul.f32.gmra.mxu0 %v4486_v15  ;;  %v4802_v20 = vsub.f32 %v1338_v57, %v4796_v58  ;;  %1601 = vmatmul.f32.gmra.mxu2 %v1600_v8  ;;  %v6117_v49 = vand.u32 4294901760, %v4655_v25 }
 0x26a   :  { %1854 = vmatmul.f32.gmra.mxu3 %v4796_v58  ;;  %v1293_v36 = vpop.f32.mrf.mxu1  ;;  %v781_v41 = vadd.f32 %v4543_v33, %v598_v44 }
 0x26b   :  { %v1294_v5 = vadd.f32 %v1293_v36, %v1145_v28  ;;  %v5910_v3 = vand.u32 4294901760, %v4802_v20 }
 0x26c   :  { %v1474_v7 = vpop.f32.mrf.mxu2  ;;  %v992_v33 = vadd.f32 %v4524_v51, %v781_v41 }
 0x26d   :  { %v1791_v0 = vpop.f32.mrf.mxu3  ;;  %v1339_v40 = vmax.f32 %v1294_v5, 0.0  ;;  %v1475_v57 = vadd.f32 %v4614_v48, %v1474_v7  ;;  %2188 = vmatmul.f32.gmra.mxu1 %v6095_v6  ;;  %v1607_v18 = vsub.f32 %v4802_v20, %v5910_v3  ;;  %v433_v5 = vadd.f32 %v4368_v37, %v4207_v17 }
 0x26e   :  { %v1148_v50 = vpop.f32.mrf.mxu0 }
 0x26f   :  { %v4817_v8 = vand.u32 4294901760, %v1339_v40  ;;  %v1608_v28 = vand.u32 4294901760, %v1607_v18  ;;  %v4819_v36 = vadd.f32 %v1787_v52, %v1475_v57  ;;  %v1149_v15 = vadd.f32 %v1148_v50, %v986_v13 }
 0x270   :  { %v6097_v50 = vand.u32 4294901760, %v4507_v54  ;;  %v602_v17 = vadd.f32 %v4220_v59, %v433_v5  ;;  %v6099_v59 = vld [vmem:[#allocation68_spill] sm:$0xff] }
 0x271   :  { %6096 = vst [vmem:[#allocation45_spill] sm:$0xff] %v4819_v36  ;;  %1988 = vmatmul.f32.gmra.mxu0 %v4507_v54  ;;  %v4823_v43 = vsub.f32 %v1339_v40, %v4817_v8  ;;  %1609 = vmatmul.f32.gmra.mxu2 %v1608_v28  ;;  %v441_v51 = vadd.f32 %v4368_v37, %v6099_v59 }
 0x272   :  { %1858 = vmatmul.f32.gmra.mxu3 %v4817_v8  ;;  %v1297_v11 = vpop.f32.mrf.mxu1 }
 0x273   :  { %v1298_v47 = vadd.f32 %v1297_v11, %v1149_v15  ;;  %v5909_v29 = vand.u32 4294901760, %v4823_v43  ;;  %v786_v11 = vadd.f32 %v4569_v63, %v602_v17  ;;  %v6101_v17 = vld [vmem:[#allocation69_spill] sm:$0xff] }
 0x274   :  { %v1482_v52 = vpop.f32.mrf.mxu2  ;;  %v606_v37 = vadd.f32 %v6101_v17, %v441_v51 }
 0x275   :  { %v1795_v7 = vpop.f32.mrf.mxu3  ;;  %v1340_v57 = vmax.f32 %v1298_v47, 0.0  ;;  %v1483_v40 = vadd.f32 %v4614_v48, %v1482_v52  ;;  %2194 = vmatmul.f32.gmra.mxu1 %v6097_v50  ;;  %v1615_v18 = vsub.f32 %v4823_v43, %v5909_v29  ;;  %v6115_v29 = vand.u32 4294901760, %v4634_v56 }
 0x276   :  { %v1152_v6 = vpop.f32.mrf.mxu0 }
 0x277   :  { %v4838_v13 = vand.u32 4294901760, %v1340_v57  ;;  %v1616_v44 = vand.u32 4294901760, %v1615_v18  ;;  %v4840_v28 = vadd.f32 %v1791_v0, %v1483_v40  ;;  %v1153_v54 = vadd.f32 %v1152_v6, %v992_v33 }
 0x278   :  { %v6100_v6 = vand.u32 4294901760, %v4528_v2  ;;  %v998_v18 = vadd.f32 %v4550_v21, %v786_v11 }
 0x279   :  { %6098 = vst [vmem:[#allocation17_spill] sm:$0xff] %v4840_v28  ;;  %1993 = vmatmul.f32.gmra.mxu0 %v4528_v2  ;;  %v4844_v15 = vsub.f32 %v1340_v57, %v4838_v13  ;;  %1617 = vmatmul.f32.gmra.mxu2 %v1616_v44  ;;  %v6119_v28 = vand.u32 4294901760, %v4676_v34 }
 0x27a   :  { %1862 = vmatmul.f32.gmra.mxu3 %v4838_v13  ;;  %v1301_v47 = vpop.f32.mrf.mxu1 }
 0x27b   :  { %v1302_v5 = vadd.f32 %v1301_v47, %v1153_v54  ;;  %v5908_v41 = vand.u32 4294901760, %v4844_v15 }
 0x27c   :  { %v1490_v0 = vpop.f32.mrf.mxu2 }
 0x27d   :  { %v1799_v52 = vpop.f32.mrf.mxu3  ;;  %v1341_v40 = vmax.f32 %v1302_v5, 0.0  ;;  %v1491_v57 = vadd.f32 %v4614_v48, %v1490_v0  ;;  %2200 = vmatmul.f32.gmra.mxu1 %v6100_v6  ;;  %v1623_v63 = vsub.f32 %v4844_v15, %v5908_v41  ;;  %v791_v5 = vadd.f32 %v4595_v4, %v606_v37 }
 0x27e   :  { %v1156_v50 = vpop.f32.mrf.mxu0 }
 0x27f   :  { %v4859_v33 = vand.u32 4294901760, %v1341_v40  ;;  %v1624_v44 = vand.u32 4294901760, %v1623_v63  ;;  %v4861_v54 = vadd.f32 %v1795_v7, %v1491_v57  ;;  %v1157_v2 = vadd.f32 %v1156_v50, %v998_v18 }
 0x280   :  { %v6103_v63 = vand.u32 4294901760, %v4547_v39  ;;  %v1004_v50 = vadd.f32 %v4575_v32, %v791_v5 }
 0x281   :  { %6102 = vst [vmem:[#allocation8_spill] sm:$0xff] %v4861_v54  ;;  %1998 = vmatmul.f32.gmra.mxu0 %v4547_v39  ;;  %v4865_v47 = vsub.f32 %v1341_v40, %v4859_v33  ;;  %1625 = vmatmul.f32.gmra.mxu2 %v1624_v44 }
 0x282   :  { %1866 = vmatmul.f32.gmra.mxu3 %v4859_v33  ;;  %v1305_v59 = vpop.f32.mrf.mxu1 }
 0x283   :  { %v1306_v21 = vadd.f32 %v1305_v59, %v1157_v2  ;;  %v5906_v11 = vand.u32 4294901760, %v4865_v47 }
 0x284   :  { %v1498_v51 = vpop.f32.mrf.mxu2 }
 0x285   :  { %v1803_v0 = vpop.f32.mrf.mxu3  ;;  %v1342_v6 = vmax.f32 %v1306_v21, 0.0  ;;  %v1499_v57 = vadd.f32 %v4614_v48, %v1498_v51  ;;  %2206 = vmatmul.f32.gmra.mxu1 %v6103_v63  ;;  %v1631_v40 = vsub.f32 %v4865_v47, %v5906_v11 }
 0x286   :  { %v1160_v7 = vpop.f32.mrf.mxu0 }
 0x287   :  { %v4877_v18 = vand.u32 4294901760, %v1342_v6  ;;  %v1632_v4 = vand.u32 4294901760, %v1631_v40  ;;  %v4879_v17 = vadd.f32 %v1799_v52, %v1499_v57  ;;  %v1161_v44 = vadd.f32 %v1160_v7, %v1004_v50 }
 0x288   :  { %v6106_v57 = vand.u32 4294901760, %v4566_v31 }
 0x289   :  { %6104 = vst [vmem:[#allocation19_spill] sm:$0xff] %v4877_v18  ;;  %2003 = vmatmul.f32.gmra.mxu0 %v4566_v31  ;;  %v4883_v37 = vsub.f32 %v1342_v6, %v4877_v18  ;;  %1633 = vmatmul.f32.gmra.mxu2 %v1632_v4 }
 0x28a   :  { %6105 = vst [vmem:[#allocation53_spill] sm:$0xff] %v4879_v17  ;;  %1870 = vmatmul.f32.gmra.mxu3 %v4877_v18  ;;  %v1309_v39 = vpop.f32.mrf.mxu1 }
 0x28b   :  { %v1310_v2 = vadd.f32 %v1309_v39, %v1161_v44  ;;  %v5905_v59 = vand.u32 4294901760, %v4883_v37 }
 0x28c   :  { %v1506_v21 = vpop.f32.mrf.mxu2 }
 0x28d   :  { %v1807_v32 = vpop.f32.mrf.mxu3  ;;  %v1343_v5 = vmax.f32 %v1310_v2, 0.0  ;;  %v1507_v51 = vadd.f32 %v4614_v48, %v1506_v21  ;;  %2212 = vmatmul.f32.gmra.mxu1 %v6106_v57  ;;  %v1639_v6 = vsub.f32 %v4883_v37, %v5905_v59 }
 0x28e   :  { %v4888_v52 = vpop.f32.mrf.mxu0 }
 0x28f   :  { %v4895_v7 = vand.u32 4294901760, %v1343_v5  ;;  %v1640_v63 = vand.u32 4294901760, %v1639_v6  ;;  %v4897_v40 = vadd.f32 %v1803_v0, %v1507_v51  ;;  %v6109_v0 = vand.u32 4294901760, %v4588_v53  ;;  %v6111_v6 = vld [vmem:[#allocation70_spill] sm:$0xff] }
 0x291   :  { %6107 = vst [vmem:[#allocation50_spill] sm:$0xff] %v4895_v7  ;;  %2008 = vmatmul.f32.gmra.mxu0 %v4588_v53  ;;  %v4901_v50 = vsub.f32 %v1343_v5, %v4895_v7  ;;  %1641 = vmatmul.f32.gmra.mxu2 %v1640_v63 }
 0x292   :  { %6108 = vst [vmem:[#allocation20_spill] sm:$0xff] %v4897_v40  ;;  %1874 = vmatmul.f32.gmra.mxu3 %v4895_v7  ;;  %v4904_v4 = vpop.f32.mrf.mxu1  ;;  %v6123_v40 = vand.u32 4294901760, %v4718_v45 }
 0x293   :  { %v5907_v31 = vand.u32 4294901760, %v4901_v50 }
 0x294   :  { %v1514_v44 = vpop.f32.mrf.mxu2 }
 0x295   :  { %v1811_v39 = vpop.f32.mrf.mxu3  ;;  %v1515_v2 = vadd.f32 %v4614_v48, %v1514_v44  ;;  %2218 = vmatmul.f32.gmra.mxu1 %v6109_v0  ;;  %v1647_v5 = vsub.f32 %v4901_v50, %v5907_v31  ;;  %v6112_v0 = vand.u32 4294901760, %v4608_v14 }
 0x296   :  { %v4908_v21 = vpop.f32.mrf.mxu0 }
 0x297   :  { %v1648_v51 = vand.u32 4294901760, %v1647_v5  ;;  %v4915_v57 = vadd.f32 %v1807_v32, %v1515_v2  ;;  %v6114_v32 = vld [vmem:[#allocation71_spill] sm:$0xff] }
 0x299   :  { %6110 = vst [vmem:[#allocation9_spill] sm:$0xff] %v4915_v57  ;;  %2013 = vmatmul.f32.gmra.mxu0 %v4608_v14  ;;  %1649 = vmatmul.f32.gmra.mxu2 %v1648_v51  ;;  %v6126_v57 = vand.u32 4294901760, %v4739_v10 }
 0x29a   :  { %2538 = vmatmul.f32.vlgmr.msra.gmra.mxu3 %v6111_v6  ;;  %v4919_v63 = vpop.f32.mrf.mxu1 }
 0x29c   :  { %v1522_v44 = vpop.f32.mrf.mxu2 }
 0x29d   :  { %v1815_v59 = vpop.f32.mrf.mxu3  ;;  %v1523_v11 = vadd.f32 %v4614_v48, %v1522_v44  ;;  %2224 = vmatmul.f32.gmra.mxu1 %v6112_v0 }
 0x29e   :  { %v4922_v53 = vpop.f32.mrf.mxu0 }
 0x29f   :  { %v4926_v31 = vadd.f32 %v1811_v39, %v1523_v11  ;;  %v6116_v11 = vld [vmem:[#allocation72_spill] sm:$0xff] }
 0x2a1   :  { %6113 = vst [vmem:[#allocation22_spill] sm:$0xff] %v4926_v31  ;;  %2018 = vmatmul.f32.gmra.mxu0 %v4634_v56  ;;  %2377 = vmatmul.f32.vlgmr.msra.gmra.mxu2 %v6111_v6  ;;  %v6121_v31 = vand.u32 4294901760, %v4697_v22 }
 0x2a2   :  { %2542 = vmatmul.f32.gmra.mxu3 %v6114_v32  ;;  %v4931_v2 = vpop.f32.mrf.mxu1 }
 0x2a4   :  { %v1530_v5 = vpop.f32.mrf.mxu2 }
 0x2a5   :  { %v1819_v51 = vpop.f32.mrf.mxu3  ;;  %v1531_v41 = vadd.f32 %v4614_v48, %v1530_v5  ;;  %2230 = vmatmul.f32.gmra.mxu1 %v6115_v29  ;;  %v6118_v29 = vld [vmem:[#allocation73_spill] sm:$0xff] }
 0x2a6   :  { %v4934_v44 = vpop.f32.mrf.mxu0 }
 0x2a7   :  { %v4938_v14 = vadd.f32 %v1815_v59, %v1531_v41 }
 0x2a9   :  { %2023 = vmatmul.f32.gmra.mxu0 %v4655_v25  ;;  %2381 = vmatmul.f32.gmra.mxu2 %v6114_v32 }
 0x2aa   :  { %2546 = vmatmul.f32.gmra.mxu3 %v6116_v11  ;;  %v4943_v39 = vpop.f32.mrf.mxu1 }
 0x2ac   :  { %v1538_v6 = vpop.f32.mrf.mxu2 }
 0x2ad   :  { %v1823_v0 = vpop.f32.mrf.mxu3  ;;  %v1539_v3 = vadd.f32 %v4614_v48, %v1538_v6  ;;  %2236 = vmatmul.f32.gmra.mxu1 %v6117_v49  ;;  %v6120_v49 = vld [vmem:[#allocation74_spill] sm:$0xff] }
 0x2ae   :  { %v4946_v5 = vpop.f32.mrf.mxu0 }
 0x2af   :  { %v4950_v56 = vadd.f32 %v1819_v51, %v1539_v3 }
 0x2b1   :  { %2028 = vmatmul.f32.gmra.mxu0 %v4676_v34  ;;  %2385 = vmatmul.f32.gmra.mxu2 %v6116_v11 }
 0x2b2   :  { %2550 = vmatmul.f32.gmra.mxu3 %v6118_v29  ;;  %v4955_v41 = vpop.f32.mrf.mxu1 }
 0x2b4   :  { %v1546_v59 = vpop.f32.mrf.mxu2 }
 0x2b5   :  { %v1827_v32 = vpop.f32.mrf.mxu3  ;;  %v1547_v36 = vadd.f32 %v4614_v48, %v1546_v59  ;;  %2242 = vmatmul.f32.gmra.mxu1 %v6119_v28 }
 0x2b6   :  { %v4958_v6 = vpop.f32.mrf.mxu0 }
 0x2b7   :  { %v4962_v25 = vadd.f32 %v1823_v0, %v1547_v36  ;;  %v6122_v36 = vld [vmem:[#allocation75_spill] sm:$0xff] }
 0x2b9   :  { %2033 = vmatmul.f32.gmra.mxu0 %v4697_v22  ;;  %2389 = vmatmul.f32.gmra.mxu2 %v6118_v29 }
 0x2ba   :  { %2554 = vmatmul.f32.gmra.mxu3 %v6120_v49  ;;  %v4967_v3 = vpop.f32.mrf.mxu1 }
 0x2bc   :  { %v1554_v51 = vpop.f32.mrf.mxu2 }
 0x2bd   :  { %v1831_v11 = vpop.f32.mrf.mxu3  ;;  %v1555_v54 = vadd.f32 %v4614_v48, %v1554_v51  ;;  %2248 = vmatmul.f32.gmra.mxu1 %v6121_v31 }
 0x2be   :  { %v4970_v59 = vpop.f32.mrf.mxu0 }
 0x2bf   :  { %v4974_v34 = vadd.f32 %v1827_v32, %v1555_v54  ;;  %v6124_v54 = vld [vmem:[#allocation76_spill] sm:$0xff] }
 0x2c1   :  { %2038 = vmatmul.f32.gmra.mxu0 %v4718_v45  ;;  %2393 = vmatmul.f32.gmra.mxu2 %v6120_v49 }
 0x2c2   :  { %2558 = vmatmul.f32.gmra.mxu3 %v6122_v36  ;;  %v4979_v28 = vpop.f32.mrf.mxu1 }
 0x2c4   :  { %v1562_v0 = vpop.f32.mrf.mxu2 }
 0x2c5   :  { %v1835_v29 = vpop.f32.mrf.mxu3  ;;  %v1563_v17 = vadd.f32 %v4614_v48, %v1562_v0  ;;  %2254 = vmatmul.f32.gmra.mxu1 %v6123_v40 }
 0x2c6   :  { %v4982_v51 = vpop.f32.mrf.mxu0 }
 0x2c7   :  { %v4986_v22 = vadd.f32 %v1831_v11, %v1563_v17  ;;  %v6127_v17 = vld [vmem:[#allocation10_spill] sm:$0xff] }
 0x2c9   :  { %2043 = vmatmul.f32.gmra.mxu0 %v4739_v10  ;;  %2397 = vmatmul.f32.gmra.mxu2 %v6122_v36 }
 0x2ca   :  { %2562 = vmatmul.f32.gmra.mxu3 %v6124_v54  ;;  %v4991_v31 = vpop.f32.mrf.mxu1 }
 0x2cc   :  { %v1570_v32 = vpop.f32.mrf.mxu2 }
 0x2cd   :  { %v1839_v49 = vpop.f32.mrf.mxu3  ;;  %v1571_v7 = vadd.f32 %v4614_v48, %v1570_v32  ;;  %2260 = vmatmul.f32.gmra.mxu1 %v6126_v57 }
 0x2ce   :  { %v4994_v0 = vpop.f32.mrf.mxu0 }
 0x2cf   :  { %6125 = vst [vmem:[#allocation58_spill] sm:$0xff] %v4994_v0  ;;  %v4998_v45 = vadd.f32 %v1835_v29, %v1571_v7  ;;  %v6130_v0 = vand.u32 4294901760, %v4760_v55  ;;  %v6131_v7 = vld [vmem:[#allocation40_spill] sm:$0xff] }
 0x2d1   :  { %2048 = vmatmul.f32.gmra.mxu0 %v4760_v55  ;;  %2401 = vmatmul.f32.gmra.mxu2 %v6124_v54 }
 0x2d2   :  { %2566 = vmatmul.f32.gmra.mxu3 %v6127_v17  ;;  %v5003_v40 = vpop.f32.mrf.mxu1 }
 0x2d3   :  { %6128 = vst [vmem:[#allocation55_spill] sm:$0xff] %v5003_v40 }
 0x2d4   :  { %v1578_v11 = vpop.f32.mrf.mxu2 }
 0x2d5   :  { %v1843_v36 = vpop.f32.mrf.mxu3  ;;  %v1579_v18 = vadd.f32 %v4614_v48, %v1578_v11  ;;  %2266 = vmatmul.f32.gmra.mxu1 %v6130_v0 }
 0x2d6   :  { %v5006_v32 = vpop.f32.mrf.mxu0 }
 0x2d7   :  { %6129 = vst [vmem:[#allocation23_spill] sm:$0xff] %v5006_v32  ;;  %v5010_v10 = vadd.f32 %v1839_v49, %v1579_v18  ;;  %v6134_v32 = vand.u32 4294901760, %v4781_v23  ;;  %v6135_v18 = vld [vmem:[#allocation37_spill] sm:$0xff] }
 0x2d9   :  { %2053 = vmatmul.f32.gmra.mxu0 %v4781_v23  ;;  %2405 = vmatmul.f32.gmra.mxu2 %v6127_v17 }
 0x2da   :  { %2570 = vmatmul.f32.gmra.mxu3 %v6131_v7  ;;  %v5015_v57 = vpop.f32.mrf.mxu1 }
 0x2db   :  { %6132 = vst [vmem:[#allocation12_spill] sm:$0xff] %v5015_v57 }
 0x2dc   :  { %v1586_v29 = vpop.f32.mrf.mxu2 }
 0x2dd   :  { %v1847_v54 = vpop.f32.mrf.mxu3  ;;  %v1587_v40 = vadd.f32 %v4614_v48, %v1586_v29  ;;  %2272 = vmatmul.f32.gmra.mxu1 %v6134_v32 }
 0x2de   :  { %v5018_v11 = vpop.f32.mrf.mxu0 }
 0x2df   :  { %6133 = vst [vmem:[#allocation24_spill] sm:$0xff] %v5018_v11  ;;  %v5022_v55 = vadd.f32 %v1843_v36, %v1587_v40  ;;  %v6138_v11 = vand.u32 4294901760, %v4802_v20  ;;  %v6139_v40 = vld [vmem:[#allocation11_spill] sm:$0xff] }
 0x2e1   :  { %2058 = vmatmul.f32.gmra.mxu0 %v4802_v20  ;;  %2409 = vmatmul.f32.gmra.mxu2 %v6131_v7 }
 0x2e2   :  { %2574 = vmatmul.f32.gmra.mxu3 %v6135_v18  ;;  %v5027_v49 = vpop.f32.mrf.mxu1 }
 0x2e3   :  { %6136 = vst [vmem:[#allocation62_spill] sm:$0xff] %v5027_v49 }
 0x2e4   :  { %v1594_v0 = vpop.f32.mrf.mxu2 }
 0x2e5   :  { %v1851_v17 = vpop.f32.mrf.mxu3  ;;  %v1595_v57 = vadd.f32 %v4614_v48, %v1594_v0  ;;  %2278 = vmatmul.f32.gmra.mxu1 %v6138_v11 }
 0x2e6   :  { %v5030_v29 = vpop.f32.mrf.mxu0 }
 0x2e7   :  { %6137 = vst [vmem:[#allocation59_spill] sm:$0xff] %v5030_v29  ;;  %v5034_v23 = vadd.f32 %v1847_v54, %v1595_v57  ;;  %v6142_v29 = vand.u32 4294901760, %v4823_v43  ;;  %v6143_v57 = vld [vmem:[#allocation6_spill] sm:$0xff] }
 0x2e9   :  { %2063 = vmatmul.f32.gmra.mxu0 %v4823_v43  ;;  %2413 = vmatmul.f32.gmra.mxu2 %v6135_v18 }
 0x2ea   :  { %2578 = vmatmul.f32.gmra.mxu3 %v6139_v40  ;;  %v5039_v36 = vpop.f32.mrf.mxu1 }
 0x2eb   :  { %6140 = vst [vmem:[#allocation25_spill] sm:$0xff] %v5039_v36 }
 0x2ec   :  { %v1602_v32 = vpop.f32.mrf.mxu2 }
 0x2ed   :  { %v1855_v7 = vpop.f32.mrf.mxu3  ;;  %v1603_v49 = vadd.f32 %v4614_v48, %v1602_v32  ;;  %2284 = vmatmul.f32.gmra.mxu1 %v6142_v29 }
 0x2ee   :  { %v5042_v0 = vpop.f32.mrf.mxu0 }
 0x2ef   :  { %6141 = vst [vmem:[#allocation15_spill] sm:$0xff] %v5042_v0  ;;  %v5046_v20 = vadd.f32 %v1851_v17, %v1603_v49  ;;  %v6146_v0 = vand.u32 4294901760, %v4844_v15  ;;  %v6148_v49 = vld [vmem:[#allocation13_spill] sm:$0xff] }
 0x2f1   :  { %2068 = vmatmul.f32.gmra.mxu0 %v4844_v15  ;;  %2417 = vmatmul.f32.gmra.mxu2 %v6139_v40 }
 0x2f2   :  { %2582 = vmatmul.f32.gmra.mxu3 %v6143_v57  ;;  %v5051_v54 = vpop.f32.mrf.mxu1 }
 0x2f3   :  { %6144 = vst [vmem:[#allocation26_spill] sm:$0xff] %v5051_v54 }
 0x2f4   :  { %v1610_v11 = vpop.f32.mrf.mxu2 }
 0x2f5   :  { %v1859_v18 = vpop.f32.mrf.mxu3  ;;  %v1611_v36 = vadd.f32 %v4614_v48, %v1610_v11  ;;  %2290 = vmatmul.f32.gmra.mxu1 %v6146_v0 }
 0x2f6   :  { %v5054_v32 = vpop.f32.mrf.mxu0 }
 0x2f7   :  { %6145 = vst [vmem:[#allocation63_spill] sm:$0xff] %v5054_v32  ;;  %v5058_v43 = vadd.f32 %v1855_v7, %v1611_v36  ;;  %v6151_v32 = vand.u32 4294901760, %v4865_v47  ;;  %v6153_v36 = vld [vmem:[#allocation44_spill] sm:$0xff] }
 0x2f9   :  { %6147 = vst [vmem:[#allocation27_spill] sm:$0xff] %v5058_v43  ;;  %2073 = vmatmul.f32.gmra.mxu0 %v4865_v47  ;;  %2421 = vmatmul.f32.gmra.mxu2 %v6143_v57 }
 0x2fa   :  { %2586 = vmatmul.f32.gmra.mxu3 %v6148_v49  ;;  %v5063_v17 = vpop.f32.mrf.mxu1 }
 0x2fb   :  { %6149 = vst [vmem:[#allocation18_spill] sm:$0xff] %v5063_v17  ;;  %v6156_v17 = vand.u32 4294901760, %v4883_v37 }
 0x2fc   :  { %v1618_v29 = vpop.f32.mrf.mxu2 }
 0x2fd   :  { %v1863_v40 = vpop.f32.mrf.mxu3  ;;  %v1619_v54 = vadd.f32 %v4614_v48, %v1618_v29  ;;  %2296 = vmatmul.f32.gmra.mxu1 %v6151_v32 }
 0x2fe   :  { %v5066_v11 = vpop.f32.mrf.mxu0 }
 0x2ff   :  { %6150 = vst [vmem:[#allocation28_spill] sm:$0xff] %v5066_v11  ;;  %v5070_v15 = vadd.f32 %v1859_v18, %v1619_v54  ;;  %v6158_v54 = vld [vmem:[#allocation41_spill] sm:$0xff] }
 0x301   :  { %6152 = vst [vmem:[#allocation29_spill] sm:$0xff] %v5070_v15  ;;  %2078 = vmatmul.f32.gmra.mxu0 %v4883_v37  ;;  %2425 = vmatmul.f32.gmra.mxu2 %v6148_v49 }
 0x302   :  { %2590 = vmatmul.f32.gmra.mxu3 %v6153_v36  ;;  %v5075_v7 = vpop.f32.mrf.mxu1 }
 0x303   :  { %6154 = vst [vmem:[#allocation21_spill] sm:$0xff] %v5075_v7 }
 0x304   :  { %v1626_v0 = vpop.f32.mrf.mxu2 }
 0x305   :  { %v1867_v57 = vpop.f32.mrf.mxu3  ;;  %v1627_v43 = vadd.f32 %v4614_v48, %v1626_v0  ;;  %2302 = vmatmul.f32.gmra.mxu1 %v6156_v17  ;;  %v6161_v17 = vld [vmem:[#allocation14_spill] sm:$0xff] }
 0x306   :  { %v5078_v29 = vpop.f32.mrf.mxu0 }
 0x307   :  { %6155 = vst [vmem:[#allocation30_spill] sm:$0xff] %v5078_v29  ;;  %v5082_v47 = vadd.f32 %v1863_v40, %v1627_v43  ;;  %v6160_v29 = vand.u32 4294901760, %v4901_v50 }
 0x309   :  { %6157 = vst [vmem:[#allocation31_spill] sm:$0xff] %v5082_v47  ;;  %2083 = vmatmul.f32.gmra.mxu0 %v4901_v50  ;;  %2429 = vmatmul.f32.gmra.mxu2 %v6153_v36 }
 0x30a   :  { %2594 = vmatmul.f32.gmra.mxu3 %v6158_v54  ;;  %v5087_v18 = vpop.f32.mrf.mxu1 }
 0x30b   :  { %6159 = vst [vmem:[#allocation32_spill] sm:$0xff] %v5087_v18 }
 0x30c   :  { %v1634_v32 = vpop.f32.mrf.mxu2 }
 0x30d   :  { %v1871_v49 = vpop.f32.mrf.mxu3  ;;  %v1635_v15 = vadd.f32 %v4614_v48, %v1634_v32  ;;  %2308 = vmatmul.f32.gmra.mxu1 %v6160_v29 }
 0x30e   :  { %v2009_v0 = vpop.f32.mrf.mxu0 }
 0x30f   :  { %v2010_v37 = vadd.f32 %v2009_v0, %v4938_v14  ;;  %v5093_v43 = vadd.f32 %v1867_v57, %v1635_v15  ;;  %v6162_v14 = vld [vmem:[#allocation7_spill] sm:$0xff] }
 0x311   :  { %2433 = vmatmul.f32.gmra.mxu2 %v6158_v54 }
 0x312   :  { %2598 = vmatmul.f32.gmra.mxu3 %v6161_v17  ;;  %v2219_v40 = vpop.f32.mrf.mxu1 }
 0x313   :  { %v5097_v36 = vadd.f32 %v2219_v40, %v2010_v37 }
 0x314   :  { %v1642_v47 = vpop.f32.mrf.mxu2 }
 0x315   :  { %v1875_v18 = vpop.f32.mrf.mxu3  ;;  %v1643_v7 = vadd.f32 %v4614_v48, %v1642_v47 }
 0x316   :  { %v2014_v32 = vpop.f32.mrf.mxu0 }
 0x317   :  { %v2015_v11 = vadd.f32 %v2014_v32, %v4950_v56  ;;  %v5101_v50 = vadd.f32 %v1871_v49, %v1643_v7  ;;  %v1930_v56 = vadd.f32 %v4888_v52, %v4630_v19  ;;  %v6163_v7 = vld [vmem:[#allocation16_spill] sm:$0xff]  ;;  %v1935_v19 = vadd.f32 %v4908_v21, %v4651_v46 }
 0x318   :  { %v1940_v46 = vadd.f32 %v4922_v53, %v4672_v30  ;;  %v1945_v30 = vadd.f32 %v4934_v44, %v4693_v35  ;;  %v1950_v35 = vadd.f32 %v4946_v5, %v4714_v12  ;;  %v1955_v12 = vadd.f32 %v4958_v6, %v4735_v26 }
 0x319   :  { %2437 = vmatmul.f32.gmra.mxu2 %v6161_v17  ;;  %v1960_v26 = vadd.f32 %v4970_v59, %v4756_v9  ;;  %v1965_v9 = vadd.f32 %v4982_v51, %v4777_v24 }
 0x31a   :  { %2602 = vmatmul.f32.gmra.mxu3 %v6162_v14  ;;  %v2225_v15 = vpop.f32.mrf.mxu1  ;;  %v2142_v53 = vadd.f32 %v4943_v39, %v1945_v30  ;;  %v2148_v44 = vadd.f32 %v4955_v41, %v1950_v35  ;;  %v2154_v5 = vadd.f32 %v4967_v3, %v1955_v12  ;;  %v6170_v12 = vld [vmem:[#allocation21_spill] sm:$0xff] }
 0x31b   :  { %v5105_v57 = vadd.f32 %v2225_v15, %v2015_v11  ;;  %v2124_v11 = vadd.f32 %v4904_v4, %v1930_v56  ;;  %v2130_v4 = vadd.f32 %v4919_v63, %v1935_v19  ;;  %v2136_v63 = vadd.f32 %v4931_v2, %v1940_v46 }
 0x31c   :  { %v1650_v29 = vpop.f32.mrf.mxu2  ;;  %v2160_v6 = vadd.f32 %v4979_v28, %v1960_v26  ;;  %v2166_v59 = vadd.f32 %v4991_v31, %v1965_v9  ;;  %v6177_v9 = vld [vmem:[#allocation8_spill] sm:$0xff] }
 0x31d   :  { %v2539_v54 = vpop.f32.mrf.mxu3  ;;  %v1651_v0 = vadd.f32 %v4614_v48, %v1650_v29 }
 0x31e   :  { %v2019_v37 = vpop.f32.mrf.mxu0 }
 0x31f   :  { %v2020_v40 = vadd.f32 %v2019_v37, %v4962_v25  ;;  %v5109_v47 = vadd.f32 %v1875_v18, %v1651_v0 }
 0x321   :  { %2441 = vmatmul.f32.gmra.mxu2 %v6162_v14 }
 0x322   :  { %2606 = vmatmul.f32.gmra.mxu3 %v6163_v7  ;;  %v2231_v49 = vpop.f32.mrf.mxu1 }
 0x323   :  { %v5116_v17 = vadd.f32 %v2231_v49, %v2020_v40 }
 0x324   :  { %v2378_v32 = vpop.f32.mrf.mxu2 }
 0x325   :  { %v2543_v15 = vpop.f32.mrf.mxu3  ;;  %v2379_v29 = vadd.f32 %v2378_v32, %v2124_v11 }
 0x326   :  { %v2024_v48 = vpop.f32.mrf.mxu0 }
 0x327   :  { %v2025_v25 = vadd.f32 %v2024_v48, %v4974_v34  ;;  %v5119_v18 = vadd.f32 %v2539_v54, %v2379_v29 }
 0x329   :  { %2445 = vmatmul.f32.gmra.mxu2 %v6163_v7 }
 0x32a   :  { %2610 = vmatmul.f32.gmra.mxu3 %v4628_v62  ;;  %v2237_v52 = vpop.f32.mrf.mxu1 }
 0x32b   :  { %v5126_v14 = vadd.f32 %v2237_v52, %v2025_v25 }
 0x32c   :  { %v2382_v0 = vpop.f32.mrf.mxu2 }
 0x32d   :  { %v2547_v37 = vpop.f32.mrf.mxu3  ;;  %v2383_v56 = vadd.f32 %v2382_v0, %v2130_v4 }
 0x32e   :  { %v2029_v40 = vpop.f32.mrf.mxu0 }
 0x32f   :  { %v2030_v34 = vadd.f32 %v2029_v40, %v4986_v22  ;;  %v5129_v54 = vadd.f32 %v2543_v15, %v2383_v56 }
 0x331   :  { %2449 = vmatmul.f32.gmra.mxu2 %v4628_v62 }
 0x332   :  { %2614 = vmatmul.f32.gmra.mxu3 %v4649_v1  ;;  %v2243_v21 = vpop.f32.mrf.mxu1 }
 0x333   :  { %v5136_v7 = vadd.f32 %v2243_v21, %v2030_v34 }
 0x334   :  { %v2386_v49 = vpop.f32.mrf.mxu2 }
 0x335   :  { %v2551_v11 = vpop.f32.mrf.mxu3  ;;  %v2387_v48 = vadd.f32 %v2386_v49, %v2136_v63 }
 0x336   :  { %v2034_v32 = vpop.f32.mrf.mxu0 }
 0x337   :  { %v2035_v22 = vadd.f32 %v2034_v32, %v4998_v45  ;;  %v5139_v15 = vadd.f32 %v2547_v37, %v2387_v48 }
 0x339   :  { %2453 = vmatmul.f32.gmra.mxu2 %v4649_v1 }
 0x33a   :  { %2618 = vmatmul.f32.gmra.mxu3 %v4670_v61  ;;  %v2249_v62 = vpop.f32.mrf.mxu1 }
 0x33b   :  { %v5146_v2 = vadd.f32 %v2249_v62, %v2035_v22 }
 0x33c   :  { %v2390_v29 = vpop.f32.mrf.mxu2 }
 0x33d   :  { %v2555_v25 = vpop.f32.mrf.mxu3  ;;  %v2391_v52 = vadd.f32 %v2390_v29, %v2142_v53 }
 0x33e   :  { %v2039_v19 = vpop.f32.mrf.mxu0 }
 0x33f   :  { %v2040_v45 = vadd.f32 %v2039_v19, %v5010_v10  ;;  %v5149_v4 = vadd.f32 %v2551_v11, %v2391_v52 }
 0x341   :  { %2457 = vmatmul.f32.gmra.mxu2 %v4670_v61 }
 0x342   :  { %2622 = vmatmul.f32.gmra.mxu3 %v4691_v27  ;;  %v2255_v1 = vpop.f32.mrf.mxu1 }
 0x343   :  { %v5156_v39 = vadd.f32 %v2255_v1, %v2040_v45  ;;  %v6164_v1 = vld [vmem:[#allocation19_spill] sm:$0xff] }
 0x344   :  { %v2394_v0 = vpop.f32.mrf.mxu2 }
 0x345   :  { %v2559_v37 = vpop.f32.mrf.mxu3  ;;  %v2395_v56 = vadd.f32 %v2394_v0, %v2148_v44  ;;  %v6165_v0 = vld [vmem:[#allocation9_spill] sm:$0xff] }
 0x346   :  { %v2044_v40 = vpop.f32.mrf.mxu0 }
 0x347   :  { %v2045_v10 = vadd.f32 %v2044_v40, %v5022_v55  ;;  %v5159_v34 = vadd.f32 %v2555_v25, %v2395_v56  ;;  %v6168_v56 = vld [vmem:[#allocation20_spill] sm:$0xff] }
 0x349   :  { %2461 = vmatmul.f32.gmra.mxu2 %v4691_v27 }
 0x34a   :  { %2626 = vmatmul.f32.gmra.mxu3 %v4712_v60  ;;  %v2261_v61 = vpop.f32.mrf.mxu1 }
 0x34b   :  { %v5166_v41 = vadd.f32 %v2261_v61, %v2045_v10  ;;  %v6169_v10 = vld [vmem:[#allocation63_spill] sm:$0xff] }
 0x34c   :  { %v2398_v46 = vpop.f32.mrf.mxu2 }
 0x34d   :  { %v2563_v21 = vpop.f32.mrf.mxu3  ;;  %v2399_v49 = vadd.f32 %v2398_v46, %v2154_v5 }
 0x34e   :  { %v2049_v63 = vpop.f32.mrf.mxu0 }
 0x34f   :  { %v2050_v55 = vadd.f32 %v2049_v63, %v5034_v23  ;;  %v5169_v11 = vadd.f32 %v2559_v37, %v2399_v49  ;;  %v6166_v37 = vld [vmem:[#allocation28_spill] sm:$0xff]  ;;  %v6172_v49 = vld [vmem:[#allocation53_spill] sm:$0xff] }
 0x350   :  { %v2000_v40 = vadd.f32 %v6166_v37, %v6165_v0 }
 0x351   :  { %2465 = vmatmul.f32.gmra.mxu2 %v4712_v60 }
 0x352   :  { %2630 = vmatmul.f32.gmra.mxu3 %v4733_v42  ;;  %v2267_v27 = vpop.f32.mrf.mxu1  ;;  %v2208_v61 = vadd.f32 %v6170_v12, %v2000_v40  ;;  %v6180_v40 = vld [vmem:[#allocation25_spill] sm:$0xff]  ;;  %v6182_v12 = vld [vmem:[#allocation24_spill] sm:$0xff] }
 0x353   :  { %v5176_v3 = vadd.f32 %v2267_v27, %v2050_v55  ;;  %v6173_v55 = vld [vmem:[#allocation15_spill] sm:$0xff] }
 0x354   :  { %v2402_v32 = vpop.f32.mrf.mxu2  ;;  %v1990_v26 = vadd.f32 %v6173_v55, %v6172_v49  ;;  %v6183_v49 = vld [vmem:[#allocation62_spill] sm:$0xff] }
 0x355   :  { %v2567_v48 = vpop.f32.mrf.mxu3  ;;  %v2403_v30 = vadd.f32 %v2402_v32, %v2160_v6  ;;  %v6174_v32 = vld [vmem:[#allocation26_spill] sm:$0xff] }
 0x356   :  { %v2054_v22 = vpop.f32.mrf.mxu0 }
 0x357   :  { %v2055_v23 = vadd.f32 %v2054_v22, %v5046_v20  ;;  %v5179_v62 = vadd.f32 %v2563_v21, %v2403_v30  ;;  %v6171_v21 = vld [vmem:[#allocation18_spill] sm:$0xff] }
 0x358   :  { %v6175_v22 = vld [vmem:[#allocation22_spill] sm:$0xff] }
 0x359   :  { %2469 = vmatmul.f32.gmra.mxu2 %v4733_v42  ;;  %v6176_v30 = vld [vmem:[#allocation30_spill] sm:$0xff] }
 0x35a   :  { %2634 = vmatmul.f32.gmra.mxu3 %v4754_v38  ;;  %v2273_v60 = vpop.f32.mrf.mxu1 }
 0x35b   :  { %v5186_v28 = vadd.f32 %v2273_v60, %v2055_v23  ;;  %v2005_v23 = vadd.f32 %v6176_v30, %v6175_v22  ;;  %v6178_v60 = vld [vmem:[#allocation59_spill] sm:$0xff] }
 0x35c   :  { %v2406_v53 = vpop.f32.mrf.mxu2 }
 0x35d   :  { %v5188_v29 = vpop.f32.mrf.mxu3  ;;  %v2407_v25 = vadd.f32 %v2406_v53, %v2166_v59  ;;  %v1985_v59 = vadd.f32 %v6178_v60, %v6177_v9  ;;  %v6187_v60 = vld [vmem:[#allocation48_spill] sm:$0xff] }
 0x35f   :  { %v5190_v19 = vadd.f32 %v2567_v48, %v2407_v25  ;;  %v2196_v48 = vadd.f32 %v6174_v32, %v1990_v26  ;;  %v6179_v25 = vld [vmem:[#allocation32_spill] sm:$0xff]  ;;  %v6184_v26 = vld [vmem:[#allocation45_spill] sm:$0xff] }
 0x361   :  { %2473 = vmatmul.f32.gmra.mxu2 %v4754_v38 }
 0x362   :  { %2638 = vmatmul.f32.gmra.mxu3 %v4775_v16 }
 0x364   :  { %v5194_v24 = vpop.f32.mrf.mxu2 }
 0x365   :  { %v5196_v42 = vpop.f32.mrf.mxu3 }
 0x369   :  { %2477 = vmatmul.f32.gmra.mxu2 %v4775_v16 }
 0x36a   :  { %2642 = vmatmul.f32.gmra.mxu3 %v4796_v58 }
 0x36c   :  { %v5200_v51 = vpop.f32.mrf.mxu2 }
 0x36d   :  { %v5202_v31 = vpop.f32.mrf.mxu3 }
 0x371   :  { %2481 = vmatmul.f32.gmra.mxu2 %v4796_v58 }
 0x372   :  { %2646 = vmatmul.f32.gmra.mxu3 %v4817_v8 }
 0x374   :  { %v2418_v20 = vpop.f32.mrf.mxu2 }
 0x375   :  { %v2583_v38 = vpop.f32.mrf.mxu3 }
 0x379   :  { %2485 = vmatmul.f32.gmra.mxu2 %v4817_v8  ;;  %v6167_v8 = vld [vmem:[#allocation50_spill] sm:$0xff] }
 0x37a   :  { %2650 = vmatmul.f32.gmra.mxu3 %v4838_v13 }
 0x37c   :  { %v2422_v52 = vpop.f32.mrf.mxu2 }
 0x37d   :  { %v2587_v45 = vpop.f32.mrf.mxu3 }
 0x381   :  { %2489 = vmatmul.f32.gmra.mxu2 %v4838_v13  ;;  %v1995_v13 = vadd.f32 %v6169_v10, %v6168_v56  ;;  %v2190_v56 = vadd.f32 %v6180_v40, %v1985_v59  ;;  %v6188_v59 = vld [vmem:[#allocation58_spill] sm:$0xff] }
 0x382   :  { %2654 = vmatmul.f32.gmra.mxu3 %v4859_v33 }
 0x384   :  { %v2426_v16 = vpop.f32.mrf.mxu2 }
 0x385   :  { %v2591_v35 = vpop.f32.mrf.mxu3  ;;  %v2427_v53 = vadd.f32 %v2426_v16, %v2196_v48 }
 0x389   :  { %2493 = vmatmul.f32.gmra.mxu2 %v4859_v33  ;;  %v2202_v33 = vadd.f32 %v6171_v21, %v1995_v13  ;;  %v6181_v13 = vld [vmem:[#allocation17_spill] sm:$0xff]  ;;  %v2588_v21 = vadd.f32 %v2587_v45, %v2427_v53  ;;  %v6186_v45 = vld [vmem:[#allocation12_spill] sm:$0xff]  ;;  %v1970_v53 = vadd.f32 %v6188_v59, %v6187_v60 }
 0x38a   :  { %2658 = vmatmul.f32.gmra.mxu3 %v6164_v1 }
 0x38b   :  { %v2678_v48 = vmax.f32 %v2588_v21, 0.0 }
 0x38c   :  { %v2430_v58 = vpop.f32.mrf.mxu2 }
 0x38d   :  { %v2595_v44 = vpop.f32.mrf.mxu3  ;;  %v2431_v27 = vadd.f32 %v2430_v58, %v2202_v33 }
 0x38f   :  { %v2592_v0 = vadd.f32 %v2591_v35, %v2431_v27  ;;  %v6185_v35 = vld [vmem:[#allocation23_spill] sm:$0xff] }
 0x390   :  { %v1975_v27 = vadd.f32 %v6185_v35, %v6184_v26 }
 0x391   :  { %2497 = vmatmul.f32.gmra.mxu2 %v6164_v1  ;;  %v2214_v1 = vadd.f32 %v6179_v25, %v2005_v23  ;;  %v2679_v33 = vmax.f32 %v2592_v0, 0.0 }
 0x392   :  { %2662 = vmatmul.f32.gmra.mxu3 %v6167_v8  ;;  %v2178_v23 = vadd.f32 %v6186_v45, %v1975_v27 }
 0x393   :  { %v5237_v22 = vand.u32 4294901760, %v2679_v33 }
 0x394   :  { %v2434_v5 = vpop.f32.mrf.mxu2 }
 0x395   :  { %v2599_v46 = vpop.f32.mrf.mxu3  ;;  %v2435_v63 = vadd.f32 %v2434_v5, %v2208_v61  ;;  %v1980_v61 = vadd.f32 %v6182_v12, %v6181_v13  ;;  %v2423_v5 = vadd.f32 %v2422_v52, %v2190_v56 }
 0x397   :  { %v2596_v6 = vadd.f32 %v2595_v44, %v2435_v63  ;;  %v2184_v16 = vadd.f32 %v6183_v49, %v1980_v61  ;;  %v2584_v32 = vadd.f32 %v2583_v38, %v2423_v5  ;;  %v2415_v38 = vadd.f32 %v5200_v51, %v2178_v23 }
 0x399   :  { %2501 = vmatmul.f32.gmra.mxu2 %v6167_v8  ;;  %v2680_v37 = vmax.f32 %v2596_v6, 0.0  ;;  %v2419_v6 = vadd.f32 %v2418_v20, %v2184_v16  ;;  %v2677_v0 = vmax.f32 %v2584_v32, 0.0 }
 0x39b   :  { %v5232_v8 = vand.u32 4294901760, %v2680_v37  ;;  %v5273_v61 = vand.u32 4294901760, %v2677_v0 }
 0x39c   :  { %v2438_v10 = vpop.f32.mrf.mxu2 }
 0x39d   :  { %v2603_v58 = vpop.f32.mrf.mxu3  ;;  %v2439_v44 = vadd.f32 %v2438_v10, %v2214_v1  ;;  %v5242_v52 = vsub.f32 %v2680_v37, %v5232_v8  ;;  %v2580_v1 = vadd.f32 %v5202_v31, %v2419_v6  ;;  %v5255_v37 = vand.u32 4294901760, %v2678_v48 }
 0x39e   :  { %v5262_v10 = vsub.f32 %v2679_v33, %v5237_v22  ;;  %v5290_v35 = vsub.f32 %v2677_v0, %v5273_v61 }
 0x39f   :  { %v2600_v63 = vadd.f32 %v2599_v46, %v2439_v44  ;;  %v6189_v44 = vld [vmem:[#allocation55_spill] sm:$0xff]  ;;  %v2676_v12 = vmax.f32 %v2580_v1, 0.0  ;;  %v5280_v33 = vsub.f32 %v2678_v48, %v5255_v37 }
 0x3a0   :  { %v2172_v13 = vadd.f32 %v6189_v44, %v1970_v53 }
 0x3a1   :  { %v2681_v55 = vmax.f32 %v2600_v63, 0.0  ;;  %v2761_v63 = vand.u32 4294901760, %v5262_v10  ;;  %v5286_v26 = vand.u32 4294901760, %v2676_v12  ;;  %v2767_v32 = vand.u32 4294901760, %v5280_v33 }
 0x3a2   :  { %v2411_v31 = vadd.f32 %v5194_v24, %v2172_v13 }
 0x3a3   :  { %v5239_v30 = vand.u32 4294901760, %v2681_v55  ;;  %v2768_v23 = vsub.f32 %v5280_v33, %v2767_v32 }
 0x3a4   :  { %v2442_v9 = vpop.f32.mrf.mxu2 }
 0x3a5   :  { %v2607_v46 = vpop.f32.mrf.mxu3  ;;  %v5248_v25 = vsub.f32 %v2681_v55, %v5239_v30  ;;  %v2443_v20 = vadd.f32 %v2442_v9, %v5097_v36  ;;  %2707 = vmatpush.xpose.msrb.mxu0 %v5239_v30  ;;  %2903 = vmatpush.xpose.msrb.mxu3 %v5239_v30  ;;  %v2755_v36 = vand.u32 4294901760, %v5242_v52  ;;  %v5308_v9 = vsub.f32 %v2676_v12, %v5286_v26 }
 0x3a6   :  { %v2769_v44 = vand.u32 4294901760, %v2768_v23 }
 0x3a7   :  { %v2749_v40 = vand.u32 4294901760, %v5248_v25  ;;  %v5258_v56 = vadd.f32 %v2603_v58, %v2443_v20  ;;  %2850 = vmatpush.xpose.msrb.mxu2 %v5248_v25  ;;  %v2576_v58 = vadd.f32 %v5196_v42, %v2415_v38  ;;  %v2756_v21 = vsub.f32 %v5242_v52, %v2755_v36 }
 0x3a8   :  { %v2572_v42 = vadd.f32 %v5188_v29, %v2411_v31  ;;  %v2673_v20 = vmax.f32 %v5190_v19, 0.0  ;;  %v2779_v13 = vand.u32 4294901760, %v5308_v9  ;;  %v2672_v19 = vmax.f32 %v5179_v62, 0.0 }
 0x3a9   :  { %2709 = vmatpush.xpose.msrb.mxu0 %v5232_v8  ;;  %2905 = vmatpush.xpose.msrb.mxu3 %v5232_v8  ;;  %v2750_v51 = vsub.f32 %v5248_v25, %v2749_v40  ;;  %v2675_v55 = vmax.f32 %v2576_v58, 0.0  ;;  %v2757_v6 = vand.u32 4294901760, %v2756_v21 }
 0x3aa   :  { %v2674_v29 = vmax.f32 %v2572_v42, 0.0  ;;  %v2780_v58 = vsub.f32 %v5308_v9, %v2779_v13 }
 0x3ab   :  { %2853 = vmatpush.xpose.msrb.mxu2 %v5242_v52  ;;  %v2751_v5 = vand.u32 4294901760, %v2750_v51  ;;  %v5300_v48 = vand.u32 4294901760, %v2675_v55  ;;  %v5329_v51 = vand.u32 4294901760, %v2673_v20 }
 0x3ac   :  { %v2446_v49 = vpop.f32.mrf.mxu2  ;;  %v5314_v38 = vand.u32 4294901760, %v2674_v29 }
 0x3ad   :  { %v2611_v16 = vpop.f32.mrf.mxu3  ;;  %v2447_v24 = vadd.f32 %v2446_v49, %v5105_v57  ;;  %2711 = vmatpush.xpose.msrb.mxu0 %v5237_v22  ;;  %2752 = vmatpush.xpose.msrb.mxu1 %v2751_v5  ;;  %v2762_v57 = vsub.f32 %v5262_v10, %v2761_v63  ;;  %v5318_v1 = vsub.f32 %v2675_v55, %v5300_v48 }
 0x3ae   :  { %2907 = vmatpush.xpose.msrb.mxu3 %v5237_v22  ;;  %v5337_v12 = vsub.f32 %v2674_v29, %v5314_v38  ;;  %v5347_v42 = vsub.f32 %v2673_v20, %v5329_v51 }
 0x3af   :  { %v5292_v27 = vadd.f32 %v2607_v46, %v2447_v24  ;;  %2856 = vmatpush.xpose.msrb.mxu2 %v5262_v10  ;;  %v2763_v45 = vand.u32 4294901760, %v2762_v57  ;;  %v2773_v46 = vand.u32 4294901760, %v5290_v35  ;;  %v2785_v5 = vand.u32 4294901760, %v5318_v1 }
 0x3b0   :  { %v5343_v24 = vand.u32 4294901760, %v2672_v19  ;;  %v2791_v57 = vand.u32 4294901760, %v5337_v12 }
 0x3b1   :  { %2713 = vmatpush.xpose.msrb.mxu0 %v5255_v37  ;;  %2758 = vmatpush.xpose.msrb.mxu1 %v2757_v6  ;;  %v2781_v6 = vand.u32 4294901760, %v2780_v58 }
 0x3b2   :  { %2909 = vmatpush.xpose.msrb.mxu3 %v5255_v37  ;;  %v2792_v23 = vsub.f32 %v5337_v12, %v2791_v57 }
 0x3b3   :  { %2859 = vmatpush.xpose.msrb.mxu2 %v5280_v33 }
 0x3b4   :  { %v2450_v60 = vpop.f32.mrf.mxu2  ;;  %v2793_v58 = vand.u32 4294901760, %v2792_v23 }
 0x3b5   :  { %v2615_v59 = vpop.f32.mrf.mxu3  ;;  %v2451_v53 = vadd.f32 %v2450_v60, %v5116_v17  ;;  %2715 = vmatpush.xpose.msrb.mxu0 %v5273_v61  ;;  %2764 = vmatpush.xpose.msrb.mxu1 %v2763_v45  ;;  %v2774_v17 = vsub.f32 %v5290_v35, %v2773_v46  ;;  %v5366_v60 = vsub.f32 %v2672_v19, %v5343_v24 }
 0x3b6   :  { %2911 = vmatpush.xpose.msrb.mxu3 %v5273_v61 }
 0x3b7   :  { %v5320_v0 = vadd.f32 %v2611_v16, %v2451_v53  ;;  %2862 = vmatpush.xpose.msrb.mxu2 %v5290_v35  ;;  %v2775_v31 = vand.u32 4294901760, %v2774_v17  ;;  %v2671_v16 = vmax.f32 %v5169_v11, 0.0  ;;  %v2670_v11 = vmax.f32 %v5159_v34, 0.0 }
 0x3b9   :  { %2717 = vmatpush.xpose.msrb.mxu0 %v5286_v26  ;;  %2770 = vmatpush.xpose.msrb.mxu1 %v2769_v44  ;;  %v5358_v29 = vand.u32 4294901760, %v2671_v16  ;;  %v2669_v44 = vmax.f32 %v5149_v4, 0.0  ;;  %v5372_v17 = vand.u32 4294901760, %v2670_v11  ;;  %v2668_v4 = vmax.f32 %v5139_v15, 0.0 }
 0x3ba   :  { %2913 = vmatpush.xpose.msrb.mxu3 %v5286_v26 }
 0x3bb   :  { %2865 = vmatpush.xpose.msrb.mxu2 %v5308_v9 }
 0x3bc   :  { %v2454_v21 = vpop.f32.mrf.mxu2 }
 0x3bd   :  { %v2619_v49 = vpop.f32.mrf.mxu3  ;;  %v2455_v62 = vadd.f32 %v2454_v21, %v5126_v14  ;;  %2719 = vmatpush.xpose.msrb.mxu0 %v5300_v48  ;;  %2776 = vmatpush.xpose.msrb.mxu1 %v2775_v31  ;;  %v2786_v14 = vsub.f32 %v5318_v1, %v2785_v5  ;;  %v5376_v31 = vsub.f32 %v2671_v16, %v5358_v29  ;;  %v5916_v21 = vand.u32 4294901760, %v5366_v60 }
 0x3be   :  { %2915 = vmatpush.xpose.msrb.mxu3 %v5300_v48 }
 0x3bf   :  { %v5349_v55 = vadd.f32 %v2615_v59, %v2455_v62  ;;  %2868 = vmatpush.xpose.msrb.mxu2 %v5318_v1  ;;  %v2787_v45 = vand.u32 4294901760, %v2786_v14  ;;  %v5918_v59 = vand.u32 4294901760, %v5347_v42  ;;  %v5387_v62 = vand.u32 4294901760, %v2669_v44 }
 0x3c0   :  { %v2804_v16 = vsub.f32 %v5366_v60, %v5916_v21  ;;  %v5915_v14 = vand.u32 4294901760, %v5376_v31 }
 0x3c1   :  { %2721 = vmatpush.xpose.msrb.mxu0 %v5314_v38  ;;  %2782 = vmatpush.xpose.msrb.mxu1 %v2781_v6  ;;  %v5395_v6 = vsub.f32 %v2670_v11, %v5372_v17 }
 0x3c2   :  { %2917 = vmatpush.xpose.msrb.mxu3 %v5314_v38 }
 0x3c3   :  { %2871 = vmatpush.xpose.msrb.mxu2 %v5337_v12 }
 0x3c4   :  { %v2458_v53 = vpop.f32.mrf.mxu2 }
 0x3c5   :  { %v2623_v20 = vpop.f32.mrf.mxu3  ;;  %v2459_v34 = vadd.f32 %v2458_v53, %v5136_v7  ;;  %2723 = vmatpush.xpose.msrb.mxu0 %v5329_v51  ;;  %2788 = vmatpush.xpose.msrb.mxu1 %v2787_v45  ;;  %v2798_v7 = vsub.f32 %v5347_v42, %v5918_v59  ;;  %v2667_v53 = vmax.f32 %v5129_v54, 0.0  ;;  %v2666_v54 = vmax.f32 %v5119_v18, 0.0 }
 0x3c6   :  { %2919 = vmatpush.xpose.msrb.mxu3 %v5329_v51 }
 0x3c7   :  { %v5378_v19 = vadd.f32 %v2619_v49, %v2459_v34  ;;  %2874 = vmatpush.xpose.msrb.mxu2 %v5347_v42  ;;  %v2799_v49 = vand.u32 4294901760, %v2798_v7  ;;  %v5401_v34 = vand.u32 4294901760, %v2668_v4  ;;  %v2805_v7 = vand.u32 4294901760, %v2804_v16 }
 0x3c8   :  { %v5429_v21 = vand.u32 4294901760, %v2666_v54 }
 0x3c9   :  { %2725 = vmatpush.xpose.msrb.mxu0 %v5343_v24  ;;  %2794 = vmatpush.xpose.msrb.mxu1 %v2793_v58  ;;  %v5405_v58 = vsub.f32 %v2669_v44, %v5387_v62  ;;  %v5424_v16 = vsub.f32 %v2668_v4, %v5401_v34 }
 0x3ca   :  { %2921 = vmatpush.xpose.msrb.mxu3 %v5343_v24 }
 0x3cb   :  { %2877 = vmatpush.xpose.msrb.mxu2 %v5366_v60 }
 0x3cc   :  { %v2462_v45 = vpop.f32.mrf.mxu2 }
 0x3cd   :  { %v2627_v23 = vpop.f32.mrf.mxu3  ;;  %v2463_v15 = vadd.f32 %v2462_v45, %v5146_v2  ;;  %2727 = vmatpush.xpose.msrb.mxu0 %v5358_v29  ;;  %2800 = vmatpush.xpose.msrb.mxu1 %v2799_v49  ;;  %v2810_v2 = vsub.f32 %v5376_v31, %v5915_v14  ;;  %v5917_v49 = vand.u32 4294901760, %v5395_v6  ;;  %v5416_v45 = vand.u32 4294901760, %v2667_v53 }
 0x3ce   :  { %2923 = vmatpush.xpose.msrb.mxu3 %v5358_v29 }
 0x3cf   :  { %v5407_v11 = vadd.f32 %v2623_v20, %v2463_v15  ;;  %2880 = vmatpush.xpose.msrb.mxu2 %v5376_v31  ;;  %v2811_v20 = vand.u32 4294901760, %v2810_v2  ;;  %v2816_v44 = vsub.f32 %v5395_v6, %v5917_v49  ;;  %v5919_v15 = vand.u32 4294901760, %v5405_v58 }
 0x3d0   :  { %v5433_v2 = vsub.f32 %v2667_v53, %v5416_v45  ;;  %v5449_v53 = vsub.f32 %v2666_v54, %v5429_v21 }
 0x3d1   :  { %2729 = vmatpush.xpose.msrb.mxu0 %v5372_v17  ;;  %2806 = vmatpush.xpose.msrb.mxu1 %v2805_v7  ;;  %v2817_v4 = vand.u32 4294901760, %v2816_v44  ;;  %v2822_v59 = vsub.f32 %v5405_v58, %v5919_v15 }
 0x3d2   :  { %2925 = vmatpush.xpose.msrb.mxu3 %v5372_v17 }
 0x3d3   :  { %2883 = vmatpush.xpose.msrb.mxu2 %v5395_v6 }
 0x3d4   :  { %v2466_v14 = vpop.f32.mrf.mxu2 }
 0x3d5   :  { %v2631_v7 = vpop.f32.mrf.mxu3  ;;  %v2467_v18 = vadd.f32 %v2466_v14, %v5156_v39  ;;  %2731 = vmatpush.xpose.msrb.mxu0 %v5387_v62  ;;  %2812 = vmatpush.xpose.msrb.mxu1 %v2811_v20  ;;  %v5920_v39 = vand.u32 4294901760, %v5424_v16  ;;  %v2823_v14 = vand.u32 4294901760, %v2822_v59  ;;  %v2833_v20 = vand.u32 4294901760, %v5433_v2 }
 0x3d6   :  { %2927 = vmatpush.xpose.msrb.mxu3 %v5387_v62 }
 0x3d7   :  { %v5435_v49 = vadd.f32 %v2627_v23, %v2467_v18  ;;  %2886 = vmatpush.xpose.msrb.mxu2 %v5405_v58  ;;  %v2828_v23 = vsub.f32 %v5424_v16, %v5920_v39  ;;  %v2834_v54 = vsub.f32 %v5433_v2, %v2833_v20  ;;  %v5921_v39 = vand.u32 4294901760, %v5449_v53 }
 0x3d9   :  { %2733 = vmatpush.xpose.msrb.mxu0 %v5401_v34  ;;  %2818 = vmatpush.xpose.msrb.mxu1 %v2817_v4  ;;  %v2829_v59 = vand.u32 4294901760, %v2828_v23 }
 0x3da   :  { %2929 = vmatpush.xpose.msrb.mxu3 %v5401_v34 }
 0x3db   :  { %2889 = vmatpush.xpose.msrb.mxu2 %v5424_v16 }
 0x3dc   :  { %v2470_v44 = vpop.f32.mrf.mxu2 }
 0x3dd   :  { %v2635_v18 = vpop.f32.mrf.mxu3  ;;  %v2471_v15 = vadd.f32 %v2470_v44, %v5166_v41  ;;  %2735 = vmatpush.xpose.msrb.mxu0 %v5416_v45  ;;  %2824 = vmatpush.xpose.msrb.mxu1 %v2823_v14  ;;  %v5466_v41 = vpop.f32.mrf.mxu0 }
 0x3de   :  { %2931 = vmatpush.xpose.msrb.mxu3 %v5416_v45 }
 0x3df   :  { %v5455_v4 = vadd.f32 %v2631_v7, %v2471_v15  ;;  %2892 = vmatpush.xpose.msrb.mxu2 %v5433_v2  ;;  %v2835_v15 = vand.u32 4294901760, %v2834_v54  ;;  %v2840_v7 = vsub.f32 %v5449_v53, %v5921_v39 }
 0x3e1   :  { %2737 = vmatpush.xpose.msrb.mxu0 %v5429_v21  ;;  %2830 = vmatpush.xpose.msrb.mxu1 %v2829_v59  ;;  %v5473_v59 = vpop.f32.mrf.mxu1 }
 0x3e2   :  { %2933 = vmatpush.xpose.msrb.mxu3 %v5429_v21 }
 0x3e3   :  { %2895 = vmatpush.xpose.msrb.mxu2 %v5449_v53 }
 0x3e4   :  { %v2474_v14 = vpop.f32.mrf.mxu2 }
 0x3e5   :  { %2944 = vmatpush.xpose.msra.mxu0 %v2749_v40  ;;  %v2639_v23 = vpop.f32.mrf.mxu3  ;;  %v2475_v44 = vadd.f32 %v2474_v14, %v5176_v3  ;;  %2836 = vmatpush.xpose.msrb.mxu1 %v2835_v15  ;;  %v2841_v40 = vand.u32 4294901760, %v2840_v7  ;;  %v2064_v15 = vpop.f32.mrf.mxu0  ;;  %v6193_v7 = vand.u32 4294901760, %v5395_v6  ;;  %v6195_v6 = vand.u32 4294901760, %v5424_v16 }
 0x3e7   :  { %v5477_v25 = vadd.f32 %v2635_v18, %v2475_v44 }
 0x3e9   :  { %2948 = vmatpush.xpose.msra.mxu0 %v2755_v36  ;;  %2842 = vmatpush.xpose.msrb.mxu1 %v2841_v40  ;;  %v5490_v36 = vpop.f32.mrf.mxu1 }
 0x3ec   :  { %v2478_v54 = vpop.f32.mrf.mxu2 }
 0x3ed   :  { %2952 = vmatpush.xpose.msra.mxu0 %v2761_v63  ;;  %3011 = vmatpush.xpose.msra.mxu1 %v5239_v30  ;;  %v5482_v39 = vpop.f32.mrf.mxu3  ;;  %v2479_v3 = vadd.f32 %v2478_v54, %v5186_v28  ;;  %v2069_v28 = vpop.f32.mrf.mxu0 }
 0x3ef   :  { %v5488_v52 = vadd.f32 %v2639_v23, %v2479_v3 }
 0x3f1   :  { %2956 = vmatpush.xpose.msra.mxu0 %v2767_v32  ;;  %3013 = vmatpush.xpose.msra.mxu1 %v5232_v8  ;;  %v2291_v8 = vpop.f32.mrf.mxu1 }
 0x3f4   :  { %v5495_v30 = vpop.f32.mrf.mxu2 }
 0x3f5   :  { %2960 = vmatpush.xpose.msra.mxu0 %v2773_v46  ;;  %3015 = vmatpush.xpose.msra.mxu1 %v5237_v22  ;;  %v5497_v10 = vpop.f32.mrf.mxu3  ;;  %v2698_v22 = vld [vmem:[%s5809_s5] sm:$0x1]  ;;  %v2074_v32 = vpop.f32.mrf.mxu0  ;;  %s3448_s5 = smov [#allocation3]  }
 0x3f6   :  { %v5511_v63 = vand.u32 4294901760, %v2698_v22  ;;  %s3404_s9 = sshll.u32 %s3448_s5, 4  ;;  %s3405_s9 = int_to_ptr.vmem [resolvable:$true] %s3404_s9 }
 0x3f8   :  { %v5514_v35 = vsub.f32 %v2698_v22, %v5511_v63  ;;  %2844 = vmatmul.f32.vlgmr.msrb.gmra.mxu1 %v5511_v63 }
 0x3f9   :  { %2964 = vmatpush.xpose.msra.mxu0 %v2779_v13  ;;  %3017 = vmatpush.xpose.msra.mxu1 %v5255_v37  ;;  %v6191_v13 = vand.u32 4294901760, %v5366_v60  ;;  %v6194_v60 = vand.u32 4294901760, %v5405_v58 }
 0x3fa   :  { %v5521_v9 = vand.u32 4294901760, %v5514_v35  ;;  %2898 = vmatmul.f32.vlgmr.msrb.gmra.mxu2 %v5514_v35 }
 0x3fc   :  { %v2486_v33 = vpop.f32.mrf.mxu2  ;;  %v2741_v1 = vsub.f32 %v5514_v35, %v5521_v9  ;;  %2937 = vmatmul.f32.vlgmr.msrb.gmra.mxu3 %v5521_v9 }
 0x3fd   :  { %2968 = vmatpush.xpose.msra.mxu0 %v2785_v5  ;;  %3019 = vmatpush.xpose.msra.mxu1 %v5273_v61  ;;  %v2651_v37 = vpop.f32.mrf.mxu3  ;;  %v6190_v61 = vand.u32 4294901760, %v5347_v42  ;;  %v6192_v5 = vand.u32 4294901760, %v5376_v31  ;;  %v2079_v42 = vpop.f32.mrf.mxu0  ;;  %v2075_v31 = vadd.f32 %v2074_v32, %v5093_v43  ;;  %v6197_v43 = vld [vmem:[#allocation29_spill] sm:$0xff] }
 0x3fe   :  { %v5530_v12 = vand.u32 4294901760, %v2741_v1  ;;  %v2065_v32 = vadd.f32 %v2064_v15, %v6197_v43  ;;  %v6199_v15 = vand.u32 4294901760, %v5449_v53 }
 0x400   :  { %2743 = vmatmul.f32.vlgmr.msrb.gmra.mxu0 %v5530_v12 }
 0x401   :  { %2972 = vmatpush.xpose.msra.mxu0 %v2791_v57  ;;  %3021 = vmatpush.xpose.msra.mxu1 %v5286_v26  ;;  %v2297_v26 = vpop.f32.mrf.mxu1 }
 0x402   :  { %v2298_v44 = vadd.f32 %v2297_v26, %v2075_v31 }
 0x404   :  { %v2490_v46 = vpop.f32.mrf.mxu2 }
 0x405   :  { %2976 = vmatpush.xpose.msra.mxu0 %v6190_v61  ;;  %3023 = vmatpush.xpose.msra.mxu1 %v5300_v48  ;;  %v2655_v48 = vpop.f32.mrf.mxu3  ;;  %v2084_v54 = vpop.f32.mrf.mxu0 }
 0x409   :  { %2980 = vmatpush.xpose.msra.mxu0 %v6191_v13  ;;  %3025 = vmatpush.xpose.msra.mxu1 %v5314_v38  ;;  %v2303_v18 = vpop.f32.mrf.mxu1  ;;  %v2080_v38 = vadd.f32 %v2079_v42, %v5101_v50  ;;  %v6198_v42 = vld [vmem:[#allocation27_spill] sm:$0xff] }
 0x40b   :  { %v2304_v14 = vadd.f32 %v2303_v18, %v2080_v38 }
 0x40c   :  { %v2494_v57 = vpop.f32.mrf.mxu2 }
 0x40d   :  { %2984 = vmatpush.xpose.msra.mxu0 %v6192_v5  ;;  %3027 = vmatpush.xpose.msra.mxu1 %v5329_v51  ;;  %v2659_v23 = vpop.f32.mrf.mxu3  ;;  %v2495_v3 = vadd.f32 %v2494_v57, %v2298_v44 }
 0x40f   :  { %v2656_v1 = vadd.f32 %v2655_v48, %v2495_v3 }
 0x411   :  { %2988 = vmatpush.xpose.msra.mxu0 %v6193_v7  ;;  %3029 = vmatpush.xpose.msra.mxu1 %v5343_v24  ;;  %v6196_v24 = vld [vmem:[#allocation31_spill] sm:$0xff]  ;;  %v2309_v22 = vpop.f32.mrf.mxu1 }
 0x412   :  { %v2070_v50 = vadd.f32 %v2069_v28, %v6196_v24 }
 0x414   :  { %v2498_v51 = vpop.f32.mrf.mxu2  ;;  %v2292_v61 = vadd.f32 %v2291_v8, %v2070_v50  ;;  %v2060_v8 = vadd.f32 %v5466_v41, %v6198_v42 }
 0x415   :  { %2992 = vmatpush.xpose.msra.mxu0 %v6194_v60  ;;  %3031 = vmatpush.xpose.msra.mxu1 %v5358_v29  ;;  %v2499_v40 = vadd.f32 %v2498_v51, %v2304_v14  ;;  %v2085_v29 = vadd.f32 %v2084_v54, %v5109_v47  ;;  %v2663_v47 = vpop.f32.mrf.mxu3 }
 0x416   :  { %v2491_v16 = vadd.f32 %v2490_v46, %v2292_v61  ;;  %v2280_v48 = vadd.f32 %v5473_v59, %v2060_v8 }
 0x417   :  { %v2660_v58 = vadd.f32 %v2659_v23, %v2499_v40  ;;  %v2310_v26 = vadd.f32 %v2309_v22, %v2085_v29  ;;  %v2691_v40 = vmax.f32 %v5488_v52, 0.0  ;;  %v2690_v52 = vmax.f32 %v5477_v25, 0.0 }
 0x418   :  { %v2652_v2 = vadd.f32 %v2651_v37, %v2491_v16  ;;  %v2483_v18 = vadd.f32 %v5495_v30, %v2280_v48  ;;  %v2689_v25 = vmax.f32 %v5455_v4, 0.0  ;;  %v2688_v4 = vmax.f32 %v5435_v49, 0.0 }
 0x419   :  { %2996 = vmatpush.xpose.msra.mxu0 %v6195_v6  ;;  %3033 = vmatpush.xpose.msra.mxu1 %v5372_v17  ;;  %v2696_v13 = vmax.f32 %v2660_v58, 0.0  ;;  %v2286_v17 = vadd.f32 %v5490_v36, %v2065_v32  ;;  %v5619_v58 = vand.u32 4294901760, %v2691_v40  ;;  %v5632_v32 = vand.u32 4294901760, %v2690_v52 }
 0x41a   :  { %v2694_v53 = vmax.f32 %v2652_v2, 0.0  ;;  %v2644_v59 = vadd.f32 %v5482_v39, %v2483_v18  ;;  %v2687_v49 = vmax.f32 %v5407_v11, 0.0  ;;  %v2686_v11 = vmax.f32 %v5378_v19, 0.0 }
 0x41b   :  { %v2487_v57 = vadd.f32 %v2486_v33, %v2286_v17  ;;  %v5645_v17 = vand.u32 4294901760, %v2689_v25  ;;  %v5653_v42 = vsub.f32 %v2690_v52, %v5632_v32  ;;  %v2685_v19 = vmax.f32 %v5349_v55, 0.0 }
 0x41c   :  { %v2502_v28 = vpop.f32.mrf.mxu2  ;;  %v2684_v55 = vmax.f32 %v5320_v0, 0.0  ;;  %v2683_v0 = vmax.f32 %v5292_v27, 0.0  ;;  %v2682_v27 = vmax.f32 %v5258_v56, 0.0 }
 0x41d   :  { %3000 = vmatpush.xpose.msra.mxu0 %v2833_v20  ;;  %3035 = vmatpush.xpose.msra.mxu1 %v5387_v62  ;;  %v2503_v5 = vadd.f32 %v2502_v28, %v2310_v26  ;;  %v2695_v62 = vmax.f32 %v2656_v1, 0.0  ;;  %v5559_v20 = vand.u32 4294901760, %v2696_v13  ;;  %v2648_v41 = vadd.f32 %v5497_v10, %v2487_v57 }
 0x41e   :  { %v5579_v10 = vand.u32 4294901760, %v2694_v53  ;;  %v5640_v1 = vsub.f32 %v2691_v40, %v5619_v58  ;;  %v5658_v57 = vand.u32 4294901760, %v2688_v4  ;;  %v5666_v2 = vsub.f32 %v2689_v25, %v5645_v17 }
 0x41f   :  { %v2664_v46 = vadd.f32 %v2663_v47, %v2503_v5  ;;  %v5566_v33 = vand.u32 4294901760, %v2695_v62  ;;  %v5571_v37 = vsub.f32 %v2696_v13, %v5559_v20  ;;  %v2693_v30 = vmax.f32 %v2648_v41, 0.0 }
 0x420   :  { %v5601_v51 = vsub.f32 %v2694_v53, %v5579_v10  ;;  %v3126_v8 = vand.u32 4294901760, %v5640_v1  ;;  %v5679_v18 = vsub.f32 %v2688_v4, %v5658_v57  ;;  %v3138_v41 = vand.u32 4294901760, %v5666_v2 }
 0x421   :  { %3004 = vmatpush.xpose.msra.mxu0 %v6199_v15  ;;  %3037 = vmatpush.xpose.msra.mxu1 %v5401_v34  ;;  %v2697_v36 = vmax.f32 %v2664_v46, 0.0  ;;  %v5585_v38 = vsub.f32 %v2695_v62, %v5566_v33  ;;  %v3096_v60 = vand.u32 4294901760, %v5571_v37  ;;  %v5593_v31 = vand.u32 4294901760, %v2693_v30 }
 0x422   :  { %v3108_v3 = vand.u32 4294901760, %v5601_v51  ;;  %v3127_v15 = vsub.f32 %v5640_v1, %v3126_v8  ;;  %v3132_v62 = vand.u32 4294901760, %v5653_v42  ;;  %v5671_v46 = vand.u32 4294901760, %v2687_v49 }
 0x423   :  { %v5568_v34 = vand.u32 4294901760, %v2697_v36  ;;  %v3097_v23 = vsub.f32 %v5571_v37, %v3096_v60  ;;  %v3102_v44 = vand.u32 4294901760, %v5585_v38  ;;  %v5614_v50 = vsub.f32 %v2693_v30, %v5593_v31 }
 0x424   :  { %3006 = vmatmul.f32.vlgmr.msra.gmra.mxu0 %v5511_v63  ;;  %v3109_v61 = vsub.f32 %v5601_v51, %v3108_v3  ;;  %v3128_v48 = vand.u32 4294901760, %v3127_v15  ;;  %v5684_v53 = vand.u32 4294901760, %v2686_v11  ;;  %v3139_v30 = vsub.f32 %v5666_v2, %v3138_v41 }
 0x425   :  { %3039 = vmatpush.xpose.msra.mxu1 %v5416_v45  ;;  %v5574_v7 = vsub.f32 %v2697_v36, %v5568_v34  ;;  %3048 = vmatpush.xpose.msra.mxu2 %v5568_v34  ;;  %v3098_v6 = vand.u32 4294901760, %v3097_v23  ;;  %v3103_v24 = vsub.f32 %v5585_v38, %v3102_v44  ;;  %v3114_v43 = vand.u32 4294901760, %v5614_v50 }
 0x426   :  { %v3110_v26 = vand.u32 4294901760, %v3109_v61  ;;  %v3133_v36 = vsub.f32 %v5653_v42, %v3132_v62  ;;  %v3140_v23 = vand.u32 4294901760, %v3139_v30  ;;  %v5710_v52 = vand.u32 4294901760, %v2684_v55 }
 0x427   :  { %v3090_v45 = vand.u32 4294901760, %v5574_v7  ;;  %3191 = vmatpush.xpose.msrb.mxu0 %v5574_v7  ;;  %v3104_v22 = vand.u32 4294901760, %v3103_v24  ;;  %v3115_v16 = vsub.f32 %v5614_v50, %v3114_v43  ;;  %v3447_v15 = vmov 0  }
 0x428   :  { %3417 = vset.pattern.permute.xlu0 %v3447_v15  ;;  %v5735_v56 = vand.u32 4294901760, %v2682_v27 }
 0x429   :  { %3041 = vmatpush.xpose.msra.mxu1 %v5429_v21  ;;  %3050 = vmatpush.xpose.msra.mxu2 %v5559_v20  ;;  %v3091_v39 = vsub.f32 %v5574_v7, %v3090_v45  ;;  %v2692_v21 = vmax.f32 %v2644_v59, 0.0  ;;  %v3116_v28 = vand.u32 4294901760, %v3115_v16  ;;  %v3134_v59 = vand.u32 4294901760, %v3133_v36 }
 0x42a   :  { %v5723_v16 = vand.u32 4294901760, %v2683_v0 }
 0x42b   :  { %3194 = vmatpush.xpose.msrb.mxu0 %v5571_v37  ;;  %v3092_v14 = vand.u32 4294901760, %v3091_v39  ;;  %v5606_v54 = vand.u32 4294901760, %v2692_v21  ;;  %v5692_v39 = vsub.f32 %v2687_v49, %v5671_v46 }
 0x42c   :  { %3043 = vmatmul.f32.vlgmr.msra.gmra.mxu1 %v5511_v63  ;;  %v3173_v36 = vsub.f32 %v2683_v0, %v5723_v16 }
 0x42d   :  { %3244 = vmatpush.xpose.msrb.mxu1 %v5568_v34  ;;  %3052 = vmatpush.xpose.msra.mxu2 %v5566_v33  ;;  %v5627_v29 = vsub.f32 %v2692_v21, %v5606_v54  ;;  %v3144_v21 = vand.u32 4294901760, %v5679_v18  ;;  %v3150_v24 = vand.u32 4294901760, %v5692_v39 }
 0x42e   :  { %3093 = vmatpush.xpose.msra.mxu3 %v3092_v14  ;;  %v5697_v14 = vand.u32 4294901760, %v2685_v19 }
 0x42f   :  { %3197 = vmatpush.xpose.msrb.mxu0 %v5585_v38  ;;  %v3120_v13 = vand.u32 4294901760, %v5627_v29  ;;  %v3145_v40 = vsub.f32 %v5679_v18, %v3144_v21  ;;  %v3151_v61 = vsub.f32 %v5692_v39, %v3150_v24 }
 0x430   :  { %v5718_v25 = vsub.f32 %v2685_v19, %v5697_v14 }
 0x431   :  { %3246 = vmatpush.xpose.msrb.mxu1 %v5559_v20  ;;  %3054 = vmatpush.xpose.msra.mxu2 %v5579_v10  ;;  %v3121_v5 = vsub.f32 %v5627_v29, %v3120_v13  ;;  %v3152_v4 = vand.u32 4294901760, %v3151_v61 }
 0x432   :  { %3099 = vmatpush.xpose.msra.mxu3 %v3098_v6  ;;  %v5705_v6 = vsub.f32 %v2686_v11, %v5684_v53  ;;  %v3162_v49 = vand.u32 4294901760, %v5718_v25 }
 0x433   :  { %3200 = vmatpush.xpose.msrb.mxu0 %v5601_v51  ;;  %v3122_v47 = vand.u32 4294901760, %v3121_v5  ;;  %v5731_v5 = vsub.f32 %v2684_v55, %v5710_v52  ;;  %v3179_v55 = vsub.f32 %v2682_v27, %v5735_v56 }
 0x435   :  { %3248 = vmatpush.xpose.msrb.mxu1 %v5566_v33  ;;  %3056 = vmatpush.xpose.msra.mxu2 %v5593_v31  ;;  %v3168_v19 = vand.u32 4294901760, %v5731_v5 }
 0x436   :  { %3105 = vmatpush.xpose.msra.mxu3 %v3104_v22  ;;  %v3146_v22 = vand.u32 4294901760, %v3145_v40 }
 0x437   :  { %3203 = vmatpush.xpose.msrb.mxu0 %v5614_v50  ;;  %v3169_v30 = vsub.f32 %v5731_v5, %v3168_v19 }
 0x439   :  { %3250 = vmatpush.xpose.msrb.mxu1 %v5579_v10  ;;  %3058 = vmatpush.xpose.msra.mxu2 %v5606_v54  ;;  %v3170_v40 = vand.u32 4294901760, %v3169_v30 }
 0x43a   :  { %3111 = vmatpush.xpose.msra.mxu3 %v3110_v26  ;;  %v3156_v26 = vand.u32 4294901760, %v5705_v6 }
 0x43b   :  { %3206 = vmatpush.xpose.msrb.mxu0 %v5627_v29 }
 0x43d   :  { %3252 = vmatpush.xpose.msrb.mxu1 %v5593_v31  ;;  %3060 = vmatpush.xpose.msra.mxu2 %v5619_v58 }
 0x43e   :  { %3117 = vmatpush.xpose.msra.mxu3 %v3116_v28  ;;  %v3157_v28 = vsub.f32 %v5705_v6, %v3156_v26 }
 0x43f   :  { %3209 = vmatpush.xpose.msrb.mxu0 %v5640_v1  ;;  %v3394_v1 = vlaneseq }
 0x440   :  { %v3158_v11 = vand.u32 4294901760, %v3157_v28 }
 0x441   :  { %3254 = vmatpush.xpose.msrb.mxu1 %v5606_v54  ;;  %3062 = vmatpush.xpose.msra.mxu2 %v5632_v32  ;;  %vm3396_vm2 = vcmp.lt.s32.totalorder %v3394_v1, 256 }
 0x442   :  { %3123 = vmatpush.xpose.msra.mxu3 %v3122_v47  ;;  %v2699_v47 = vld [vmem:[#allocation2] sm:$0x1] }
 0x443   :  { %3212 = vmatpush.xpose.msrb.mxu0 %v5653_v42  ;;  %2702 = vperm.xlu0 %3417, %v2699_v47  }
 0x445   :  { %3256 = vmatpush.xpose.msrb.mxu1 %v5619_v58  ;;  %3064 = vmatpush.xpose.msra.mxu2 %v5645_v17 }
 0x446   :  { %3129 = vmatpush.xpose.msra.mxu3 %v3128_v48  ;;  %v3163_v48 = vsub.f32 %v5718_v25, %v3162_v49 }
 0x447   :  { %3215 = vmatpush.xpose.msrb.mxu0 %v5666_v2 }
 0x449   :  { %3258 = vmatpush.xpose.msrb.mxu1 %v5632_v32  ;;  %3066 = vmatpush.xpose.msra.mxu2 %v5658_v57 }
 0x44a   :  { %3135 = vmatpush.xpose.msra.mxu3 %v3134_v59  ;;  %v3164_v59 = vand.u32 4294901760, %v3163_v48 }
 0x44b   :  { %3218 = vmatpush.xpose.msrb.mxu0 %v5679_v18 }
 0x44d   :  { %3260 = vmatpush.xpose.msrb.mxu1 %v5645_v17  ;;  %3068 = vmatpush.xpose.msra.mxu2 %v5671_v46 }
 0x44e   :  { %3141 = vmatpush.xpose.msra.mxu3 %v3140_v23  ;;  %v3174_v23 = vand.u32 4294901760, %v3173_v36 }
 0x44f   :  { %3221 = vmatpush.xpose.msrb.mxu0 %v5692_v39 }
 0x450   :  { %v3175_v0 = vsub.f32 %v3173_v36, %v3174_v23 }
 0x451   :  { %3262 = vmatpush.xpose.msrb.mxu1 %v5658_v57  ;;  %3070 = vmatpush.xpose.msra.mxu2 %v5684_v53 }
 0x452   :  { %3147 = vmatpush.xpose.msra.mxu3 %v3146_v22  ;;  %v3180_v22 = vand.u32 4294901760, %v3179_v55  ;;  %v3176_v61 = vand.u32 4294901760, %v3175_v0 }
 0x453   :  { %3224 = vmatpush.xpose.msrb.mxu0 %v5705_v6 }
 0x454   :  { %v3181_v27 = vsub.f32 %v3179_v55, %v3180_v22 }
 0x455   :  { %3264 = vmatpush.xpose.msrb.mxu1 %v5671_v46  ;;  %3072 = vmatpush.xpose.msra.mxu2 %v5697_v14 }
 0x456   :  { %3153 = vmatpush.xpose.msra.mxu3 %v3152_v4  ;;  %v3182_v4 = vand.u32 4294901760, %v3181_v27 }
 0x457   :  { %3227 = vmatpush.xpose.msrb.mxu0 %v5718_v25 }
 0x459   :  { %3266 = vmatpush.xpose.msrb.mxu1 %v5684_v53  ;;  %3074 = vmatpush.xpose.msra.mxu2 %v5710_v52 }
 0x45a   :  { %3159 = vmatpush.xpose.msra.mxu3 %v3158_v11 }
 0x45b   :  { %3230 = vmatpush.xpose.msrb.mxu0 %v5731_v5 }
 0x45d   :  { %3268 = vmatpush.xpose.msrb.mxu1 %v5697_v14  ;;  %3076 = vmatpush.xpose.msra.mxu2 %v5723_v16 }
 0x45e   :  { %3165 = vmatpush.xpose.msra.mxu3 %v3164_v59 }
 0x45f   :  { %3233 = vmatpush.xpose.msrb.mxu0 %v3173_v36 }
 0x461   :  { %3270 = vmatpush.xpose.msrb.mxu1 %v5710_v52  ;;  %3078 = vmatpush.xpose.msra.mxu2 %v5735_v56 }
 0x462   :  { %3171 = vmatpush.xpose.msra.mxu3 %v3170_v40 }
 0x463   :  { %3236 = vmatpush.xpose.msrb.mxu0 %v3179_v55 }
 0x464   :  { %3084 = vmatmul.f32.vlgmr.msra.gmra.mxu2 %v5530_v12 }
 0x465   :  { %3272 = vmatpush.xpose.msrb.mxu1 %v5723_v16  ;;  %3285 = vmatpush.xpose.msrb.mxu2 %v3090_v45 }
 0x466   :  { %3177 = vmatpush.xpose.msra.mxu3 %v3176_v61  ;;  %3239 = vmatmul.f32.vlgmr.msrb.gmra.mxu0 %v5514_v35 }
 0x469   :  { %3274 = vmatpush.xpose.msrb.mxu1 %v5735_v56  ;;  %3289 = vmatpush.xpose.msrb.mxu2 %v3096_v60 }
 0x46a   :  { %3183 = vmatpush.xpose.msra.mxu3 %v3182_v4 }
 0x46c   :  { %3278 = vmatmul.f32.vlgmr.msrb.gmra.mxu1 %v5521_v9 }
 0x46d   :  { %3293 = vmatpush.xpose.msrb.mxu2 %v3102_v44  ;;  %3185 = vmatmul.f32.vlgmr.msra.gmra.mxu3 %v5511_v63 }
 0x46e   :  { %3352 = vmatpush.xpose.msrb.mxu3 %v5568_v34 }
 0x471   :  { %3297 = vmatpush.xpose.msrb.mxu2 %v3108_v3 }
 0x472   :  { %3354 = vmatpush.xpose.msrb.mxu3 %v5559_v20 }
 0x475   :  { %3301 = vmatpush.xpose.msrb.mxu2 %v3114_v43  ;;  %v2845_v12 = vpop.f32.mrf.mxu1 }
 0x476   :  { %3356 = vmatpush.xpose.msrb.mxu3 %v5566_v33 }
 0x479   :  { %3305 = vmatpush.xpose.msrb.mxu2 %v3120_v13 }
 0x47a   :  { %3358 = vmatpush.xpose.msrb.mxu3 %v5579_v10 }
 0x47d   :  { %3309 = vmatpush.xpose.msrb.mxu2 %v3126_v8  ;;  %v2744_v35 = vpop.f32.mrf.mxu0  ;;  %v2899_v9 = vpop.f32.mrf.mxu2 }
 0x47e   :  { %3360 = vmatpush.xpose.msrb.mxu3 %v5593_v31 }
 0x47f   :  { %v2938_v20 = vpop.f32.mrf.mxu3 }
 0x481   :  { %3313 = vmatpush.xpose.msrb.mxu2 %v3132_v62 }
 0x482   :  { %3362 = vmatpush.xpose.msrb.mxu3 %v5606_v54 }
 0x485   :  { %3317 = vmatpush.xpose.msrb.mxu2 %v3138_v41 }
 0x486   :  { %3364 = vmatpush.xpose.msrb.mxu3 %v5619_v58 }
 0x489   :  { %3321 = vmatpush.xpose.msrb.mxu2 %v3144_v21 }
 0x48a   :  { %3366 = vmatpush.xpose.msrb.mxu3 %v5632_v32 }
 0x48d   :  { %3325 = vmatpush.xpose.msrb.mxu2 %v3150_v24 }
 0x48e   :  { %3368 = vmatpush.xpose.msrb.mxu3 %v5645_v17 }
 0x491   :  { %3329 = vmatpush.xpose.msrb.mxu2 %v3156_v26 }
 0x492   :  { %3370 = vmatpush.xpose.msrb.mxu3 %v5658_v57 }
 0x495   :  { %3333 = vmatpush.xpose.msrb.mxu2 %v3162_v49 }
 0x496   :  { %3372 = vmatpush.xpose.msrb.mxu3 %v5671_v46 }
 0x499   :  { %3337 = vmatpush.xpose.msrb.mxu2 %v3168_v19 }
 0x49a   :  { %3374 = vmatpush.xpose.msrb.mxu3 %v5684_v53 }
 0x49d   :  { %3341 = vmatpush.xpose.msrb.mxu2 %v3174_v23 }
 0x49e   :  { %3376 = vmatpush.xpose.msrb.mxu3 %v5697_v14 }
 0x4a1   :  { %3345 = vmatpush.xpose.msrb.mxu2 %v3180_v22  ;;  %v3007_v34 = vpop.f32.mrf.mxu0 }
 0x4a2   :  { %3378 = vmatpush.xpose.msrb.mxu3 %v5710_v52 }
 0x4a4   :  { %3347 = vmatmul.f32.vlgmr.msrb.gmra.mxu2 %v5511_v63 }
 0x4a6   :  { %3380 = vmatpush.xpose.msrb.mxu3 %v5723_v16 }
 0x4a9   :  { %v3044_v45 = vpop.f32.mrf.mxu1 }
 0x4aa   :  { %3382 = vmatpush.xpose.msrb.mxu3 %v5735_v56 }
 0x4ad   :  { %3384 = vmatmul.f32.vlgmr.msrb.gmra.mxu3 %v5511_v63 }
 0x4b5   :  { %v2703_v33 = vpop.permute.xlu0 %2702 }
 0x4b6   :  { %v2705_v7 = vperm.slane %v2703_v33, 0 }
 0x4b8   :  { %v2745_v60 = vadd.f32 %v2744_v35, %v2705_v7 }
 0x4ba   :  { %v2846_v44 = vadd.f32 %v2845_v12, %v2745_v60 }
 0x4bc   :  { %v2900_v3 = vadd.f32 %v2899_v9, %v2846_v44 }
 0x4be   :  { %v2939_v29 = vadd.f32 %v2938_v20, %v2900_v3 }
 0x4c0   :  { %v3008_v32 = vadd.f32 %v3007_v34, %v2939_v29 }
 0x4c2   :  { %v3045_v42 = vadd.f32 %v3044_v45, %v3008_v32 }
 0x4e3   :  { %v3240_v51 = vpop.f32.mrf.mxu0 }
 0x4e7   :  { %v3085_v37 = vpop.f32.mrf.mxu2 }
 0x4e8   :  { %v3086_v10 = vadd.f32 %v3085_v37, %v2705_v7 }
 0x4e9   :  { %v3279_v50 = vpop.f32.mrf.mxu1 }
 0x4f0   :  { %v3186_v38 = vpop.f32.mrf.mxu3 }
 0x4f1   :  { %v3187_v31 = vadd.f32 %v3186_v38, %v3086_v10 }
 0x4f3   :  { %v3241_v54 = vadd.f32 %v3240_v51, %v3187_v31 }
 0x4f5   :  { %v3280_v58 = vadd.f32 %v3279_v50, %v3241_v54 }
 0x527   :  { %v3348_v63 = vpop.f32.mrf.mxu2 }
 0x528   :  { %v3349_v43 = vadd.f32 %v3348_v63, %v3280_v58 }
 0x530   :  { %v3385_v13 = vpop.f32.mrf.mxu3 }
 0x531   :  { %v3386_v17 = vadd.f32 %v3385_v13, %v3349_v43 }
 0x533   :  { %v3390_v8 = vrot.slane %v3386_v17, 7 }
 0x535   :  { %v3392_v57 = vsel %vm3391_vm1, %v3045_v42, %v3390_v8 }
 0x536   :  { %3398 = vst.msk [vmem:[#allocation3] sm:$0x3] %vm3396_vm2, %v3392_v57 }
 0x537   :  { %3409 = dma.vmem_to_hbm [thread:$0]  %s3405_s9, 32, %s3407_s12, [#allocation4]  }
 0x538   :  { %3445 = dma.done.wait [#allocation4], 32  }
 0x539   :  { %3446 = vsyncadd [#allocation4], 4294967264 }
 0x53a   :  { %3414 = vsyncpa [#allocation4], 1 }

</bundles_post_ra>
